<compile_context>
chip_gen: v7x
topology: tpu7x:2x2x1
jax: 0.10.0
libtpu: 0.0.40
codegen_flags: <defaults>
</compile_context>

<pallas_src>
import math

import jax
import jax.numpy as jnp
from jax import lax
from jax.experimental import pallas as pl
from jax.experimental.pallas import tpu as pltpu
from jax.scipy.linalg import block_diag

# ----------------------- configuration (small, module-consistent) -----------------------
B = 2                  # batch
M = 4                  # nvars / enc_in
L = 32                 # seq_len / input_length
T = 16                 # target_window / output_length
PATCH = 8              # patch_size
STRIDE = 4             # patch_stride
N = L // STRIDE        # patch_num = 8
D = 32                 # dims[0] (d_model)
DFF = D * 1            # ffn_ratio = 1
C = M * D              # packed channels on the lane axis = 128
NUM_BLOCKS = 2         # num_blocks = [2]
K_L = 13               # large_size
K_S = 5                # small_size
PAD_L = K_L // 2
PAD_S = K_S // 2
NP = N + 2 * PAD_L     # zero-padded time length for the depthwise convs
PAD_STEM = PATCH - STRIDE
EPS = 1e-5
_INV_SQRT2 = 1.0 / math.sqrt(2.0)


# ------------------------------- fused forward kernel ------------------------------------
def fused_kernel(x_ref, wst_ref, bst_ref,
                 wL_ref, wS_ref, b0_ref, w1_ref, b1_ref, w2_ref, b2_ref,
                 wh_ref, bh_ref, o_ref,
                 xpad_scr, patch_scr, dwpad_scr):
    # ---------------- RevIN norm (affine=0, subtract_last=0, unbiased=False) -------------
    x = x_ref[0]                                               # (M, L)
    mean = jnp.mean(x, axis=-1, keepdims=True)                 # (M, 1)
    var = jnp.mean((x - mean) ** 2, axis=-1, keepdims=True)    # population variance
    std = jnp.sqrt(var + EPS)
    inv_std = pl.reciprocal(std, approx=False)
    xn = (x - mean) * inv_std                                  # (M, L)

    # ---------------- stem: replicate-pad right + unfold + Conv1d(1->D)+BN ---------------
    # xpad_scr : (M, L + PAD_STEM)   replicate the last value (patch_size != patch_stride)
    xpad_scr[:, :L] = xn
    xpad_scr[:, L:] = jnp.broadcast_to(xn[:, L - 1:L], (M, PAD_STEM))
    xpad = xpad_scr[...]
    # patch_scr[n, m*PATCH + k] = xpad[m, n*STRIDE + k]
    for n in range(N):
        for m in range(M):
            patch_scr[n:n + 1, m * PATCH:(m + 1) * PATCH] = \
                xpad[m:m + 1, n * STRIDE:n * STRIDE + PATCH]
    # block-diagonal stem weight (BN folded host-side): (N, M*PATCH) @ (M*PATCH, C)
    y = jnp.dot(patch_scr[...], wst_ref[...],
                preferred_element_type=jnp.float32) + bst_ref[...]        # (N, C)

    # ---------------- ModernTCN blocks (dw conv + BN + norm -> grouped FFN) --------------
    dwpad_scr[...] = jnp.zeros((NP, C), jnp.float32)           # zero time padding rows
    for i in range(NUM_BLOCKS):
        wL = wL_ref[i]                                         # (K_L, C) scales folded
        wS = wS_ref[i]                                         # (K_S, C)
        dwpad_scr[PAD_L:PAD_L + N, :] = y
        xp = dwpad_scr[...]                                    # (NP, C)

        # reparam large-kernel depthwise conv (large + small branch), BN+norm folded
        acc = xp[0:N, :] * wL[0:1, :]
        for k in range(1, K_L):
            acc = acc + xp[k:k + N, :] * wL[k:k + 1, :]
        off = PAD_L - PAD_S
        for k in range(K_S):
            acc = acc + xp[off + k:off + k + N, :] * wS[k:k + 1, :]
        acc = acc + b0_ref[i]                                  # folded BN/norm shifts

        # grouped (groups=nvars) FFN as block-diagonal 128x128 matmuls; exact GELU
        z = jnp.dot(acc, w1_ref[i], preferred_element_type=jnp.float32) + b1_ref[i]
        z = 0.5 * z * (1.0 + lax.erf(z * _INV_SQRT2))
        z = jnp.dot(z, w2_ref[i], preferred_element_type=jnp.float32) + b2_ref[i]
        y = y + z                                              # residual

    # ---------------- Flatten_Head (shared Linear) + RevIN denorm ------------------------
    # out[m, t] = sum_{n,d} y[n, m*D+d] * Wh[d*N+n, t] + bh[t]; Wh pre-permuted to (N,D,T)
    wh_n = [wh_ref[n] for n in range(N)]                       # each (D, T)
    bh = bh_ref[...]                                           # (1, T)
    for m in range(M):
        acc = bh
        for n in range(N):
            acc = acc + jnp.dot(y[n:n + 1, m * D:(m + 1) * D], wh_n[n],
                                preferred_element_type=jnp.float32)
        o_ref[0, m:m + 1, :] = acc * std[m:m + 1, :] + mean[m:m + 1, :]


# ------------------------------------ wrapper ---------------------------------------------
def modern_tcn_forward(x, p):
    return pl.pallas_call(
        fused_kernel,
        grid=(B,),
        in_specs=[
            pl.BlockSpec((1, M, L), lambda b: (b, 0, 0)),                   # x
            pl.BlockSpec((M * PATCH, C), lambda b: (0, 0)),                 # stem weight
            pl.BlockSpec((1, C), lambda b: (0, 0)),                         # stem bias
            pl.BlockSpec((NUM_BLOCKS, K_L, C), lambda b: (0, 0, 0)),        # dw large
            pl.BlockSpec((NUM_BLOCKS, K_S, C), lambda b: (0, 0, 0)),        # dw small
            pl.BlockSpec((NUM_BLOCKS, 1, C), lambda b: (0, 0, 0)),          # dw+norm shift
            pl.BlockSpec((NUM_BLOCKS, C, C), lambda b: (0, 0, 0)),          # ffn1pw1 (bd)
            pl.BlockSpec((NUM_BLOCKS, 1, C), lambda b: (0, 0, 0)),          # ffn1pw1 bias
            pl.BlockSpec((NUM_BLOCKS, C, C), lambda b: (0, 0, 0)),          # ffn1pw2 (bd)
            pl.BlockSpec((NUM_BLOCKS, 1, C), lambda b: (0, 0, 0)),          # ffn1pw2 bias
            pl.BlockSpec((N, D, T), lambda b: (0, 0, 0)),                   # head weight
            pl.BlockSpec((1, T), lambda b: (0, 0)),                         # head bias
        ],
        out_specs=pl.BlockSpec((1, M, T), lambda b: (b, 0, 0)),
        out_shape=jax.ShapeDtypeStruct((B, M, T), jnp.float32),
        scratch_shapes=[
            pltpu.VMEM((M, L + PAD_STEM), jnp.float32),   # replicate-padded series
            pltpu.VMEM((N, M * PATCH), jnp.float32),      # unfolded stem patches
            pltpu.VMEM((NP, C), jnp.float32),             # zero-padded dw-conv input
        ],
        compiler_params=pltpu.CompilerParams(
            dimension_semantics=("parallel",)),
    )(x, p["w_stem"], p["b_stem"], p["wL"], p["wS"], p["b0"],
      p["w1"], p["b1"], p["w2"], p["b2"], p["w_head"], p["b_head"])


# ----------------------------- parameters (host-side folding) -----------------------------
def _bn_fold(key, n):
    """Eval-mode BatchNorm1d -> per-channel (scale, shift)."""
    k1, k2, k3, k4 = jax.random.split(key, 4)
    gamma = jax.random.uniform(k1, (n,), minval=0.8, maxval=1.2)
    beta = 0.05 * jax.random.normal(k2, (n,))
    rmean = 0.05 * jax.random.normal(k3, (n,))
    rvar = jax.random.uniform(k4, (n,), minval=0.5, maxval=1.5)
    s = gamma / jnp.sqrt(rvar + EPS)
    return s, beta - rmean * s


def init_params(key):
    keys = jax.random.split(key, 8)

    # stem: Conv1d(1, D, k=PATCH, stride=STRIDE, bias=True) + BatchNorm1d(D) (eval)
    w_stem = 0.1 * jax.random.normal(keys[0], (PATCH, D))
    b_stem = 0.05 * jax.random.normal(keys[1], (D,))
    s_st, sh_st = _bn_fold(keys[2], D)
    w_eff = w_stem * s_st[None, :]
    b_eff = b_stem * s_st + sh_st
    w_stem_bd = block_diag(*([w_eff] * M))            # (M*PATCH, M*D), shared per-var block
    b_stem_t = jnp.tile(b_eff, M)[None, :]            # (1, C)

    wL_l, wS_l, b0_l, w1_l, b1_l, w2_l, b2_l = [], [], [], [], [], [], []
    for i in range(NUM_BLOCKS):
        bk = jax.random.split(keys[3 + i], 10)
        sL, shL = _bn_fold(bk[0], C)                  # BN after large dw conv (M*D chans)
        sS, shS = _bn_fold(bk[1], C)                  # BN after small dw conv
        ns_d, nb_d = _bn_fold(bk[2], D)               # self.norm = BatchNorm1d(dmodel)
        ns = jnp.tile(ns_d, M)
        nb = jnp.tile(nb_d, M)
        wL = 0.1 * jax.random.normal(bk[3], (K_L, C))
        wS = 0.1 * jax.random.normal(bk[4], (K_S, C))
        wL_l.append(wL * (sL * ns)[None, :])          # fold branch-BN and norm scales
        wS_l.append(wS * (sS * ns)[None, :])
        b0_l.append(((shL + shS) * ns + nb)[None, :])

        w1 = 0.1 * jax.random.normal(bk[5], (M, D, DFF))   # ffn1pw1 (groups = nvars)
        b1 = 0.05 * jax.random.normal(bk[6], (M, DFF))
        w2 = 0.1 * jax.random.normal(bk[7], (M, DFF, D))   # ffn1pw2 (groups = nvars)
        b2 = 0.05 * jax.random.normal(bk[8], (M, D))
        w1_l.append(block_diag(*[w1[m] for m in range(M)]))   # (C, C)
        b1_l.append(b1.reshape(1, M * DFF))
        w2_l.append(block_diag(*[w2[m] for m in range(M)]))   # (C, C)
        b2_l.append(b2.reshape(1, M * D))

    # head: shared Linear(D*N -> T); fold the d-major Flatten order into a (N, D, T) weight
    w_head = 0.05 * jax.random.normal(keys[5], (D * N, T))
    b_head = 0.05 * jax.random.normal(keys[6], (T,))
    w_head_r = w_head.reshape(D, N, T).transpose(1, 0, 2)      # (N, D, T)

    params = dict(
        w_stem=w_stem_bd, b_stem=b_stem_t,
        wL=jnp.stack(wL_l), wS=jnp.stack(wS_l), b0=jnp.stack(b0_l),
        w1=jnp.stack(w1_l), b1=jnp.stack(b1_l),
        w2=jnp.stack(w2_l), b2=jnp.stack(b2_l),
        w_head=w_head_r, b_head=b_head[None, :],
    )
    return jax.tree_util.tree_map(lambda a: a.astype(jnp.float32), params)


if __name__ == "__main__":
    key = jax.random.PRNGKey(0)
    kx, kp = jax.random.split(key)
    x = jax.random.normal(kx, (B, M, L), dtype=jnp.float32)   # (batch, nvars, seq_len)
    params = init_params(kp)

    fwd = jax.jit(modern_tcn_forward)
    out = fwd(x, params)
    jax.block_until_ready(out)
    assert out.shape == (B, M, T) and out.dtype == jnp.float32
    assert bool(jnp.all(jnp.isfinite(out)))
    print("KERNEL_OK")
</pallas_src>

<mosaic_0001>
module attributes {stable_mosaic.version = 11 : i64} {
  func.func @fused_kernel(%arg0: i32, %arg1: memref<1x4x32xf32, #tpu.memory_space<vmem>>, %arg2: memref<32x128xf32, #tpu.memory_space<vmem>>, %arg3: memref<1x128xf32, #tpu.memory_space<vmem>>, %arg4: memref<2x13x128xf32, #tpu.memory_space<vmem>>, %arg5: memref<2x5x128xf32, #tpu.memory_space<vmem>>, %arg6: memref<2x1x128xf32, #tpu.memory_space<vmem>>, %arg7: memref<2x128x128xf32, #tpu.memory_space<vmem>>, %arg8: memref<2x1x128xf32, #tpu.memory_space<vmem>>, %arg9: memref<2x128x128xf32, #tpu.memory_space<vmem>>, %arg10: memref<2x1x128xf32, #tpu.memory_space<vmem>>, %arg11: memref<8x32x16xf32, #tpu.memory_space<vmem>>, %arg12: memref<1x16xf32, #tpu.memory_space<vmem>>, %arg13: memref<1x4x16xf32, #tpu.memory_space<vmem>>, %arg14: memref<4x36xf32, #tpu.memory_space<vmem>>, %arg15: memref<8x32xf32, #tpu.memory_space<vmem>>, %arg16: memref<20x128xf32, #tpu.memory_space<vmem>>) attributes {dimension_semantics = [#tpu.dimension_semantics<parallel>], iteration_bounds = array<i64: 2>, scalar_prefetch = 0 : i64, scratch_operands = 3 : i64, tpu.core_type = #tpu.core_type<tc>, window_params = [{transform_indices = @transform_0, window_bounds = array<i64: 1, 4, 32>}, {pipeline_mode = #tpu.pipeline_mode<synchronous>, transform_indices = @transform_1, window_bounds = array<i64: 32, 128>}, {pipeline_mode = #tpu.pipeline_mode<synchronous>, transform_indices = @transform_2, window_bounds = array<i64: 1, 128>}, {pipeline_mode = #tpu.pipeline_mode<synchronous>, transform_indices = @transform_3, window_bounds = array<i64: 2, 13, 128>}, {pipeline_mode = #tpu.pipeline_mode<synchronous>, transform_indices = @transform_4, window_bounds = array<i64: 2, 5, 128>}, {pipeline_mode = #tpu.pipeline_mode<synchronous>, transform_indices = @transform_5, window_bounds = array<i64: 2, 1, 128>}, {pipeline_mode = #tpu.pipeline_mode<synchronous>, transform_indices = @transform_6, window_bounds = array<i64: 2, 128, 128>}, {pipeline_mode = #tpu.pipeline_mode<synchronous>, transform_indices = @transform_7, window_bounds = array<i64: 2, 1, 128>}, {pipeline_mode = #tpu.pipeline_mode<synchronous>, transform_indices = @transform_8, window_bounds = array<i64: 2, 128, 128>}, {pipeline_mode = #tpu.pipeline_mode<synchronous>, transform_indices = @transform_9, window_bounds = array<i64: 2, 1, 128>}, {pipeline_mode = #tpu.pipeline_mode<synchronous>, transform_indices = @transform_10, window_bounds = array<i64: 8, 32, 16>}, {pipeline_mode = #tpu.pipeline_mode<synchronous>, transform_indices = @transform_11, window_bounds = array<i64: 1, 16>}, {transform_indices = @transform_12, window_bounds = array<i64: 1, 4, 16>}]} {
    %c0 = arith.constant 0 : index
    %c0_0 = arith.constant 0 : index
    %c0_1 = arith.constant 0 : index
    %0 = vector.load %arg1[%c0, %c0_0, %c0_1] : memref<1x4x32xf32, #tpu.memory_space<vmem>>, vector<1x4x32xf32>
    %1 = vector.shape_cast %0 : vector<1x4x32xf32> to vector<4x32xf32>
    %cst = arith.constant dense<0.000000e+00> : vector<4xf32>
    %2 = vector.multi_reduction <add>, %1, %cst [1] : vector<4x32xf32> to vector<4xf32>
    %3 = vector.shape_cast %2 : vector<4xf32> to vector<4x1xf32>
    %cst_2 = arith.constant 3.200000e+01 : f32
    %4 = vector.broadcast %cst_2 : f32 to vector<4x1xf32>
    %5 = arith.divf %3, %4 : vector<4x1xf32>
    %6 = vector.broadcast %5 : vector<4x1xf32> to vector<4x32xf32>
    %7 = arith.subf %1, %6 : vector<4x32xf32>
    %8 = arith.mulf %7, %7 : vector<4x32xf32>
    %cst_3 = arith.constant dense<0.000000e+00> : vector<4xf32>
    %9 = vector.multi_reduction <add>, %8, %cst_3 [1] : vector<4x32xf32> to vector<4xf32>
    %10 = vector.shape_cast %9 : vector<4xf32> to vector<4x1xf32>
    %cst_4 = arith.constant 3.200000e+01 : f32
    %11 = vector.broadcast %cst_4 : f32 to vector<4x1xf32>
    %12 = arith.divf %10, %11 : vector<4x1xf32>
    %cst_5 = arith.constant 9.99999974E-6 : f32
    %13 = vector.broadcast %cst_5 : f32 to vector<4x1xf32>
    %14 = arith.addf %12, %13 : vector<4x1xf32>
    %15 = math.sqrt %14 : vector<4x1xf32>
    %16 = tpu.reciprocal %15 : vector<4x1xf32> -> vector<4x1xf32>
    %17 = vector.broadcast %5 : vector<4x1xf32> to vector<4x32xf32>
    %18 = arith.subf %1, %17 : vector<4x32xf32>
    %19 = vector.broadcast %16 : vector<4x1xf32> to vector<4x32xf32>
    %20 = arith.mulf %18, %19 : vector<4x32xf32>
    %c0_6 = arith.constant 0 : index
    %c0_7 = arith.constant 0 : index
    %21 = vector.load %arg14[%c0_6, %c0_7] : memref<4x36xf32, #tpu.memory_space<vmem>>, vector<4x32xf32>
    tpu.vector_store %arg14[%c0_6, %c0_7], %20 {strides = array<i32>} : memref<4x36xf32, #tpu.memory_space<vmem>>, vector<4x32xf32>,
    %22 = vector.extract_strided_slice %20 {offsets = [0, 31], sizes = [4, 1], strides = [1, 1]} : vector<4x32xf32> to vector<4x1xf32>
    %23 = vector.shape_cast %22 : vector<4x1xf32> to vector<4x1xf32>
    %24 = vector.broadcast %23 : vector<4x1xf32> to vector<4x4xf32>
    %c0_8 = arith.constant 0 : index
    %c32 = arith.constant 32 : index
    %25 = vector.load %arg14[%c0_8, %c32] : memref<4x36xf32, #tpu.memory_space<vmem>>, vector<4x4xf32>
    tpu.vector_store %arg14[%c0_8, %c32], %24 {strides = array<i32>} : memref<4x36xf32, #tpu.memory_space<vmem>>, vector<4x4xf32>,
    %c0_9 = arith.constant 0 : index
    %c0_10 = arith.constant 0 : index
    %26 = vector.load %arg14[%c0_9, %c0_10] : memref<4x36xf32, #tpu.memory_space<vmem>>, vector<4x36xf32>
    %27 = vector.extract_strided_slice %26 {offsets = [0, 0], sizes = [1, 8], strides = [1, 1]} : vector<4x36xf32> to vector<1x8xf32>
    %c0_11 = arith.constant 0 : index
    %c0_12 = arith.constant 0 : index
    %28 = vector.load %arg15[%c0_11, %c0_12] : memref<8x32xf32, #tpu.memory_space<vmem>>, vector<1x8xf32>
    tpu.vector_store %arg15[%c0_11, %c0_12], %27 {strides = array<i32>} : memref<8x32xf32, #tpu.memory_space<vmem>>, vector<1x8xf32>,
    %29 = vector.extract_strided_slice %26 {offsets = [1, 0], sizes = [1, 8], strides = [1, 1]} : vector<4x36xf32> to vector<1x8xf32>
    %c0_13 = arith.constant 0 : index
    %c8 = arith.constant 8 : index
    %30 = vector.load %arg15[%c0_13, %c8] : memref<8x32xf32, #tpu.memory_space<vmem>>, vector<1x8xf32>
    tpu.vector_store %arg15[%c0_13, %c8], %29 {strides = array<i32>} : memref<8x32xf32, #tpu.memory_space<vmem>>, vector<1x8xf32>,
    %31 = vector.extract_strided_slice %26 {offsets = [2, 0], sizes = [1, 8], strides = [1, 1]} : vector<4x36xf32> to vector<1x8xf32>
    %c0_14 = arith.constant 0 : index
    %c16 = arith.constant 16 : index
    %32 = vector.load %arg15[%c0_14, %c16] : memref<8x32xf32, #tpu.memory_space<vmem>>, vector<1x8xf32>
    tpu.vector_store %arg15[%c0_14, %c16], %31 {strides = array<i32>} : memref<8x32xf32, #tpu.memory_space<vmem>>, vector<1x8xf32>,
    %33 = vector.extract_strided_slice %26 {offsets = [3, 0], sizes = [1, 8], strides = [1, 1]} : vector<4x36xf32> to vector<1x8xf32>
    %c0_15 = arith.constant 0 : index
    %c24 = arith.constant 24 : index
    %34 = vector.load %arg15[%c0_15, %c24] : memref<8x32xf32, #tpu.memory_space<vmem>>, vector<1x8xf32>
    tpu.vector_store %arg15[%c0_15, %c24], %33 {strides = array<i32>} : memref<8x32xf32, #tpu.memory_space<vmem>>, vector<1x8xf32>,
    %35 = vector.extract_strided_slice %26 {offsets = [0, 4], sizes = [1, 8], strides = [1, 1]} : vector<4x36xf32> to vector<1x8xf32>
    %c1 = arith.constant 1 : index
    %c0_16 = arith.constant 0 : index
    %36 = vector.load %arg15[%c1, %c0_16] : memref<8x32xf32, #tpu.memory_space<vmem>>, vector<1x8xf32>
    tpu.vector_store %arg15[%c1, %c0_16], %35 {strides = array<i32>} : memref<8x32xf32, #tpu.memory_space<vmem>>, vector<1x8xf32>,
    %37 = vector.extract_strided_slice %26 {offsets = [1, 4], sizes = [1, 8], strides = [1, 1]} : vector<4x36xf32> to vector<1x8xf32>
    %c1_17 = arith.constant 1 : index
    %c8_18 = arith.constant 8 : index
    %38 = vector.load %arg15[%c1_17, %c8_18] : memref<8x32xf32, #tpu.memory_space<vmem>>, vector<1x8xf32>
    tpu.vector_store %arg15[%c1_17, %c8_18], %37 {strides = array<i32>} : memref<8x32xf32, #tpu.memory_space<vmem>>, vector<1x8xf32>,
    %39 = vector.extract_strided_slice %26 {offsets = [2, 4], sizes = [1, 8], strides = [1, 1]} : vector<4x36xf32> to vector<1x8xf32>
    %c1_19 = arith.constant 1 : index
    %c16_20 = arith.constant 16 : index
    %40 = vector.load %arg15[%c1_19, %c16_20] : memref<8x32xf32, #tpu.memory_space<vmem>>, vector<1x8xf32>
    tpu.vector_store %arg15[%c1_19, %c16_20], %39 {strides = array<i32>} : memref<8x32xf32, #tpu.memory_space<vmem>>, vector<1x8xf32>,
    %41 = vector.extract_strided_slice %26 {offsets = [3, 4], sizes = [1, 8], strides = [1, 1]} : vector<4x36xf32> to vector<1x8xf32>
    %c1_21 = arith.constant 1 : index
    %c24_22 = arith.constant 24 : index
    %42 = vector.load %arg15[%c1_21, %c24_22] : memref<8x32xf32, #tpu.memory_space<vmem>>, vector<1x8xf32>
    tpu.vector_store %arg15[%c1_21, %c24_22], %41 {strides = array<i32>} : memref<8x32xf32, #tpu.memory_space<vmem>>, vector<1x8xf32>,
    %43 = vector.extract_strided_slice %26 {offsets = [0, 8], sizes = [1, 8], strides = [1, 1]} : vector<4x36xf32> to vector<1x8xf32>
    %c2 = arith.constant 2 : index
    %c0_23 = arith.constant 0 : index
    %44 = vector.load %arg15[%c2, %c0_23] : memref<8x32xf32, #tpu.memory_space<vmem>>, vector<1x8xf32>
    tpu.vector_store %arg15[%c2, %c0_23], %43 {strides = array<i32>} : memref<8x32xf32, #tpu.memory_space<vmem>>, vector<1x8xf32>,
    %45 = vector.extract_strided_slice %26 {offsets = [1, 8], sizes = [1, 8], strides = [1, 1]} : vector<4x36xf32> to vector<1x8xf32>
    %c2_24 = arith.constant 2 : index
    %c8_25 = arith.constant 8 : index
    %46 = vector.load %arg15[%c2_24, %c8_25] : memref<8x32xf32, #tpu.memory_space<vmem>>, vector<1x8xf32>
    tpu.vector_store %arg15[%c2_24, %c8_25], %45 {strides = array<i32>} : memref<8x32xf32, #tpu.memory_space<vmem>>, vector<1x8xf32>,
    %47 = vector.extract_strided_slice %26 {offsets = [2, 8], sizes = [1, 8], strides = [1, 1]} : vector<4x36xf32> to vector<1x8xf32>
    %c2_26 = arith.constant 2 : index
    %c16_27 = arith.constant 16 : index
    %48 = vector.load %arg15[%c2_26, %c16_27] : memref<8x32xf32, #tpu.memory_space<vmem>>, vector<1x8xf32>
    tpu.vector_store %arg15[%c2_26, %c16_27], %47 {strides = array<i32>} : memref<8x32xf32, #tpu.memory_space<vmem>>, vector<1x8xf32>,
    %49 = vector.extract_strided_slice %26 {offsets = [3, 8], sizes = [1, 8], strides = [1, 1]} : vector<4x36xf32> to vector<1x8xf32>
    %c2_28 = arith.constant 2 : index
    %c24_29 = arith.constant 24 : index
    %50 = vector.load %arg15[%c2_28, %c24_29] : memref<8x32xf32, #tpu.memory_space<vmem>>, vector<1x8xf32>
    tpu.vector_store %arg15[%c2_28, %c24_29], %49 {strides = array<i32>} : memref<8x32xf32, #tpu.memory_space<vmem>>, vector<1x8xf32>,
    %51 = vector.extract_strided_slice %26 {offsets = [0, 12], sizes = [1, 8], strides = [1, 1]} : vector<4x36xf32> to vector<1x8xf32>
    %c3 = arith.constant 3 : index
    %c0_30 = arith.constant 0 : index
    %52 = vector.load %arg15[%c3, %c0_30] : memref<8x32xf32, #tpu.memory_space<vmem>>, vector<1x8xf32>
    tpu.vector_store %arg15[%c3, %c0_30], %51 {strides = array<i32>} : memref<8x32xf32, #tpu.memory_space<vmem>>, vector<1x8xf32>,
    %53 = vector.extract_strided_slice %26 {offsets = [1, 12], sizes = [1, 8], strides = [1, 1]} : vector<4x36xf32> to vector<1x8xf32>
    %c3_31 = arith.constant 3 : index
    %c8_32 = arith.constant 8 : index
    %54 = vector.load %arg15[%c3_31, %c8_32] : memref<8x32xf32, #tpu.memory_space<vmem>>, vector<1x8xf32>
    tpu.vector_store %arg15[%c3_31, %c8_32], %53 {strides = array<i32>} : memref<8x32xf32, #tpu.memory_space<vmem>>, vector<1x8xf32>,
    %55 = vector.extract_strided_slice %26 {offsets = [2, 12], sizes = [1, 8], strides = [1, 1]} : vector<4x36xf32> to vector<1x8xf32>
    %c3_33 = arith.constant 3 : index
    %c16_34 = arith.constant 16 : index
    %56 = vector.load %arg15[%c3_33, %c16_34] : memref<8x32xf32, #tpu.memory_space<vmem>>, vector<1x8xf32>
    tpu.vector_store %arg15[%c3_33, %c16_34], %55 {strides = array<i32>} : memref<8x32xf32, #tpu.memory_space<vmem>>, vector<1x8xf32>,
    %57 = vector.extract_strided_slice %26 {offsets = [3, 12], sizes = [1, 8], strides = [1, 1]} : vector<4x36xf32> to vector<1x8xf32>
    %c3_35 = arith.constant 3 : index
    %c24_36 = arith.constant 24 : index
    %58 = vector.load %arg15[%c3_35, %c24_36] : memref<8x32xf32, #tpu.memory_space<vmem>>, vector<1x8xf32>
    tpu.vector_store %arg15[%c3_35, %c24_36], %57 {strides = array<i32>} : memref<8x32xf32, #tpu.memory_space<vmem>>, vector<1x8xf32>,
    %59 = vector.extract_strided_slice %26 {offsets = [0, 16], sizes = [1, 8], strides = [1, 1]} : vector<4x36xf32> to vector<1x8xf32>
    %c4 = arith.constant 4 : index
    %c0_37 = arith.constant 0 : index
    %60 = vector.load %arg15[%c4, %c0_37] : memref<8x32xf32, #tpu.memory_space<vmem>>, vector<1x8xf32>
    tpu.vector_store %arg15[%c4, %c0_37], %59 {strides = array<i32>} : memref<8x32xf32, #tpu.memory_space<vmem>>, vector<1x8xf32>,
    %61 = vector.extract_strided_slice %26 {offsets = [1, 16], sizes = [1, 8], strides = [1, 1]} : vector<4x36xf32> to vector<1x8xf32>
    %c4_38 = arith.constant 4 : index
    %c8_39 = arith.constant 8 : index
    %62 = vector.load %arg15[%c4_38, %c8_39] : memref<8x32xf32, #tpu.memory_space<vmem>>, vector<1x8xf32>
    tpu.vector_store %arg15[%c4_38, %c8_39], %61 {strides = array<i32>} : memref<8x32xf32, #tpu.memory_space<vmem>>, vector<1x8xf32>,
    %63 = vector.extract_strided_slice %26 {offsets = [2, 16], sizes = [1, 8], strides = [1, 1]} : vector<4x36xf32> to vector<1x8xf32>
    %c4_40 = arith.constant 4 : index
    %c16_41 = arith.constant 16 : index
    %64 = vector.load %arg15[%c4_40, %c16_41] : memref<8x32xf32, #tpu.memory_space<vmem>>, vector<1x8xf32>
    tpu.vector_store %arg15[%c4_40, %c16_41], %63 {strides = array<i32>} : memref<8x32xf32, #tpu.memory_space<vmem>>, vector<1x8xf32>,
    %65 = vector.extract_strided_slice %26 {offsets = [3, 16], sizes = [1, 8], strides = [1, 1]} : vector<4x36xf32> to vector<1x8xf32>
    %c4_42 = arith.constant 4 : index
    %c24_43 = arith.constant 24 : index
    %66 = vector.load %arg15[%c4_42, %c24_43] : memref<8x32xf32, #tpu.memory_space<vmem>>, vector<1x8xf32>
    tpu.vector_store %arg15[%c4_42, %c24_43], %65 {strides = array<i32>} : memref<8x32xf32, #tpu.memory_space<vmem>>, vector<1x8xf32>,
    %67 = vector.extract_strided_slice %26 {offsets = [0, 20], sizes = [1, 8], strides = [1, 1]} : vector<4x36xf32> to vector<1x8xf32>
    %c5 = arith.constant 5 : index
    %c0_44 = arith.constant 0 : index
    %68 = vector.load %arg15[%c5, %c0_44] : memref<8x32xf32, #tpu.memory_space<vmem>>, vector<1x8xf32>
    tpu.vector_store %arg15[%c5, %c0_44], %67 {strides = array<i32>} : memref<8x32xf32, #tpu.memory_space<vmem>>, vector<1x8xf32>,
    %69 = vector.extract_strided_slice %26 {offsets = [1, 20], sizes = [1, 8], strides = [1, 1]} : vector<4x36xf32> to vector<1x8xf32>
    %c5_45 = arith.constant 5 : index
    %c8_46 = arith.constant 8 : index
    %70 = vector.load %arg15[%c5_45, %c8_46] : memref<8x32xf32, #tpu.memory_space<vmem>>, vector<1x8xf32>
    tpu.vector_store %arg15[%c5_45, %c8_46], %69 {strides = array<i32>} : memref<8x32xf32, #tpu.memory_space<vmem>>, vector<1x8xf32>,
    %71 = vector.extract_strided_slice %26 {offsets = [2, 20], sizes = [1, 8], strides = [1, 1]} : vector<4x36xf32> to vector<1x8xf32>
    %c5_47 = arith.constant 5 : index
    %c16_48 = arith.constant 16 : index
    %72 = vector.load %arg15[%c5_47, %c16_48] : memref<8x32xf32, #tpu.memory_space<vmem>>, vector<1x8xf32>
    tpu.vector_store %arg15[%c5_47, %c16_48], %71 {strides = array<i32>} : memref<8x32xf32, #tpu.memory_space<vmem>>, vector<1x8xf32>,
    %73 = vector.extract_strided_slice %26 {offsets = [3, 20], sizes = [1, 8], strides = [1, 1]} : vector<4x36xf32> to vector<1x8xf32>
    %c5_49 = arith.constant 5 : index
    %c24_50 = arith.constant 24 : index
    %74 = vector.load %arg15[%c5_49, %c24_50] : memref<8x32xf32, #tpu.memory_space<vmem>>, vector<1x8xf32>
    tpu.vector_store %arg15[%c5_49, %c24_50], %73 {strides = array<i32>} : memref<8x32xf32, #tpu.memory_space<vmem>>, vector<1x8xf32>,
    %75 = vector.extract_strided_slice %26 {offsets = [0, 24], sizes = [1, 8], strides = [1, 1]} : vector<4x36xf32> to vector<1x8xf32>
    %c6 = arith.constant 6 : index
    %c0_51 = arith.constant 0 : index
    %76 = vector.load %arg15[%c6, %c0_51] : memref<8x32xf32, #tpu.memory_space<vmem>>, vector<1x8xf32>
    tpu.vector_store %arg15[%c6, %c0_51], %75 {strides = array<i32>} : memref<8x32xf32, #tpu.memory_space<vmem>>, vector<1x8xf32>,
    %77 = vector.extract_strided_slice %26 {offsets = [1, 24], sizes = [1, 8], strides = [1, 1]} : vector<4x36xf32> to vector<1x8xf32>
    %c6_52 = arith.constant 6 : index
    %c8_53 = arith.constant 8 : index
    %78 = vector.load %arg15[%c6_52, %c8_53] : memref<8x32xf32, #tpu.memory_space<vmem>>, vector<1x8xf32>
    tpu.vector_store %arg15[%c6_52, %c8_53], %77 {strides = array<i32>} : memref<8x32xf32, #tpu.memory_space<vmem>>, vector<1x8xf32>,
    %79 = vector.extract_strided_slice %26 {offsets = [2, 24], sizes = [1, 8], strides = [1, 1]} : vector<4x36xf32> to vector<1x8xf32>
    %c6_54 = arith.constant 6 : index
    %c16_55 = arith.constant 16 : index
    %80 = vector.load %arg15[%c6_54, %c16_55] : memref<8x32xf32, #tpu.memory_space<vmem>>, vector<1x8xf32>
    tpu.vector_store %arg15[%c6_54, %c16_55], %79 {strides = array<i32>} : memref<8x32xf32, #tpu.memory_space<vmem>>, vector<1x8xf32>,
    %81 = vector.extract_strided_slice %26 {offsets = [3, 24], sizes = [1, 8], strides = [1, 1]} : vector<4x36xf32> to vector<1x8xf32>
    %c6_56 = arith.constant 6 : index
    %c24_57 = arith.constant 24 : index
    %82 = vector.load %arg15[%c6_56, %c24_57] : memref<8x32xf32, #tpu.memory_space<vmem>>, vector<1x8xf32>
    tpu.vector_store %arg15[%c6_56, %c24_57], %81 {strides = array<i32>} : memref<8x32xf32, #tpu.memory_space<vmem>>, vector<1x8xf32>,
    %83 = vector.extract_strided_slice %26 {offsets = [0, 28], sizes = [1, 8], strides = [1, 1]} : vector<4x36xf32> to vector<1x8xf32>
    %c7 = arith.constant 7 : index
    %c0_58 = arith.constant 0 : index
    %84 = vector.load %arg15[%c7, %c0_58] : memref<8x32xf32, #tpu.memory_space<vmem>>, vector<1x8xf32>
    tpu.vector_store %arg15[%c7, %c0_58], %83 {strides = array<i32>} : memref<8x32xf32, #tpu.memory_space<vmem>>, vector<1x8xf32>,
    %85 = vector.extract_strided_slice %26 {offsets = [1, 28], sizes = [1, 8], strides = [1, 1]} : vector<4x36xf32> to vector<1x8xf32>
    %c7_59 = arith.constant 7 : index
    %c8_60 = arith.constant 8 : index
    %86 = vector.load %arg15[%c7_59, %c8_60] : memref<8x32xf32, #tpu.memory_space<vmem>>, vector<1x8xf32>
    tpu.vector_store %arg15[%c7_59, %c8_60], %85 {strides = array<i32>} : memref<8x32xf32, #tpu.memory_space<vmem>>, vector<1x8xf32>,
    %87 = vector.extract_strided_slice %26 {offsets = [2, 28], sizes = [1, 8], strides = [1, 1]} : vector<4x36xf32> to vector<1x8xf32>
    %c7_61 = arith.constant 7 : index
    %c16_62 = arith.constant 16 : index
    %88 = vector.load %arg15[%c7_61, %c16_62] : memref<8x32xf32, #tpu.memory_space<vmem>>, vector<1x8xf32>
    tpu.vector_store %arg15[%c7_61, %c16_62], %87 {strides = array<i32>} : memref<8x32xf32, #tpu.memory_space<vmem>>, vector<1x8xf32>,
    %89 = vector.extract_strided_slice %26 {offsets = [3, 28], sizes = [1, 8], strides = [1, 1]} : vector<4x36xf32> to vector<1x8xf32>
    %c7_63 = arith.constant 7 : index
    %c24_64 = arith.constant 24 : index
    %90 = vector.load %arg15[%c7_63, %c24_64] : memref<8x32xf32, #tpu.memory_space<vmem>>, vector<1x8xf32>
    tpu.vector_store %arg15[%c7_63, %c24_64], %89 {strides = array<i32>} : memref<8x32xf32, #tpu.memory_space<vmem>>, vector<1x8xf32>,
    %c0_65 = arith.constant 0 : index
    %c0_66 = arith.constant 0 : index
    %91 = vector.load %arg15[%c0_65, %c0_66] : memref<8x32xf32, #tpu.memory_space<vmem>>, vector<8x32xf32>
    %c0_67 = arith.constant 0 : index
    %c0_68 = arith.constant 0 : index
    %92 = vector.load %arg2[%c0_67, %c0_68] : memref<32x128xf32, #tpu.memory_space<vmem>>, vector<32x128xf32>
    %cst_69 = arith.constant dense<0.000000e+00> : vector<8x128xf32>
    %93 = tpu.matmul %91, %92, %cst_69 {dimension_numbers = #tpu.dot_dimension_numbers<[1], [0], [0], [1], [0, 0, 1, 1], [], []>} : vector<8x32xf32>, vector<32x128xf32>, vector<8x128xf32> -> vector<8x128xf32>
    %c0_70 = arith.constant 0 : index
    %c0_71 = arith.constant 0 : index
    %94 = vector.load %arg3[%c0_70, %c0_71] : memref<1x128xf32, #tpu.memory_space<vmem>>, vector<1x128xf32>
    %95 = vector.broadcast %94 : vector<1x128xf32> to vector<8x128xf32>
    %96 = arith.addf %93, %95 : vector<8x128xf32>
    %cst_72 = arith.constant 0.000000e+00 : f32
    %97 = vector.broadcast %cst_72 : f32 to vector<20x128xf32>
    %c0_73 = arith.constant 0 : index
    %c0_74 = arith.constant 0 : index
    %98 = vector.load %arg16[%c0_73, %c0_74] : memref<20x128xf32, #tpu.memory_space<vmem>>, vector<20x128xf32>
    tpu.vector_store %arg16[%c0_73, %c0_74], %97 {strides = array<i32>} : memref<20x128xf32, #tpu.memory_space<vmem>>, vector<20x128xf32>,
    %c0_75 = arith.constant 0 : index
    %c0_76 = arith.constant 0 : index
    %c0_77 = arith.constant 0 : index
    %99 = vector.load %arg4[%c0_75, %c0_76, %c0_77] : memref<2x13x128xf32, #tpu.memory_space<vmem>>, vector<1x13x128xf32>
    %100 = vector.shape_cast %99 : vector<1x13x128xf32> to vector<13x128xf32>
    %c0_78 = arith.constant 0 : index
    %c0_79 = arith.constant 0 : index
    %c0_80 = arith.constant 0 : index
    %101 = vector.load %arg5[%c0_78, %c0_79, %c0_80] : memref<2x5x128xf32, #tpu.memory_space<vmem>>, vector<1x5x128xf32>
    %102 = vector.shape_cast %101 : vector<1x5x128xf32> to vector<5x128xf32>
    %c6_81 = arith.constant 6 : index
    %c0_82 = arith.constant 0 : index
    %103 = vector.load %arg16[%c6_81, %c0_82] : memref<20x128xf32, #tpu.memory_space<vmem>>, vector<8x128xf32>
    tpu.vector_store %arg16[%c6_81, %c0_82], %96 {strides = array<i32>} : memref<20x128xf32, #tpu.memory_space<vmem>>, vector<8x128xf32>,
    %c0_83 = arith.constant 0 : index
    %c0_84 = arith.constant 0 : index
    %104 = vector.load %arg16[%c0_83, %c0_84] : memref<20x128xf32, #tpu.memory_space<vmem>>, vector<20x128xf32>
    %105 = vector.extract_strided_slice %104 {offsets = [0, 0], sizes = [8, 128], strides = [1, 1]} : vector<20x128xf32> to vector<8x128xf32>
    %106 = vector.extract_strided_slice %100 {offsets = [0, 0], sizes = [1, 128], strides = [1, 1]} : vector<13x128xf32> to vector<1x128xf32>
    %107 = vector.broadcast %106 : vector<1x128xf32> to vector<8x128xf32>
    %108 = arith.mulf %105, %107 : vector<8x128xf32>
    %109 = vector.extract_strided_slice %104 {offsets = [1, 0], sizes = [8, 128], strides = [1, 1]} : vector<20x128xf32> to vector<8x128xf32>
    %110 = vector.extract_strided_slice %100 {offsets = [1, 0], sizes = [1, 128], strides = [1, 1]} : vector<13x128xf32> to vector<1x128xf32>
    %111 = vector.broadcast %110 : vector<1x128xf32> to vector<8x128xf32>
    %112 = arith.mulf %109, %111 : vector<8x128xf32>
    %113 = arith.addf %108, %112 : vector<8x128xf32>
    %114 = vector.extract_strided_slice %104 {offsets = [2, 0], sizes = [8, 128], strides = [1, 1]} : vector<20x128xf32> to vector<8x128xf32>
    %115 = vector.extract_strided_slice %100 {offsets = [2, 0], sizes = [1, 128], strides = [1, 1]} : vector<13x128xf32> to vector<1x128xf32>
    %116 = vector.broadcast %115 : vector<1x128xf32> to vector<8x128xf32>
    %117 = arith.mulf %114, %116 : vector<8x128xf32>
    %118 = arith.addf %113, %117 : vector<8x128xf32>
    %119 = vector.extract_strided_slice %104 {offsets = [3, 0], sizes = [8, 128], strides = [1, 1]} : vector<20x128xf32> to vector<8x128xf32>
    %120 = vector.extract_strided_slice %100 {offsets = [3, 0], sizes = [1, 128], strides = [1, 1]} : vector<13x128xf32> to vector<1x128xf32>
    %121 = vector.broadcast %120 : vector<1x128xf32> to vector<8x128xf32>
    %122 = arith.mulf %119, %121 : vector<8x128xf32>
    %123 = arith.addf %118, %122 : vector<8x128xf32>
    %124 = vector.extract_strided_slice %104 {offsets = [4, 0], sizes = [8, 128], strides = [1, 1]} : vector<20x128xf32> to vector<8x128xf32>
    %125 = vector.extract_strided_slice %100 {offsets = [4, 0], sizes = [1, 128], strides = [1, 1]} : vector<13x128xf32> to vector<1x128xf32>
    %126 = vector.broadcast %125 : vector<1x128xf32> to vector<8x128xf32>
    %127 = arith.mulf %124, %126 : vector<8x128xf32>
    %128 = arith.addf %123, %127 : vector<8x128xf32>
    %129 = vector.extract_strided_slice %104 {offsets = [5, 0], sizes = [8, 128], strides = [1, 1]} : vector<20x128xf32> to vector<8x128xf32>
    %130 = vector.extract_strided_slice %100 {offsets = [5, 0], sizes = [1, 128], strides = [1, 1]} : vector<13x128xf32> to vector<1x128xf32>
    %131 = vector.broadcast %130 : vector<1x128xf32> to vector<8x128xf32>
    %132 = arith.mulf %129, %131 : vector<8x128xf32>
    %133 = arith.addf %128, %132 : vector<8x128xf32>
    %134 = vector.extract_strided_slice %104 {offsets = [6, 0], sizes = [8, 128], strides = [1, 1]} : vector<20x128xf32> to vector<8x128xf32>
    %135 = vector.extract_strided_slice %100 {offsets = [6, 0], sizes = [1, 128], strides = [1, 1]} : vector<13x128xf32> to vector<1x128xf32>
    %136 = vector.broadcast %135 : vector<1x128xf32> to vector<8x128xf32>
    %137 = arith.mulf %134, %136 : vector<8x128xf32>
    %138 = arith.addf %133, %137 : vector<8x128xf32>
    %139 = vector.extract_strided_slice %104 {offsets = [7, 0], sizes = [8, 128], strides = [1, 1]} : vector<20x128xf32> to vector<8x128xf32>
    %140 = vector.extract_strided_slice %100 {offsets = [7, 0], sizes = [1, 128], strides = [1, 1]} : vector<13x128xf32> to vector<1x128xf32>
    %141 = vector.broadcast %140 : vector<1x128xf32> to vector<8x128xf32>
    %142 = arith.mulf %139, %141 : vector<8x128xf32>
    %143 = arith.addf %138, %142 : vector<8x128xf32>
    %144 = vector.extract_strided_slice %104 {offsets = [8, 0], sizes = [8, 128], strides = [1, 1]} : vector<20x128xf32> to vector<8x128xf32>
    %145 = vector.extract_strided_slice %100 {offsets = [8, 0], sizes = [1, 128], strides = [1, 1]} : vector<13x128xf32> to vector<1x128xf32>
    %146 = vector.broadcast %145 : vector<1x128xf32> to vector<8x128xf32>
    %147 = arith.mulf %144, %146 : vector<8x128xf32>
    %148 = arith.addf %143, %147 : vector<8x128xf32>
    %149 = vector.extract_strided_slice %104 {offsets = [9, 0], sizes = [8, 128], strides = [1, 1]} : vector<20x128xf32> to vector<8x128xf32>
    %150 = vector.extract_strided_slice %100 {offsets = [9, 0], sizes = [1, 128], strides = [1, 1]} : vector<13x128xf32> to vector<1x128xf32>
    %151 = vector.broadcast %150 : vector<1x128xf32> to vector<8x128xf32>
    %152 = arith.mulf %149, %151 : vector<8x128xf32>
    %153 = arith.addf %148, %152 : vector<8x128xf32>
    %154 = vector.extract_strided_slice %104 {offsets = [10, 0], sizes = [8, 128], strides = [1, 1]} : vector<20x128xf32> to vector<8x128xf32>
    %155 = vector.extract_strided_slice %100 {offsets = [10, 0], sizes = [1, 128], strides = [1, 1]} : vector<13x128xf32> to vector<1x128xf32>
    %156 = vector.broadcast %155 : vector<1x128xf32> to vector<8x128xf32>
    %157 = arith.mulf %154, %156 : vector<8x128xf32>
    %158 = arith.addf %153, %157 : vector<8x128xf32>
    %159 = vector.extract_strided_slice %104 {offsets = [11, 0], sizes = [8, 128], strides = [1, 1]} : vector<20x128xf32> to vector<8x128xf32>
    %160 = vector.extract_strided_slice %100 {offsets = [11, 0], sizes = [1, 128], strides = [1, 1]} : vector<13x128xf32> to vector<1x128xf32>
    %161 = vector.broadcast %160 : vector<1x128xf32> to vector<8x128xf32>
    %162 = arith.mulf %159, %161 : vector<8x128xf32>
    %163 = arith.addf %158, %162 : vector<8x128xf32>
    %164 = vector.extract_strided_slice %104 {offsets = [12, 0], sizes = [8, 128], strides = [1, 1]} : vector<20x128xf32> to vector<8x128xf32>
    %165 = vector.extract_strided_slice %100 {offsets = [12, 0], sizes = [1, 128], strides = [1, 1]} : vector<13x128xf32> to vector<1x128xf32>
    %166 = vector.broadcast %165 : vector<1x128xf32> to vector<8x128xf32>
    %167 = arith.mulf %164, %166 : vector<8x128xf32>
    %168 = arith.addf %163, %167 : vector<8x128xf32>
    %169 = vector.extract_strided_slice %104 {offsets = [4, 0], sizes = [8, 128], strides = [1, 1]} : vector<20x128xf32> to vector<8x128xf32>
    %170 = vector.extract_strided_slice %102 {offsets = [0, 0], sizes = [1, 128], strides = [1, 1]} : vector<5x128xf32> to vector<1x128xf32>
    %171 = vector.broadcast %170 : vector<1x128xf32> to vector<8x128xf32>
    %172 = arith.mulf %169, %171 : vector<8x128xf32>
    %173 = arith.addf %168, %172 : vector<8x128xf32>
    %174 = vector.extract_strided_slice %104 {offsets = [5, 0], sizes = [8, 128], strides = [1, 1]} : vector<20x128xf32> to vector<8x128xf32>
    %175 = vector.extract_strided_slice %102 {offsets = [1, 0], sizes = [1, 128], strides = [1, 1]} : vector<5x128xf32> to vector<1x128xf32>
    %176 = vector.broadcast %175 : vector<1x128xf32> to vector<8x128xf32>
    %177 = arith.mulf %174, %176 : vector<8x128xf32>
    %178 = arith.addf %173, %177 : vector<8x128xf32>
    %179 = vector.extract_strided_slice %104 {offsets = [6, 0], sizes = [8, 128], strides = [1, 1]} : vector<20x128xf32> to vector<8x128xf32>
    %180 = vector.extract_strided_slice %102 {offsets = [2, 0], sizes = [1, 128], strides = [1, 1]} : vector<5x128xf32> to vector<1x128xf32>
    %181 = vector.broadcast %180 : vector<1x128xf32> to vector<8x128xf32>
    %182 = arith.mulf %179, %181 : vector<8x128xf32>
    %183 = arith.addf %178, %182 : vector<8x128xf32>
    %184 = vector.extract_strided_slice %104 {offsets = [7, 0], sizes = [8, 128], strides = [1, 1]} : vector<20x128xf32> to vector<8x128xf32>
    %185 = vector.extract_strided_slice %102 {offsets = [3, 0], sizes = [1, 128], strides = [1, 1]} : vector<5x128xf32> to vector<1x128xf32>
    %186 = vector.broadcast %185 : vector<1x128xf32> to vector<8x128xf32>
    %187 = arith.mulf %184, %186 : vector<8x128xf32>
    %188 = arith.addf %183, %187 : vector<8x128xf32>
    %189 = vector.extract_strided_slice %104 {offsets = [8, 0], sizes = [8, 128], strides = [1, 1]} : vector<20x128xf32> to vector<8x128xf32>
    %190 = vector.extract_strided_slice %102 {offsets = [4, 0], sizes = [1, 128], strides = [1, 1]} : vector<5x128xf32> to vector<1x128xf32>
    %191 = vector.broadcast %190 : vector<1x128xf32> to vector<8x128xf32>
    %192 = arith.mulf %189, %191 : vector<8x128xf32>
    %193 = arith.addf %188, %192 : vector<8x128xf32>
    %c0_85 = arith.constant 0 : index
    %c0_86 = arith.constant 0 : index
    %c0_87 = arith.constant 0 : index
    %194 = vector.load %arg6[%c0_85, %c0_86, %c0_87] : memref<2x1x128xf32, #tpu.memory_space<vmem>>, vector<1x1x128xf32>
    %195 = vector.shape_cast %194 : vector<1x1x128xf32> to vector<1x128xf32>
    %196 = vector.broadcast %195 : vector<1x128xf32> to vector<8x128xf32>
    %197 = arith.addf %193, %196 : vector<8x128xf32>
    %c0_88 = arith.constant 0 : index
    %c0_89 = arith.constant 0 : index
    %c0_90 = arith.constant 0 : index
    %198 = vector.load %arg7[%c0_88, %c0_89, %c0_90] : memref<2x128x128xf32, #tpu.memory_space<vmem>>, vector<1x128x128xf32>
    %199 = vector.shape_cast %198 : vector<1x128x128xf32> to vector<128x128xf32>
    %cst_91 = arith.constant dense<0.000000e+00> : vector<8x128xf32>
    %200 = tpu.matmul %197, %199, %cst_91 {dimension_numbers = #tpu.dot_dimension_numbers<[1], [0], [0], [1], [0, 0, 1, 1], [], []>} : vector<8x128xf32>, vector<128x128xf32>, vector<8x128xf32> -> vector<8x128xf32>
    %c0_92 = arith.constant 0 : index
    %c0_93 = arith.constant 0 : index
    %c0_94 = arith.constant 0 : index
    %201 = vector.load %arg8[%c0_92, %c0_93, %c0_94] : memref<2x1x128xf32, #tpu.memory_space<vmem>>, vector<1x1x128xf32>
    %202 = vector.shape_cast %201 : vector<1x1x128xf32> to vector<1x128xf32>
    %203 = vector.broadcast %202 : vector<1x128xf32> to vector<8x128xf32>
    %204 = arith.addf %200, %203 : vector<8x128xf32>
    %cst_95 = arith.constant 5.000000e-01 : f32
    %205 = vector.broadcast %cst_95 : f32 to vector<8x128xf32>
    %206 = arith.mulf %205, %204 : vector<8x128xf32>
    %cst_96 = arith.constant 0.707106769 : f32
    %207 = vector.broadcast %cst_96 : f32 to vector<8x128xf32>
    %208 = arith.mulf %204, %207 : vector<8x128xf32>
    %209 = math.erf %208 : vector<8x128xf32>
    %cst_97 = arith.constant 1.000000e+00 : f32
    %210 = vector.broadcast %cst_97 : f32 to vector<8x128xf32>
    %211 = arith.addf %210, %209 : vector<8x128xf32>
    %212 = arith.mulf %206, %211 : vector<8x128xf32>
    %c0_98 = arith.constant 0 : index
    %c0_99 = arith.constant 0 : index
    %c0_100 = arith.constant 0 : index
    %213 = vector.load %arg9[%c0_98, %c0_99, %c0_100] : memref<2x128x128xf32, #tpu.memory_space<vmem>>, vector<1x128x128xf32>
    %214 = vector.shape_cast %213 : vector<1x128x128xf32> to vector<128x128xf32>
    %cst_101 = arith.constant dense<0.000000e+00> : vector<8x128xf32>
    %215 = tpu.matmul %212, %214, %cst_101 {dimension_numbers = #tpu.dot_dimension_numbers<[1], [0], [0], [1], [0, 0, 1, 1], [], []>} : vector<8x128xf32>, vector<128x128xf32>, vector<8x128xf32> -> vector<8x128xf32>
    %c0_102 = arith.constant 0 : index
    %c0_103 = arith.constant 0 : index
    %c0_104 = arith.constant 0 : index
    %216 = vector.load %arg10[%c0_102, %c0_103, %c0_104] : memref<2x1x128xf32, #tpu.memory_space<vmem>>, vector<1x1x128xf32>
    %217 = vector.shape_cast %216 : vector<1x1x128xf32> to vector<1x128xf32>
    %218 = vector.broadcast %217 : vector<1x128xf32> to vector<8x128xf32>
    %219 = arith.addf %215, %218 : vector<8x128xf32>
    %220 = arith.addf %96, %219 : vector<8x128xf32>
    %c1_105 = arith.constant 1 : index
    %c0_106 = arith.constant 0 : index
    %c0_107 = arith.constant 0 : index
    %221 = vector.load %arg4[%c1_105, %c0_106, %c0_107] : memref<2x13x128xf32, #tpu.memory_space<vmem>>, vector<1x13x128xf32>
    %222 = vector.shape_cast %221 : vector<1x13x128xf32> to vector<13x128xf32>
    %c1_108 = arith.constant 1 : index
    %c0_109 = arith.constant 0 : index
    %c0_110 = arith.constant 0 : index
    %223 = vector.load %arg5[%c1_108, %c0_109, %c0_110] : memref<2x5x128xf32, #tpu.memory_space<vmem>>, vector<1x5x128xf32>
    %224 = vector.shape_cast %223 : vector<1x5x128xf32> to vector<5x128xf32>
    %c6_111 = arith.constant 6 : index
    %c0_112 = arith.constant 0 : index
    %225 = vector.load %arg16[%c6_111, %c0_112] : memref<20x128xf32, #tpu.memory_space<vmem>>, vector<8x128xf32>
    tpu.vector_store %arg16[%c6_111, %c0_112], %220 {strides = array<i32>} : memref<20x128xf32, #tpu.memory_space<vmem>>, vector<8x128xf32>,
    %c0_113 = arith.constant 0 : index
    %c0_114 = arith.constant 0 : index
    %226 = vector.load %arg16[%c0_113, %c0_114] : memref<20x128xf32, #tpu.memory_space<vmem>>, vector<20x128xf32>
    %227 = vector.extract_strided_slice %226 {offsets = [0, 0], sizes = [8, 128], strides = [1, 1]} : vector<20x128xf32> to vector<8x128xf32>
    %228 = vector.extract_strided_slice %222 {offsets = [0, 0], sizes = [1, 128], strides = [1, 1]} : vector<13x128xf32> to vector<1x128xf32>
    %229 = vector.broadcast %228 : vector<1x128xf32> to vector<8x128xf32>
    %230 = arith.mulf %227, %229 : vector<8x128xf32>
    %231 = vector.extract_strided_slice %226 {offsets = [1, 0], sizes = [8, 128], strides = [1, 1]} : vector<20x128xf32> to vector<8x128xf32>
    %232 = vector.extract_strided_slice %222 {offsets = [1, 0], sizes = [1, 128], strides = [1, 1]} : vector<13x128xf32> to vector<1x128xf32>
    %233 = vector.broadcast %232 : vector<1x128xf32> to vector<8x128xf32>
    %234 = arith.mulf %231, %233 : vector<8x128xf32>
    %235 = arith.addf %230, %234 : vector<8x128xf32>
    %236 = vector.extract_strided_slice %226 {offsets = [2, 0], sizes = [8, 128], strides = [1, 1]} : vector<20x128xf32> to vector<8x128xf32>
    %237 = vector.extract_strided_slice %222 {offsets = [2, 0], sizes = [1, 128], strides = [1, 1]} : vector<13x128xf32> to vector<1x128xf32>
    %238 = vector.broadcast %237 : vector<1x128xf32> to vector<8x128xf32>
    %239 = arith.mulf %236, %238 : vector<8x128xf32>
    %240 = arith.addf %235, %239 : vector<8x128xf32>
    %241 = vector.extract_strided_slice %226 {offsets = [3, 0], sizes = [8, 128], strides = [1, 1]} : vector<20x128xf32> to vector<8x128xf32>
    %242 = vector.extract_strided_slice %222 {offsets = [3, 0], sizes = [1, 128], strides = [1, 1]} : vector<13x128xf32> to vector<1x128xf32>
    %243 = vector.broadcast %242 : vector<1x128xf32> to vector<8x128xf32>
    %244 = arith.mulf %241, %243 : vector<8x128xf32>
    %245 = arith.addf %240, %244 : vector<8x128xf32>
    %246 = vector.extract_strided_slice %226 {offsets = [4, 0], sizes = [8, 128], strides = [1, 1]} : vector<20x128xf32> to vector<8x128xf32>
    %247 = vector.extract_strided_slice %222 {offsets = [4, 0], sizes = [1, 128], strides = [1, 1]} : vector<13x128xf32> to vector<1x128xf32>
    %248 = vector.broadcast %247 : vector<1x128xf32> to vector<8x128xf32>
    %249 = arith.mulf %246, %248 : vector<8x128xf32>
    %250 = arith.addf %245, %249 : vector<8x128xf32>
    %251 = vector.extract_strided_slice %226 {offsets = [5, 0], sizes = [8, 128], strides = [1, 1]} : vector<20x128xf32> to vector<8x128xf32>
    %252 = vector.extract_strided_slice %222 {offsets = [5, 0], sizes = [1, 128], strides = [1, 1]} : vector<13x128xf32> to vector<1x128xf32>
    %253 = vector.broadcast %252 : vector<1x128xf32> to vector<8x128xf32>
    %254 = arith.mulf %251, %253 : vector<8x128xf32>
    %255 = arith.addf %250, %254 : vector<8x128xf32>
    %256 = vector.extract_strided_slice %226 {offsets = [6, 0], sizes = [8, 128], strides = [1, 1]} : vector<20x128xf32> to vector<8x128xf32>
    %257 = vector.extract_strided_slice %222 {offsets = [6, 0], sizes = [1, 128], strides = [1, 1]} : vector<13x128xf32> to vector<1x128xf32>
    %258 = vector.broadcast %257 : vector<1x128xf32> to vector<8x128xf32>
    %259 = arith.mulf %256, %258 : vector<8x128xf32>
    %260 = arith.addf %255, %259 : vector<8x128xf32>
    %261 = vector.extract_strided_slice %226 {offsets = [7, 0], sizes = [8, 128], strides = [1, 1]} : vector<20x128xf32> to vector<8x128xf32>
    %262 = vector.extract_strided_slice %222 {offsets = [7, 0], sizes = [1, 128], strides = [1, 1]} : vector<13x128xf32> to vector<1x128xf32>
    %263 = vector.broadcast %262 : vector<1x128xf32> to vector<8x128xf32>
    %264 = arith.mulf %261, %263 : vector<8x128xf32>
    %265 = arith.addf %260, %264 : vector<8x128xf32>
    %266 = vector.extract_strided_slice %226 {offsets = [8, 0], sizes = [8, 128], strides = [1, 1]} : vector<20x128xf32> to vector<8x128xf32>
    %267 = vector.extract_strided_slice %222 {offsets = [8, 0], sizes = [1, 128], strides = [1, 1]} : vector<13x128xf32> to vector<1x128xf32>
    %268 = vector.broadcast %267 : vector<1x128xf32> to vector<8x128xf32>
    %269 = arith.mulf %266, %268 : vector<8x128xf32>
    %270 = arith.addf %265, %269 : vector<8x128xf32>
    %271 = vector.extract_strided_slice %226 {offsets = [9, 0], sizes = [8, 128], strides = [1, 1]} : vector<20x128xf32> to vector<8x128xf32>
    %272 = vector.extract_strided_slice %222 {offsets = [9, 0], sizes = [1, 128], strides = [1, 1]} : vector<13x128xf32> to vector<1x128xf32>
    %273 = vector.broadcast %272 : vector<1x128xf32> to vector<8x128xf32>
    %274 = arith.mulf %271, %273 : vector<8x128xf32>
    %275 = arith.addf %270, %274 : vector<8x128xf32>
    %276 = vector.extract_strided_slice %226 {offsets = [10, 0], sizes = [8, 128], strides = [1, 1]} : vector<20x128xf32> to vector<8x128xf32>
    %277 = vector.extract_strided_slice %222 {offsets = [10, 0], sizes = [1, 128], strides = [1, 1]} : vector<13x128xf32> to vector<1x128xf32>
    %278 = vector.broadcast %277 : vector<1x128xf32> to vector<8x128xf32>
    %279 = arith.mulf %276, %278 : vector<8x128xf32>
    %280 = arith.addf %275, %279 : vector<8x128xf32>
    %281 = vector.extract_strided_slice %226 {offsets = [11, 0], sizes = [8, 128], strides = [1, 1]} : vector<20x128xf32> to vector<8x128xf32>
    %282 = vector.extract_strided_slice %222 {offsets = [11, 0], sizes = [1, 128], strides = [1, 1]} : vector<13x128xf32> to vector<1x128xf32>
    %283 = vector.broadcast %282 : vector<1x128xf32> to vector<8x128xf32>
    %284 = arith.mulf %281, %283 : vector<8x128xf32>
    %285 = arith.addf %280, %284 : vector<8x128xf32>
    %286 = vector.extract_strided_slice %226 {offsets = [12, 0], sizes = [8, 128], strides = [1, 1]} : vector<20x128xf32> to vector<8x128xf32>
    %287 = vector.extract_strided_slice %222 {offsets = [12, 0], sizes = [1, 128], strides = [1, 1]} : vector<13x128xf32> to vector<1x128xf32>
    %288 = vector.broadcast %287 : vector<1x128xf32> to vector<8x128xf32>
    %289 = arith.mulf %286, %288 : vector<8x128xf32>
    %290 = arith.addf %285, %289 : vector<8x128xf32>
    %291 = vector.extract_strided_slice %226 {offsets = [4, 0], sizes = [8, 128], strides = [1, 1]} : vector<20x128xf32> to vector<8x128xf32>
    %292 = vector.extract_strided_slice %224 {offsets = [0, 0], sizes = [1, 128], strides = [1, 1]} : vector<5x128xf32> to vector<1x128xf32>
    %293 = vector.broadcast %292 : vector<1x128xf32> to vector<8x128xf32>
    %294 = arith.mulf %291, %293 : vector<8x128xf32>
    %295 = arith.addf %290, %294 : vector<8x128xf32>
    %296 = vector.extract_strided_slice %226 {offsets = [5, 0], sizes = [8, 128], strides = [1, 1]} : vector<20x128xf32> to vector<8x128xf32>
    %297 = vector.extract_strided_slice %224 {offsets = [1, 0], sizes = [1, 128], strides = [1, 1]} : vector<5x128xf32> to vector<1x128xf32>
    %298 = vector.broadcast %297 : vector<1x128xf32> to vector<8x128xf32>
    %299 = arith.mulf %296, %298 : vector<8x128xf32>
    %300 = arith.addf %295, %299 : vector<8x128xf32>
    %301 = vector.extract_strided_slice %226 {offsets = [6, 0], sizes = [8, 128], strides = [1, 1]} : vector<20x128xf32> to vector<8x128xf32>
    %302 = vector.extract_strided_slice %224 {offsets = [2, 0], sizes = [1, 128], strides = [1, 1]} : vector<5x128xf32> to vector<1x128xf32>
    %303 = vector.broadcast %302 : vector<1x128xf32> to vector<8x128xf32>
    %304 = arith.mulf %301, %303 : vector<8x128xf32>
    %305 = arith.addf %300, %304 : vector<8x128xf32>
    %306 = vector.extract_strided_slice %226 {offsets = [7, 0], sizes = [8, 128], strides = [1, 1]} : vector<20x128xf32> to vector<8x128xf32>
    %307 = vector.extract_strided_slice %224 {offsets = [3, 0], sizes = [1, 128], strides = [1, 1]} : vector<5x128xf32> to vector<1x128xf32>
    %308 = vector.broadcast %307 : vector<1x128xf32> to vector<8x128xf32>
    %309 = arith.mulf %306, %308 : vector<8x128xf32>
    %310 = arith.addf %305, %309 : vector<8x128xf32>
    %311 = vector.extract_strided_slice %226 {offsets = [8, 0], sizes = [8, 128], strides = [1, 1]} : vector<20x128xf32> to vector<8x128xf32>
    %312 = vector.extract_strided_slice %224 {offsets = [4, 0], sizes = [1, 128], strides = [1, 1]} : vector<5x128xf32> to vector<1x128xf32>
    %313 = vector.broadcast %312 : vector<1x128xf32> to vector<8x128xf32>
    %314 = arith.mulf %311, %313 : vector<8x128xf32>
    %315 = arith.addf %310, %314 : vector<8x128xf32>
    %c1_115 = arith.constant 1 : index
    %c0_116 = arith.constant 0 : index
    %c0_117 = arith.constant 0 : index
    %316 = vector.load %arg6[%c1_115, %c0_116, %c0_117] : memref<2x1x128xf32, #tpu.memory_space<vmem>>, vector<1x1x128xf32>
    %317 = vector.shape_cast %316 : vector<1x1x128xf32> to vector<1x128xf32>
    %318 = vector.broadcast %317 : vector<1x128xf32> to vector<8x128xf32>
    %319 = arith.addf %315, %318 : vector<8x128xf32>
    %c1_118 = arith.constant 1 : index
    %c0_119 = arith.constant 0 : index
    %c0_120 = arith.constant 0 : index
    %320 = vector.load %arg7[%c1_118, %c0_119, %c0_120] : memref<2x128x128xf32, #tpu.memory_space<vmem>>, vector<1x128x128xf32>
    %321 = vector.shape_cast %320 : vector<1x128x128xf32> to vector<128x128xf32>
    %cst_121 = arith.constant dense<0.000000e+00> : vector<8x128xf32>
    %322 = tpu.matmul %319, %321, %cst_121 {dimension_numbers = #tpu.dot_dimension_numbers<[1], [0], [0], [1], [0, 0, 1, 1], [], []>} : vector<8x128xf32>, vector<128x128xf32>, vector<8x128xf32> -> vector<8x128xf32>
    %c1_122 = arith.constant 1 : index
    %c0_123 = arith.constant 0 : index
    %c0_124 = arith.constant 0 : index
    %323 = vector.load %arg8[%c1_122, %c0_123, %c0_124] : memref<2x1x128xf32, #tpu.memory_space<vmem>>, vector<1x1x128xf32>
    %324 = vector.shape_cast %323 : vector<1x1x128xf32> to vector<1x128xf32>
    %325 = vector.broadcast %324 : vector<1x128xf32> to vector<8x128xf32>
    %326 = arith.addf %322, %325 : vector<8x128xf32>
    %cst_125 = arith.constant 5.000000e-01 : f32
    %327 = vector.broadcast %cst_125 : f32 to vector<8x128xf32>
    %328 = arith.mulf %327, %326 : vector<8x128xf32>
    %cst_126 = arith.constant 0.707106769 : f32
    %329 = vector.broadcast %cst_126 : f32 to vector<8x128xf32>
    %330 = arith.mulf %326, %329 : vector<8x128xf32>
    %331 = math.erf %330 : vector<8x128xf32>
    %cst_127 = arith.constant 1.000000e+00 : f32
    %332 = vector.broadcast %cst_127 : f32 to vector<8x128xf32>
    %333 = arith.addf %332, %331 : vector<8x128xf32>
    %334 = arith.mulf %328, %333 : vector<8x128xf32>
    %c1_128 = arith.constant 1 : index
    %c0_129 = arith.constant 0 : index
    %c0_130 = arith.constant 0 : index
    %335 = vector.load %arg9[%c1_128, %c0_129, %c0_130] : memref<2x128x128xf32, #tpu.memory_space<vmem>>, vector<1x128x128xf32>
    %336 = vector.shape_cast %335 : vector<1x128x128xf32> to vector<128x128xf32>
    %cst_131 = arith.constant dense<0.000000e+00> : vector<8x128xf32>
    %337 = tpu.matmul %334, %336, %cst_131 {dimension_numbers = #tpu.dot_dimension_numbers<[1], [0], [0], [1], [0, 0, 1, 1], [], []>} : vector<8x128xf32>, vector<128x128xf32>, vector<8x128xf32> -> vector<8x128xf32>
    %c1_132 = arith.constant 1 : index
    %c0_133 = arith.constant 0 : index
    %c0_134 = arith.constant 0 : index
    %338 = vector.load %arg10[%c1_132, %c0_133, %c0_134] : memref<2x1x128xf32, #tpu.memory_space<vmem>>, vector<1x1x128xf32>
    %339 = vector.shape_cast %338 : vector<1x1x128xf32> to vector<1x128xf32>
    %340 = vector.broadcast %339 : vector<1x128xf32> to vector<8x128xf32>
    %341 = arith.addf %337, %340 : vector<8x128xf32>
    %342 = arith.addf %220, %341 : vector<8x128xf32>
    %c0_135 = arith.constant 0 : index
    %c0_136 = arith.constant 0 : index
    %c0_137 = arith.constant 0 : index
    %343 = vector.load %arg11[%c0_135, %c0_136, %c0_137] : memref<8x32x16xf32, #tpu.memory_space<vmem>>, vector<1x32x16xf32>
    %344 = vector.shape_cast %343 : vector<1x32x16xf32> to vector<32x16xf32>
    %c1_138 = arith.constant 1 : index
    %c0_139 = arith.constant 0 : index
    %c0_140 = arith.constant 0 : index
    %345 = vector.load %arg11[%c1_138, %c0_139, %c0_140] : memref<8x32x16xf32, #tpu.memory_space<vmem>>, vector<1x32x16xf32>
    %346 = vector.shape_cast %345 : vector<1x32x16xf32> to vector<32x16xf32>
    %c2_141 = arith.constant 2 : index
    %c0_142 = arith.constant 0 : index
    %c0_143 = arith.constant 0 : index
    %347 = vector.load %arg11[%c2_141, %c0_142, %c0_143] : memref<8x32x16xf32, #tpu.memory_space<vmem>>, vector<1x32x16xf32>
    %348 = vector.shape_cast %347 : vector<1x32x16xf32> to vector<32x16xf32>
    %c3_144 = arith.constant 3 : index
    %c0_145 = arith.constant 0 : index
    %c0_146 = arith.constant 0 : index
    %349 = vector.load %arg11[%c3_144, %c0_145, %c0_146] : memref<8x32x16xf32, #tpu.memory_space<vmem>>, vector<1x32x16xf32>
    %350 = vector.shape_cast %349 : vector<1x32x16xf32> to vector<32x16xf32>
    %c4_147 = arith.constant 4 : index
    %c0_148 = arith.constant 0 : index
    %c0_149 = arith.constant 0 : index
    %351 = vector.load %arg11[%c4_147, %c0_148, %c0_149] : memref<8x32x16xf32, #tpu.memory_space<vmem>>, vector<1x32x16xf32>
    %352 = vector.shape_cast %351 : vector<1x32x16xf32> to vector<32x16xf32>
    %c5_150 = arith.constant 5 : index
    %c0_151 = arith.constant 0 : index
    %c0_152 = arith.constant 0 : index
    %353 = vector.load %arg11[%c5_150, %c0_151, %c0_152] : memref<8x32x16xf32, #tpu.memory_space<vmem>>, vector<1x32x16xf32>
    %354 = vector.shape_cast %353 : vector<1x32x16xf32> to vector<32x16xf32>
    %c6_153 = arith.constant 6 : index
    %c0_154 = arith.constant 0 : index
    %c0_155 = arith.constant 0 : index
    %355 = vector.load %arg11[%c6_153, %c0_154, %c0_155] : memref<8x32x16xf32, #tpu.memory_space<vmem>>, vector<1x32x16xf32>
    %356 = vector.shape_cast %355 : vector<1x32x16xf32> to vector<32x16xf32>
    %c7_156 = arith.constant 7 : index
    %c0_157 = arith.constant 0 : index
    %c0_158 = arith.constant 0 : index
    %357 = vector.load %arg11[%c7_156, %c0_157, %c0_158] : memref<8x32x16xf32, #tpu.memory_space<vmem>>, vector<1x32x16xf32>
    %358 = vector.shape_cast %357 : vector<1x32x16xf32> to vector<32x16xf32>
    %c0_159 = arith.constant 0 : index
    %c0_160 = arith.constant 0 : index
    %359 = vector.load %arg12[%c0_159, %c0_160] : memref<1x16xf32, #tpu.memory_space<vmem>>, vector<1x16xf32>
    %360 = vector.extract_strided_slice %342 {offsets = [0, 0], sizes = [1, 32], strides = [1, 1]} : vector<8x128xf32> to vector<1x32xf32>
    %cst_161 = arith.constant dense<0.000000e+00> : vector<1x16xf32>
    %361 = tpu.matmul %360, %344, %cst_161 {dimension_numbers = #tpu.dot_dimension_numbers<[1], [0], [0], [1], [0, 0, 1, 1], [], []>} : vector<1x32xf32>, vector<32x16xf32>, vector<1x16xf32> -> vector<1x16xf32>
    %362 = arith.addf %359, %361 : vector<1x16xf32>
    %363 = vector.extract_strided_slice %342 {offsets = [1, 0], sizes = [1, 32], strides = [1, 1]} : vector<8x128xf32> to vector<1x32xf32>
    %cst_162 = arith.constant dense<0.000000e+00> : vector<1x16xf32>
    %364 = tpu.matmul %363, %346, %cst_162 {dimension_numbers = #tpu.dot_dimension_numbers<[1], [0], [0], [1], [0, 0, 1, 1], [], []>} : vector<1x32xf32>, vector<32x16xf32>, vector<1x16xf32> -> vector<1x16xf32>
    %365 = arith.addf %362, %364 : vector<1x16xf32>
    %366 = vector.extract_strided_slice %342 {offsets = [2, 0], sizes = [1, 32], strides = [1, 1]} : vector<8x128xf32> to vector<1x32xf32>
    %cst_163 = arith.constant dense<0.000000e+00> : vector<1x16xf32>
    %367 = tpu.matmul %366, %348, %cst_163 {dimension_numbers = #tpu.dot_dimension_numbers<[1], [0], [0], [1], [0, 0, 1, 1], [], []>} : vector<1x32xf32>, vector<32x16xf32>, vector<1x16xf32> -> vector<1x16xf32>
    %368 = arith.addf %365, %367 : vector<1x16xf32>
    %369 = vector.extract_strided_slice %342 {offsets = [3, 0], sizes = [1, 32], strides = [1, 1]} : vector<8x128xf32> to vector<1x32xf32>
    %cst_164 = arith.constant dense<0.000000e+00> : vector<1x16xf32>
    %370 = tpu.matmul %369, %350, %cst_164 {dimension_numbers = #tpu.dot_dimension_numbers<[1], [0], [0], [1], [0, 0, 1, 1], [], []>} : vector<1x32xf32>, vector<32x16xf32>, vector<1x16xf32> -> vector<1x16xf32>
    %371 = arith.addf %368, %370 : vector<1x16xf32>
    %372 = vector.extract_strided_slice %342 {offsets = [4, 0], sizes = [1, 32], strides = [1, 1]} : vector<8x128xf32> to vector<1x32xf32>
    %cst_165 = arith.constant dense<0.000000e+00> : vector<1x16xf32>
    %373 = tpu.matmul %372, %352, %cst_165 {dimension_numbers = #tpu.dot_dimension_numbers<[1], [0], [0], [1], [0, 0, 1, 1], [], []>} : vector<1x32xf32>, vector<32x16xf32>, vector<1x16xf32> -> vector<1x16xf32>
    %374 = arith.addf %371, %373 : vector<1x16xf32>
    %375 = vector.extract_strided_slice %342 {offsets = [5, 0], sizes = [1, 32], strides = [1, 1]} : vector<8x128xf32> to vector<1x32xf32>
    %cst_166 = arith.constant dense<0.000000e+00> : vector<1x16xf32>
    %376 = tpu.matmul %375, %354, %cst_166 {dimension_numbers = #tpu.dot_dimension_numbers<[1], [0], [0], [1], [0, 0, 1, 1], [], []>} : vector<1x32xf32>, vector<32x16xf32>, vector<1x16xf32> -> vector<1x16xf32>
    %377 = arith.addf %374, %376 : vector<1x16xf32>
    %378 = vector.extract_strided_slice %342 {offsets = [6, 0], sizes = [1, 32], strides = [1, 1]} : vector<8x128xf32> to vector<1x32xf32>
    %cst_167 = arith.constant dense<0.000000e+00> : vector<1x16xf32>
    %379 = tpu.matmul %378, %356, %cst_167 {dimension_numbers = #tpu.dot_dimension_numbers<[1], [0], [0], [1], [0, 0, 1, 1], [], []>} : vector<1x32xf32>, vector<32x16xf32>, vector<1x16xf32> -> vector<1x16xf32>
    %380 = arith.addf %377, %379 : vector<1x16xf32>
    %381 = vector.extract_strided_slice %342 {offsets = [7, 0], sizes = [1, 32], strides = [1, 1]} : vector<8x128xf32> to vector<1x32xf32>
    %cst_168 = arith.constant dense<0.000000e+00> : vector<1x16xf32>
    %382 = tpu.matmul %381, %358, %cst_168 {dimension_numbers = #tpu.dot_dimension_numbers<[1], [0], [0], [1], [0, 0, 1, 1], [], []>} : vector<1x32xf32>, vector<32x16xf32>, vector<1x16xf32> -> vector<1x16xf32>
    %383 = arith.addf %380, %382 : vector<1x16xf32>
    %384 = vector.extract_strided_slice %15 {offsets = [0, 0], sizes = [1, 1], strides = [1, 1]} : vector<4x1xf32> to vector<1x1xf32>
    %385 = vector.broadcast %384 : vector<1x1xf32> to vector<1x16xf32>
    %386 = arith.mulf %383, %385 : vector<1x16xf32>
    %387 = vector.extract_strided_slice %5 {offsets = [0, 0], sizes = [1, 1], strides = [1, 1]} : vector<4x1xf32> to vector<1x1xf32>
    %388 = vector.broadcast %387 : vector<1x1xf32> to vector<1x16xf32>
    %389 = arith.addf %386, %388 : vector<1x16xf32>
    %c0_169 = arith.constant 0 : index
    %c0_170 = arith.constant 0 : index
    %c0_171 = arith.constant 0 : index
    %390 = vector.load %arg13[%c0_169, %c0_170, %c0_171] : memref<1x4x16xf32, #tpu.memory_space<vmem>>, vector<1x1x16xf32>
    %391 = vector.shape_cast %390 : vector<1x1x16xf32> to vector<1x16xf32>
    %392 = vector.shape_cast %389 : vector<1x16xf32> to vector<1x1x16xf32>
    tpu.vector_store %arg13[%c0_169, %c0_170, %c0_171], %392 {strides = array<i32>} : memref<1x4x16xf32, #tpu.memory_space<vmem>>, vector<1x1x16xf32>,
    %393 = vector.extract_strided_slice %342 {offsets = [0, 32], sizes = [1, 32], strides = [1, 1]} : vector<8x128xf32> to vector<1x32xf32>
    %cst_172 = arith.constant dense<0.000000e+00> : vector<1x16xf32>
    %394 = tpu.matmul %393, %344, %cst_172 {dimension_numbers = #tpu.dot_dimension_numbers<[1], [0], [0], [1], [0, 0, 1, 1], [], []>} : vector<1x32xf32>, vector<32x16xf32>, vector<1x16xf32> -> vector<1x16xf32>
    %395 = arith.addf %359, %394 : vector<1x16xf32>
    %396 = vector.extract_strided_slice %342 {offsets = [1, 32], sizes = [1, 32], strides = [1, 1]} : vector<8x128xf32> to vector<1x32xf32>
    %cst_173 = arith.constant dense<0.000000e+00> : vector<1x16xf32>
    %397 = tpu.matmul %396, %346, %cst_173 {dimension_numbers = #tpu.dot_dimension_numbers<[1], [0], [0], [1], [0, 0, 1, 1], [], []>} : vector<1x32xf32>, vector<32x16xf32>, vector<1x16xf32> -> vector<1x16xf32>
    %398 = arith.addf %395, %397 : vector<1x16xf32>
    %399 = vector.extract_strided_slice %342 {offsets = [2, 32], sizes = [1, 32], strides = [1, 1]} : vector<8x128xf32> to vector<1x32xf32>
    %cst_174 = arith.constant dense<0.000000e+00> : vector<1x16xf32>
    %400 = tpu.matmul %399, %348, %cst_174 {dimension_numbers = #tpu.dot_dimension_numbers<[1], [0], [0], [1], [0, 0, 1, 1], [], []>} : vector<1x32xf32>, vector<32x16xf32>, vector<1x16xf32> -> vector<1x16xf32>
    %401 = arith.addf %398, %400 : vector<1x16xf32>
    %402 = vector.extract_strided_slice %342 {offsets = [3, 32], sizes = [1, 32], strides = [1, 1]} : vector<8x128xf32> to vector<1x32xf32>
    %cst_175 = arith.constant dense<0.000000e+00> : vector<1x16xf32>
    %403 = tpu.matmul %402, %350, %cst_175 {dimension_numbers = #tpu.dot_dimension_numbers<[1], [0], [0], [1], [0, 0, 1, 1], [], []>} : vector<1x32xf32>, vector<32x16xf32>, vector<1x16xf32> -> vector<1x16xf32>
    %404 = arith.addf %401, %403 : vector<1x16xf32>
    %405 = vector.extract_strided_slice %342 {offsets = [4, 32], sizes = [1, 32], strides = [1, 1]} : vector<8x128xf32> to vector<1x32xf32>
    %cst_176 = arith.constant dense<0.000000e+00> : vector<1x16xf32>
    %406 = tpu.matmul %405, %352, %cst_176 {dimension_numbers = #tpu.dot_dimension_numbers<[1], [0], [0], [1], [0, 0, 1, 1], [], []>} : vector<1x32xf32>, vector<32x16xf32>, vector<1x16xf32> -> vector<1x16xf32>
    %407 = arith.addf %404, %406 : vector<1x16xf32>
    %408 = vector.extract_strided_slice %342 {offsets = [5, 32], sizes = [1, 32], strides = [1, 1]} : vector<8x128xf32> to vector<1x32xf32>
    %cst_177 = arith.constant dense<0.000000e+00> : vector<1x16xf32>
    %409 = tpu.matmul %408, %354, %cst_177 {dimension_numbers = #tpu.dot_dimension_numbers<[1], [0], [0], [1], [0, 0, 1, 1], [], []>} : vector<1x32xf32>, vector<32x16xf32>, vector<1x16xf32> -> vector<1x16xf32>
    %410 = arith.addf %407, %409 : vector<1x16xf32>
    %411 = vector.extract_strided_slice %342 {offsets = [6, 32], sizes = [1, 32], strides = [1, 1]} : vector<8x128xf32> to vector<1x32xf32>
    %cst_178 = arith.constant dense<0.000000e+00> : vector<1x16xf32>
    %412 = tpu.matmul %411, %356, %cst_178 {dimension_numbers = #tpu.dot_dimension_numbers<[1], [0], [0], [1], [0, 0, 1, 1], [], []>} : vector<1x32xf32>, vector<32x16xf32>, vector<1x16xf32> -> vector<1x16xf32>
    %413 = arith.addf %410, %412 : vector<1x16xf32>
    %414 = vector.extract_strided_slice %342 {offsets = [7, 32], sizes = [1, 32], strides = [1, 1]} : vector<8x128xf32> to vector<1x32xf32>
    %cst_179 = arith.constant dense<0.000000e+00> : vector<1x16xf32>
    %415 = tpu.matmul %414, %358, %cst_179 {dimension_numbers = #tpu.dot_dimension_numbers<[1], [0], [0], [1], [0, 0, 1, 1], [], []>} : vector<1x32xf32>, vector<32x16xf32>, vector<1x16xf32> -> vector<1x16xf32>
    %416 = arith.addf %413, %415 : vector<1x16xf32>
    %417 = vector.extract_strided_slice %15 {offsets = [1, 0], sizes = [1, 1], strides = [1, 1]} : vector<4x1xf32> to vector<1x1xf32>
    %418 = vector.broadcast %417 : vector<1x1xf32> to vector<1x16xf32>
    %419 = arith.mulf %416, %418 : vector<1x16xf32>
    %420 = vector.extract_strided_slice %5 {offsets = [1, 0], sizes = [1, 1], strides = [1, 1]} : vector<4x1xf32> to vector<1x1xf32>
    %421 = vector.broadcast %420 : vector<1x1xf32> to vector<1x16xf32>
    %422 = arith.addf %419, %421 : vector<1x16xf32>
    %c0_180 = arith.constant 0 : index
    %c1_181 = arith.constant 1 : index
    %c0_182 = arith.constant 0 : index
    %423 = vector.load %arg13[%c0_180, %c1_181, %c0_182] : memref<1x4x16xf32, #tpu.memory_space<vmem>>, vector<1x1x16xf32>
    %424 = vector.shape_cast %423 : vector<1x1x16xf32> to vector<1x16xf32>
    %425 = vector.shape_cast %422 : vector<1x16xf32> to vector<1x1x16xf32>
    tpu.vector_store %arg13[%c0_180, %c1_181, %c0_182], %425 {strides = array<i32>} : memref<1x4x16xf32, #tpu.memory_space<vmem>>, vector<1x1x16xf32>,
    %426 = vector.extract_strided_slice %342 {offsets = [0, 64], sizes = [1, 32], strides = [1, 1]} : vector<8x128xf32> to vector<1x32xf32>
    %cst_183 = arith.constant dense<0.000000e+00> : vector<1x16xf32>
    %427 = tpu.matmul %426, %344, %cst_183 {dimension_numbers = #tpu.dot_dimension_numbers<[1], [0], [0], [1], [0, 0, 1, 1], [], []>} : vector<1x32xf32>, vector<32x16xf32>, vector<1x16xf32> -> vector<1x16xf32>
    %428 = arith.addf %359, %427 : vector<1x16xf32>
    %429 = vector.extract_strided_slice %342 {offsets = [1, 64], sizes = [1, 32], strides = [1, 1]} : vector<8x128xf32> to vector<1x32xf32>
    %cst_184 = arith.constant dense<0.000000e+00> : vector<1x16xf32>
    %430 = tpu.matmul %429, %346, %cst_184 {dimension_numbers = #tpu.dot_dimension_numbers<[1], [0], [0], [1], [0, 0, 1, 1], [], []>} : vector<1x32xf32>, vector<32x16xf32>, vector<1x16xf32> -> vector<1x16xf32>
    %431 = arith.addf %428, %430 : vector<1x16xf32>
    %432 = vector.extract_strided_slice %342 {offsets = [2, 64], sizes = [1, 32], strides = [1, 1]} : vector<8x128xf32> to vector<1x32xf32>
    %cst_185 = arith.constant dense<0.000000e+00> : vector<1x16xf32>
    %433 = tpu.matmul %432, %348, %cst_185 {dimension_numbers = #tpu.dot_dimension_numbers<[1], [0], [0], [1], [0, 0, 1, 1], [], []>} : vector<1x32xf32>, vector<32x16xf32>, vector<1x16xf32> -> vector<1x16xf32>
    %434 = arith.addf %431, %433 : vector<1x16xf32>
    %435 = vector.extract_strided_slice %342 {offsets = [3, 64], sizes = [1, 32], strides = [1, 1]} : vector<8x128xf32> to vector<1x32xf32>
    %cst_186 = arith.constant dense<0.000000e+00> : vector<1x16xf32>
    %436 = tpu.matmul %435, %350, %cst_186 {dimension_numbers = #tpu.dot_dimension_numbers<[1], [0], [0], [1], [0, 0, 1, 1], [], []>} : vector<1x32xf32>, vector<32x16xf32>, vector<1x16xf32> -> vector<1x16xf32>
    %437 = arith.addf %434, %436 : vector<1x16xf32>
    %438 = vector.extract_strided_slice %342 {offsets = [4, 64], sizes = [1, 32], strides = [1, 1]} : vector<8x128xf32> to vector<1x32xf32>
    %cst_187 = arith.constant dense<0.000000e+00> : vector<1x16xf32>
    %439 = tpu.matmul %438, %352, %cst_187 {dimension_numbers = #tpu.dot_dimension_numbers<[1], [0], [0], [1], [0, 0, 1, 1], [], []>} : vector<1x32xf32>, vector<32x16xf32>, vector<1x16xf32> -> vector<1x16xf32>
    %440 = arith.addf %437, %439 : vector<1x16xf32>
    %441 = vector.extract_strided_slice %342 {offsets = [5, 64], sizes = [1, 32], strides = [1, 1]} : vector<8x128xf32> to vector<1x32xf32>
    %cst_188 = arith.constant dense<0.000000e+00> : vector<1x16xf32>
    %442 = tpu.matmul %441, %354, %cst_188 {dimension_numbers = #tpu.dot_dimension_numbers<[1], [0], [0], [1], [0, 0, 1, 1], [], []>} : vector<1x32xf32>, vector<32x16xf32>, vector<1x16xf32> -> vector<1x16xf32>
    %443 = arith.addf %440, %442 : vector<1x16xf32>
    %444 = vector.extract_strided_slice %342 {offsets = [6, 64], sizes = [1, 32], strides = [1, 1]} : vector<8x128xf32> to vector<1x32xf32>
    %cst_189 = arith.constant dense<0.000000e+00> : vector<1x16xf32>
    %445 = tpu.matmul %444, %356, %cst_189 {dimension_numbers = #tpu.dot_dimension_numbers<[1], [0], [0], [1], [0, 0, 1, 1], [], []>} : vector<1x32xf32>, vector<32x16xf32>, vector<1x16xf32> -> vector<1x16xf32>
    %446 = arith.addf %443, %445 : vector<1x16xf32>
    %447 = vector.extract_strided_slice %342 {offsets = [7, 64], sizes = [1, 32], strides = [1, 1]} : vector<8x128xf32> to vector<1x32xf32>
    %cst_190 = arith.constant dense<0.000000e+00> : vector<1x16xf32>
    %448 = tpu.matmul %447, %358, %cst_190 {dimension_numbers = #tpu.dot_dimension_numbers<[1], [0], [0], [1], [0, 0, 1, 1], [], []>} : vector<1x32xf32>, vector<32x16xf32>, vector<1x16xf32> -> vector<1x16xf32>
    %449 = arith.addf %446, %448 : vector<1x16xf32>
    %450 = vector.extract_strided_slice %15 {offsets = [2, 0], sizes = [1, 1], strides = [1, 1]} : vector<4x1xf32> to vector<1x1xf32>
    %451 = vector.broadcast %450 : vector<1x1xf32> to vector<1x16xf32>
    %452 = arith.mulf %449, %451 : vector<1x16xf32>
    %453 = vector.extract_strided_slice %5 {offsets = [2, 0], sizes = [1, 1], strides = [1, 1]} : vector<4x1xf32> to vector<1x1xf32>
    %454 = vector.broadcast %453 : vector<1x1xf32> to vector<1x16xf32>
    %455 = arith.addf %452, %454 : vector<1x16xf32>
    %c0_191 = arith.constant 0 : index
    %c2_192 = arith.constant 2 : index
    %c0_193 = arith.constant 0 : index
    %456 = vector.load %arg13[%c0_191, %c2_192, %c0_193] : memref<1x4x16xf32, #tpu.memory_space<vmem>>, vector<1x1x16xf32>
    %457 = vector.shape_cast %456 : vector<1x1x16xf32> to vector<1x16xf32>
    %458 = vector.shape_cast %455 : vector<1x16xf32> to vector<1x1x16xf32>
    tpu.vector_store %arg13[%c0_191, %c2_192, %c0_193], %458 {strides = array<i32>} : memref<1x4x16xf32, #tpu.memory_space<vmem>>, vector<1x1x16xf32>,
    %459 = vector.extract_strided_slice %342 {offsets = [0, 96], sizes = [1, 32], strides = [1, 1]} : vector<8x128xf32> to vector<1x32xf32>
    %cst_194 = arith.constant dense<0.000000e+00> : vector<1x16xf32>
    %460 = tpu.matmul %459, %344, %cst_194 {dimension_numbers = #tpu.dot_dimension_numbers<[1], [0], [0], [1], [0, 0, 1, 1], [], []>} : vector<1x32xf32>, vector<32x16xf32>, vector<1x16xf32> -> vector<1x16xf32>
    %461 = arith.addf %359, %460 : vector<1x16xf32>
    %462 = vector.extract_strided_slice %342 {offsets = [1, 96], sizes = [1, 32], strides = [1, 1]} : vector<8x128xf32> to vector<1x32xf32>
    %cst_195 = arith.constant dense<0.000000e+00> : vector<1x16xf32>
    %463 = tpu.matmul %462, %346, %cst_195 {dimension_numbers = #tpu.dot_dimension_numbers<[1], [0], [0], [1], [0, 0, 1, 1], [], []>} : vector<1x32xf32>, vector<32x16xf32>, vector<1x16xf32> -> vector<1x16xf32>
    %464 = arith.addf %461, %463 : vector<1x16xf32>
    %465 = vector.extract_strided_slice %342 {offsets = [2, 96], sizes = [1, 32], strides = [1, 1]} : vector<8x128xf32> to vector<1x32xf32>
    %cst_196 = arith.constant dense<0.000000e+00> : vector<1x16xf32>
    %466 = tpu.matmul %465, %348, %cst_196 {dimension_numbers = #tpu.dot_dimension_numbers<[1], [0], [0], [1], [0, 0, 1, 1], [], []>} : vector<1x32xf32>, vector<32x16xf32>, vector<1x16xf32> -> vector<1x16xf32>
    %467 = arith.addf %464, %466 : vector<1x16xf32>
    %468 = vector.extract_strided_slice %342 {offsets = [3, 96], sizes = [1, 32], strides = [1, 1]} : vector<8x128xf32> to vector<1x32xf32>
    %cst_197 = arith.constant dense<0.000000e+00> : vector<1x16xf32>
    %469 = tpu.matmul %468, %350, %cst_197 {dimension_numbers = #tpu.dot_dimension_numbers<[1], [0], [0], [1], [0, 0, 1, 1], [], []>} : vector<1x32xf32>, vector<32x16xf32>, vector<1x16xf32> -> vector<1x16xf32>
    %470 = arith.addf %467, %469 : vector<1x16xf32>
    %471 = vector.extract_strided_slice %342 {offsets = [4, 96], sizes = [1, 32], strides = [1, 1]} : vector<8x128xf32> to vector<1x32xf32>
    %cst_198 = arith.constant dense<0.000000e+00> : vector<1x16xf32>
    %472 = tpu.matmul %471, %352, %cst_198 {dimension_numbers = #tpu.dot_dimension_numbers<[1], [0], [0], [1], [0, 0, 1, 1], [], []>} : vector<1x32xf32>, vector<32x16xf32>, vector<1x16xf32> -> vector<1x16xf32>
    %473 = arith.addf %470, %472 : vector<1x16xf32>
    %474 = vector.extract_strided_slice %342 {offsets = [5, 96], sizes = [1, 32], strides = [1, 1]} : vector<8x128xf32> to vector<1x32xf32>
    %cst_199 = arith.constant dense<0.000000e+00> : vector<1x16xf32>
    %475 = tpu.matmul %474, %354, %cst_199 {dimension_numbers = #tpu.dot_dimension_numbers<[1], [0], [0], [1], [0, 0, 1, 1], [], []>} : vector<1x32xf32>, vector<32x16xf32>, vector<1x16xf32> -> vector<1x16xf32>
    %476 = arith.addf %473, %475 : vector<1x16xf32>
    %477 = vector.extract_strided_slice %342 {offsets = [6, 96], sizes = [1, 32], strides = [1, 1]} : vector<8x128xf32> to vector<1x32xf32>
    %cst_200 = arith.constant dense<0.000000e+00> : vector<1x16xf32>
    %478 = tpu.matmul %477, %356, %cst_200 {dimension_numbers = #tpu.dot_dimension_numbers<[1], [0], [0], [1], [0, 0, 1, 1], [], []>} : vector<1x32xf32>, vector<32x16xf32>, vector<1x16xf32> -> vector<1x16xf32>
    %479 = arith.addf %476, %478 : vector<1x16xf32>
    %480 = vector.extract_strided_slice %342 {offsets = [7, 96], sizes = [1, 32], strides = [1, 1]} : vector<8x128xf32> to vector<1x32xf32>
    %cst_201 = arith.constant dense<0.000000e+00> : vector<1x16xf32>
    %481 = tpu.matmul %480, %358, %cst_201 {dimension_numbers = #tpu.dot_dimension_numbers<[1], [0], [0], [1], [0, 0, 1, 1], [], []>} : vector<1x32xf32>, vector<32x16xf32>, vector<1x16xf32> -> vector<1x16xf32>
    %482 = arith.addf %479, %481 : vector<1x16xf32>
    %483 = vector.extract_strided_slice %15 {offsets = [3, 0], sizes = [1, 1], strides = [1, 1]} : vector<4x1xf32> to vector<1x1xf32>
    %484 = vector.broadcast %483 : vector<1x1xf32> to vector<1x16xf32>
    %485 = arith.mulf %482, %484 : vector<1x16xf32>
    %486 = vector.extract_strided_slice %5 {offsets = [3, 0], sizes = [1, 1], strides = [1, 1]} : vector<4x1xf32> to vector<1x1xf32>
    %487 = vector.broadcast %486 : vector<1x1xf32> to vector<1x16xf32>
    %488 = arith.addf %485, %487 : vector<1x16xf32>
    %c0_202 = arith.constant 0 : index
    %c3_203 = arith.constant 3 : index
    %c0_204 = arith.constant 0 : index
    %489 = vector.load %arg13[%c0_202, %c3_203, %c0_204] : memref<1x4x16xf32, #tpu.memory_space<vmem>>, vector<1x1x16xf32>
    %490 = vector.shape_cast %489 : vector<1x1x16xf32> to vector<1x16xf32>
    %491 = vector.shape_cast %488 : vector<1x16xf32> to vector<1x1x16xf32>
    tpu.vector_store %arg13[%c0_202, %c3_203, %c0_204], %491 {strides = array<i32>} : memref<1x4x16xf32, #tpu.memory_space<vmem>>, vector<1x1x16xf32>,
    return
  }
  func.func @transform_0(%arg0: i32) -> (i32, i32, i32) {
    %c0_i32 = arith.constant 0 : i32
    %c0_i32_0 = arith.constant 0 : i32
    %c0_i32_1 = arith.constant 0 : i32
    return %arg0, %c0_i32, %c0_i32_0 : i32, i32, i32
  }
  func.func @transform_1(%arg0: i32) -> (i32, i32) {
    %c0_i32 = arith.constant 0 : i32
    %c0_i32_0 = arith.constant 0 : i32
    %c0_i32_1 = arith.constant 0 : i32
    return %c0_i32, %c0_i32_0 : i32, i32
  }
  func.func @transform_2(%arg0: i32) -> (i32, i32) {
    %c0_i32 = arith.constant 0 : i32
    %c0_i32_0 = arith.constant 0 : i32
    %c0_i32_1 = arith.constant 0 : i32
    return %c0_i32, %c0_i32_0 : i32, i32
  }
  func.func @transform_3(%arg0: i32) -> (i32, i32, i32) {
    %c0_i32 = arith.constant 0 : i32
    %c0_i32_0 = arith.constant 0 : i32
    %c0_i32_1 = arith.constant 0 : i32
    %c0_i32_2 = arith.constant 0 : i32
    return %c0_i32, %c0_i32_0, %c0_i32_1 : i32, i32, i32
  }
  func.func @transform_4(%arg0: i32) -> (i32, i32, i32) {
    %c0_i32 = arith.constant 0 : i32
    %c0_i32_0 = arith.constant 0 : i32
    %c0_i32_1 = arith.constant 0 : i32
    %c0_i32_2 = arith.constant 0 : i32
    return %c0_i32, %c0_i32_0, %c0_i32_1 : i32, i32, i32
  }
  func.func @transform_5(%arg0: i32) -> (i32, i32, i32) {
    %c0_i32 = arith.constant 0 : i32
    %c0_i32_0 = arith.constant 0 : i32
    %c0_i32_1 = arith.constant 0 : i32
    %c0_i32_2 = arith.constant 0 : i32
    return %c0_i32, %c0_i32_0, %c0_i32_1 : i32, i32, i32
  }
  func.func @transform_6(%arg0: i32) -> (i32, i32, i32) {
    %c0_i32 = arith.constant 0 : i32
    %c0_i32_0 = arith.constant 0 : i32
    %c0_i32_1 = arith.constant 0 : i32
    %c0_i32_2 = arith.constant 0 : i32
    return %c0_i32, %c0_i32_0, %c0_i32_1 : i32, i32, i32
  }
  func.func @transform_7(%arg0: i32) -> (i32, i32, i32) {
    %c0_i32 = arith.constant 0 : i32
    %c0_i32_0 = arith.constant 0 : i32
    %c0_i32_1 = arith.constant 0 : i32
    %c0_i32_2 = arith.constant 0 : i32
    return %c0_i32, %c0_i32_0, %c0_i32_1 : i32, i32, i32
  }
  func.func @transform_8(%arg0: i32) -> (i32, i32, i32) {
    %c0_i32 = arith.constant 0 : i32
    %c0_i32_0 = arith.constant 0 : i32
    %c0_i32_1 = arith.constant 0 : i32
    %c0_i32_2 = arith.constant 0 : i32
    return %c0_i32, %c0_i32_0, %c0_i32_1 : i32, i32, i32
  }
  func.func @transform_9(%arg0: i32) -> (i32, i32, i32) {
    %c0_i32 = arith.constant 0 : i32
    %c0_i32_0 = arith.constant 0 : i32
    %c0_i32_1 = arith.constant 0 : i32
    %c0_i32_2 = arith.constant 0 : i32
    return %c0_i32, %c0_i32_0, %c0_i32_1 : i32, i32, i32
  }
  func.func @transform_10(%arg0: i32) -> (i32, i32, i32) {
    %c0_i32 = arith.constant 0 : i32
    %c0_i32_0 = arith.constant 0 : i32
    %c0_i32_1 = arith.constant 0 : i32
    %c0_i32_2 = arith.constant 0 : i32
    return %c0_i32, %c0_i32_0, %c0_i32_1 : i32, i32, i32
  }
  func.func @transform_11(%arg0: i32) -> (i32, i32) {
    %c0_i32 = arith.constant 0 : i32
    %c0_i32_0 = arith.constant 0 : i32
    %c0_i32_1 = arith.constant 0 : i32
    return %c0_i32, %c0_i32_0 : i32, i32
  }
  func.func @transform_12(%arg0: i32) -> (i32, i32, i32) {
    %c0_i32 = arith.constant 0 : i32
    %c0_i32_0 = arith.constant 0 : i32
    %c0_i32_1 = arith.constant 0 : i32
    return %arg0, %c0_i32, %c0_i32_0 : i32, i32, i32
  }
}

</mosaic_0001>

<bundles_post_ra>
// kernel: modern_tcn_forward.1
= control target key start
LH: loop header
LB: loop body
LE: loop exit
PB: predicated region body
PF: predicated region fallthrough
CT: control target
= control target key end

     0   :  { %17 = vsyncpa [#allocation6], 0  ;;  %s6483_s0 = inlined_call_operand.vmem [shape: f32[2,4,32], index: 0, kind: input, shape index: {}]   ;;  %s6484_s1 = inlined_call_operand.vmem [shape: f32[32,128], index: 1, kind: input, shape index: {}]   ;;  %s6485_s2 = inlined_call_operand.vmem [shape: f32[1,128], index: 2, kind: input, shape index: {}]   ;;  %s6486_s3 = inlined_call_operand.vmem [shape: f32[2,13,128], index: 3, kind: input, shape index: {}]   ;;  %s6487_s4 = inlined_call_operand.vmem [shape: f32[2,5,128], index: 4, kind: input, shape index: {}]   ;;  %s6488_s5 = inlined_call_operand.vmem [shape: f32[2,1,128], index: 5, kind: input, shape index: {}]   ;;  %s6489_s6 = inlined_call_operand.vmem [shape: f32[2,128,128], index: 6, kind: input, shape index: {}]   ;;  %s6490_s7 = inlined_call_operand.vmem [shape: f32[2,1,128], index: 7, kind: input, shape index: {}]   ;;  %s6491_s8 = inlined_call_operand.hbm [shape: f32[2,128,128], index: 8, kind: input, shape index: {}]   ;;  %s6492_s9 = inlined_call_operand.vmem [shape: f32[2,1,128], index: 9, kind: input, shape index: {}]   ;;  %s6493_s10 = inlined_call_operand.vmem [shape: f32[8,32,16], index: 10, kind: input, shape index: {}]   ;;  %s6494_s11 = inlined_call_operand.vmem [shape: f32[1,16], index: 11, kind: input, shape index: {}]   ;;  %s6495_s12 = inlined_call_operand.hbm [shape: f32[2,4,16], index: 12, kind: output, shape index: {}]  }
   0x1   :  { %18 = vsyncpa [#allocation7], 0 }
   0x2   :  { %20 = vsyncpa [#allocation7 + $0x1], 0  ;;  %s5494_s21 = smov 0   ;;  %s5496_s22 = smov 0  }
   0x3   :  { %s5498_s23 = smov 0   ;;  %s5500_s24 = smov 0  }
   0x4 LB: > { %6500 = sst [smem:[#allocation11_spill]] %s5399_s23  ;;  %s5515_s25 = sadd.s32 4294967295, %s5403_s24   ;;  %s5403_s24 = sphi %s5500_s24, %s6515_s24   ;;  %s5399_s23 = sphi %s5498_s23, %s6512_s23   ;;  %s5395_s22 = sphi %s5496_s22, %s6514_s22   ;;  %s5391_s21 = sphi %s5494_s21, %s6513_s21  }
   0x5   : > { %s4035_s26 = sadd.s32 4294967294, %s5403_s24   ;;  %s5519_s27 = sadd.s32 1, %s5403_s24  }
   0x6   : > { %s290_s28 = sadd.s32 1, %s5399_s23  ;;  %s287_s29 = ssub.s32 %s5403_s24, %s5519_s27 }
   0x7   : > { %p300_p0 = scmp.ne.s32.totalorder %s5399_s23, %s5395_s22  ;;  %p288_p1 = scmp.eq.s32.totalorder %s287_s29, 0 }
   0x8   : > { %p301_p2 = scmp.eq.s32.totalorder %s5515_s25, 1  ;;  %p306_p3 = scmp.ne.s32.totalorder %s5395_s22, %s5391_s21 }
   0x9   : > { %p307_p4 = scmp.eq.s32.totalorder %s4035_s26, 1  ;;  %p4036_p7 = scmp.ge.s32.totalorder %s5403_s24, 1 }
   0xa   : > { %s5530_s30 = scalar_select %p288_p1, %s5399_s23, %s290_s28  }
   0xb   : > { %p5532_p5 = por %p301_p2, %p300_p0  ;;  %p5536_p6 = por %p307_p4, %p306_p3 }
   0xc   : > { %6501 = sst [smem:[#allocation12_spill]] %s5530_s30  ;;  %p314_p8 = scmp.lt.s32.totalorder %s5403_s24, 3 }
   0xd   : > { %s6502_s13 = scalar_select %p5532_p5, 1, 0 }
   0xe   : > { %s6503_s14 = scalar_select %p5536_p6, 1, 0 }
   0xf   : > { %p6497_p9 = scmp.eq.s32.totalorder %s5515_s25, 0  ;;  %p5543_p10 = pnand %p4036_p7, %p314_p8 }
  0x10   : > { %s5405_s16 = smov [#allocation5]   ;;  %s5309_s26 = scalar_lea.hbm %s6491_s8, 4096 }
  0x11   : > { %s6504_s15 = scalar_select %p5543_p10, 1, 0 }
  0x12   : > { %s347_s17 = sshll.u32 %s5405_s16, 4  ;;  %p5233_p11 = pneg %p5543_p10  ;;  %s348_s17 = int_to_ptr.vmem [resolvable:$true] %s347_s17 }
  0x13   : > { %p5310_p13 = scmp.ne.s32.totalorder %s6491_s8, %s5309_s26  ;;  %p5316_p3 = scmp.lt.u32.totalorder %s5309_s26, %s6491_s8 }
  0x14   : > { %p5551_p12 = pnand %p6497_p9, %p5233_p11 }
  0x16   : > { %p5311_p0 = pneg %p5551_p12 }
  0x18   : > { %p5312_p1 = pnand %p5311_p0, %p5310_p13 }
  0x1a   : > { %p5313_p2 = pneg %p5312_p1 }
  0x1c   : > { %p5318_p4 = pnand %p5316_p3, %p5313_p2 }
  0x1e   : > { %5321 = shalt.err (!%p5318_p4)
}
  0x1f   : > { %s5322_s23 = scalar_lea.vmem %s348_s17, 4096  ;;  %p5330_p9 = scmp.lt.s32.totalorder %s348_s17, %s348_s17 }
  0x20   : > { %p5323_p7 = scmp.ne.s32.totalorder %s348_s17, %s5322_s23  ;;  %p5331_p6 = scmp.lt.s32.totalorder %s5322_s23, %s5322_s23 }
  0x22   : > { %p5325_p8 = pnand %p5323_p7, %p5311_p0  ;;  %p5332_p5 = por %p5331_p6, %p5330_p9 }
  0x24   : > { %p5326_p11 = pneg %p5325_p8 }
  0x26   : > { %p5333_p10 = pnand %p5332_p5, %p5326_p11 }
  0x28   : > { %5336 = shalt.err (!%p5333_p10)
}
  0x29   : > { %s5406_s19 = smov 128   ;;  %s5407_s20 = smov 8  }
  0x2a   : > { %5236 = dma.hbm_to_vmem [thread:$0]  (!%p5551_p12), %s6491_s8, 4096, %s348_s17, [#allocation6], %s5406_s19, %s5406_s19, %s5407_s20  }
  0x2b   : > { %p6506_p13 = scmp.ne.s32.totalorder %s6504_s15, 0 }
  0x2c   : > { %p6507_p1 = scmp.eq.s32.totalorder (!%p6506_p13), %s5515_s25, 0 }
  0x2d   : > { %379 = sbr.rel (%p6506_p13) target bundleno = 2348 (0x92c), region = 68 }
  0x34   : > { %5382 = dma.done.wait (%p6507_p1), [#allocation6], 4096   ;;  %p6508_p0 = pmov %p6507_p1 }
  0x35   : > { %p420_p5 = scmp.lt.s32.totalorder %s5515_s25, 1  ;;  %vm425_vm0 = vcmask 257024   ;;  %v5408_v7 = vmov 31   ;;  %vm453_vm3 = vcmask 290048   ;;  %vm456_vm4 = vcmask 57344   ;;  %s5409_s15 = smov 120  }
  0x36   : > { %5384 = vsyncadd (%p6508_p0), [#allocation6], 4294963200  ;;  %5299 = vset.pattern.permute.xlu1 %v5408_v7  ;;  %5300 = vset.pattern.permute.xlu0 %v5408_v7  ;;  %s5410_s17 = smov 124   ;;  %s5411_s19 = smov 4   ;;  %v533_v20 = vld [vmem:[%s6484_s1] sm:$0xff]  ;;  %v534_v21 = vld [vmem:[%s6484_s1 + $0x8] sm:$0xff] }
  0x37   : > { %s421_s23 = scalar_select %p420_p5, %s5515_s25, 1  ;;  %v4874_v22 = vpack.c.bf16 %v534_v21, %v533_v20  ;;  %v5418_v23 = vmov 0.0|0.0   ;;  %v535_v24 = vld [vmem:[%s6484_s1 + $0x10] sm:$0xff]  ;;  %v536_v25 = vld [vmem:[%s6484_s1 + $0x18] sm:$0xff]  ;;  %v5420_v27 = vmov 0.0   ;;  %vm5421_vm5 = vmmov 0  }
  0x38   : > { %s5412_s20 = smov 116   ;;  %s5413_s28 = smov 12   ;;  %4873 = vmatprep.subr.bf16.mxu0 %v5418_v23  ;;  %4879 = vmatprep.subr.bf16.mxu1 %v5418_v23  ;;  %v4877_v26 = vpack.c.bf16 %v536_v25, %v535_v24  ;;  %618 = vst [vmem:[#allocation4] sm:$0xff] %v5420_v27  ;;  %619 = vst [vmem:[#allocation4 + $0x8] sm:$0xff] %v5420_v27  ;;  %vm462_vm6 = vcmask 123969   ;;  %vm467_vm7 = vcmask 190594  }
  0x39   : > { %s4042_s30 = sshll.u32 %s421_s23, 2  ;;  %s5414_s29 = smov 112   ;;  %4875 = vmatpush3.bf16.msra.mxu0 %v4874_v22  ;;  %620 = vst [vmem:[#allocation4 + $0x10] sm:$0xf] %v5420_v27  ;;  %4378 = vmatprep.mubr.msk.f32.mxu0 %vm5421_vm5, %v5420_v27  ;;  %vm472_vm8 = vcmask 257219   ;;  %vm544_vm9 = vcmask 261120  }
  0x3a   : > { %s423_s16 = scalar_lea.vmem %s6483_s0, %s4042_s30  ;;  %s5415_s23 = smov 20   ;;  %4876 = vmatprep.subr.bf16.mxu0 %v5418_v23  ;;  %4413 = vmatprep.mubr.msk.f32.mxu1 %vm5421_vm5, %v5420_v27  ;;  %v855_v42 = vld [vmem:[%s6489_s6] sm:$0xff]  ;;  %v856_v43 = vld [vmem:[%s6489_s6 + $0x8] sm:$0xff]  ;;  %v857_v44 = vld [vmem:[%s6489_s6 + $0x10] sm:$0xff]  ;;  %vm641_vm10 = vcmask 1046528   ;;  %vm655_vm11 = vcmask 1045504  }
  0x3b   : > { %v424_v0 = vld [vmem:[%s423_s16] sm:$0xf]  ;;  %s5416_s30 = smov 108   ;;  %s5417_s26 = smov 104   ;;  %v4880_v45 = vpack.c.bf16 %v856_v43, %v855_v42  ;;  %v858_v46 = vld [vmem:[%s6489_s6 + $0x18] sm:$0xff]  ;;  %v860_v49 = vld [vmem:[%s6489_s6 + $0x28] sm:$0xff] }
  0x3c   : > { %v426_v1 = vsel %vm425_vm0, %v424_v0, 0.0  ;;  %s5424_s18 = smov 24   ;;  %v4883_v47 = vpack.c.bf16 %v858_v46, %v857_v44  ;;  %v859_v48 = vld [vmem:[%s6489_s6 + $0x20] sm:$0xff]  ;;  %v861_v51 = vld [vmem:[%s6489_s6 + $0x30] sm:$0xff]  ;;  %v862_v52 = vld [vmem:[%s6489_s6 + $0x38] sm:$0xff]  ;;  %vm669_vm12 = vcmask 1044480  }
  0x3d   : > { %427 = vadd.xlane.f32.xlu0 %v426_v1  ;;  %4878 = vmatpush3.bf16.msra.mxu0 %v4877_v26  ;;  %v4886_v50 = vpack.c.bf16 %v860_v49, %v859_v48  ;;  %v4889_v53 = vpack.c.bf16 %v862_v52, %v861_v51  ;;  %v863_v54 = vld [vmem:[%s6489_s6 + $0x40] sm:$0xff]  ;;  %v864_v55 = vld [vmem:[%s6489_s6 + $0x48] sm:$0xff]  ;;  %v865_v57 = vld [vmem:[%s6489_s6 + $0x50] sm:$0xff]  ;;  %vm683_vm13 = vcmask 1043456   ;;  %vm697_vm14 = vcmask 1042432   ;;  %p6509_p9 = scmp.ne.s32.totalorder %s6502_s13, 0 }
  0x3e   : > { %4903 = vmatprep.subr.bf16.mxu0 %v5418_v23  ;;  %4881 = vmatpush3.bf16.msra.mxu1 %v4880_v45  ;;  %v4892_v56 = vpack.c.bf16 %v864_v55, %v863_v54  ;;  %v866_v58 = vld [vmem:[%s6489_s6 + $0x58] sm:$0xff]  ;;  %v867_v60 = vld [vmem:[%s6489_s6 + $0x60] sm:$0xff]  ;;  %v868_v61 = vld [vmem:[%s6489_s6 + $0x68] sm:$0xff]  ;;  %vm711_vm15 = vcmask 1041408  }
  0x3f   : > { %4882 = vmatprep.subr.bf16.mxu1 %v5418_v23  ;;  %v4895_v59 = vpack.c.bf16 %v866_v58, %v865_v57  ;;  %v4898_v62 = vpack.c.bf16 %v868_v61, %v867_v60  ;;  %v869_v63 = vld [vmem:[%s6489_s6 + $0x70] sm:$0xff]  ;;  %v956_v7 = vld [vmem:[#allocation5 + $0x18] sm:$0xff]  ;;  %v622_v54 = vld [vmem:[%s6486_s3 + $0x8] sm:$0x1f] }
  0x42   : > { %4884 = vmatpush3.bf16.msra.mxu1 %v4883_v47 }
  0x43   : > { %4885 = vmatprep.subr.bf16.mxu1 %v5418_v23 }
  0x46   : > { %4887 = vmatpush3.bf16.msra.mxu1 %v4886_v50 }
  0x47   : > { %4888 = vmatprep.subr.bf16.mxu1 %v5418_v23 }
  0x4a   : > { %4890 = vmatpush3.bf16.msra.mxu1 %v4889_v53 }
  0x4b   : > { %4891 = vmatprep.subr.bf16.mxu1 %v5418_v23 }
  0x4e   : > { %4893 = vmatpush3.bf16.msra.mxu1 %v4892_v56 }
  0x4f   : > { %4894 = vmatprep.subr.bf16.mxu1 %v5418_v23 }
  0x52   : > { %4896 = vmatpush3.bf16.msra.mxu1 %v4895_v59 }
  0x53   : > { %4897 = vmatprep.subr.bf16.mxu1 %v5418_v23 }
  0x56   : > { %4899 = vmatpush3.bf16.msra.mxu1 %v4898_v62 }
  0x57   : > { %4900 = vmatprep.subr.bf16.mxu1 %v5418_v23 }
  0xca   : > { %v428_v2 = vpop.xlane.xlu0 %427 }
  0xcb   : > { %v5583_v3 = vmul.f32 0.03125, %v428_v2  ;;  %v953_v2 = vld [vmem:[#allocation5] sm:$0xff] }
  0xcd   : > { %v431_v4 = vsub.f32 %v424_v0, %v5583_v3  ;;  %v870_v0 = vld [vmem:[%s6489_s6 + $0x78] sm:$0xff] }
  0xce   : > { %v4901_v1 = vpack.c.bf16 %v870_v0, %v869_v63 }
  0xcf   : > { %v432_v5 = vmul.f32 %v431_v4, %v431_v4 }
  0xd0   : > { %4902 = vmatpush3.bf16.msra.mxu1 %v4901_v1 }
  0xd1   : > { %v433_v6 = vsel %vm425_vm0, %v432_v5, 0.0  ;;  %4927 = vmatprep.subr.bf16.mxu1 %v5418_v23 }
  0xd2   : > { %434 = vadd.xlane.f32.xlu0 %v433_v6  ;;  %v955_v6 = vld [vmem:[#allocation5 + $0x10] sm:$0xff] }
 0x15f   : > { %v435_v8 = vpop.xlane.xlu0 %434 }
 0x160   : > { %v436_v9 = vmul.f32 0.03125, %v435_v8  ;;  %v4907_v8 = vpack.c.bf16 %v956_v7, %v955_v6 }
 0x162   : > { %v437_v10 = vadd.f32 1e-05, %v436_v9  ;;  %v957_v9 = vld [vmem:[#allocation5 + $0x20] sm:$0xff] }
 0x164   : > { %5301 = vrsqrt.f32 %v437_v10  ;;  %vm440_vm1 = vcmp.eq.f32.partialorder %v437_v10, inf  ;;  %v443_v13 = vand.u32 2147483648, %v437_v10  ;;  %vm442_vm2 = vcmp.eq.f32.partialorder %v437_v10, 0.0 }
 0x16e   : > { %v5302_v11 = vpop.eup %5301 }
 0x16f   : > { %v439_v12 = vmul.f32 %v5302_v11, %v437_v10 }
 0x171   : > { %v441_v14 = vsel %vm440_vm1, %v437_v10, %v439_v12  ;;  %v958_v10 = vld [vmem:[#allocation5 + $0x28] sm:$0xff]  ;;  %v628_v12 = vlaneseq  ;;  %vm2107_vm1 = vcmask 122880  }
 0x172   : > { %v5587_v15 = vsel %vm442_vm2, %v443_v13, %v441_v14  ;;  %v4910_v11 = vpack.c.bf16 %v958_v10, %v957_v9  ;;  %v4043_v13 = vld [vmem:[%s6485_s2] ss:$0 sm:$0xff] }
 0x173   : > { %5303 = vrcp.f32 %v5587_v15 }
 0x17d   : > { %v5304_v16 = vpop.eup %5303 }
 0x17e   : > { %v446_v17 = vmul.f32 %v5304_v16, %v431_v4  ;;  %v954_v4 = vld [vmem:[#allocation5 + $0x8] sm:$0xff] }
 0x17f   : > { %v4904_v5 = vpack.c.bf16 %v954_v4, %v953_v2 }
 0x180   : > { %450 = vperm.xlu1 %5299, %v446_v17   ;;  %447 = vst.msk [vmem:[#allocation2] sm:$0xf] %vm425_vm0, %v446_v17  ;;  %vm725_vm0 = vcmask 1040384  }
 0x1ff   : > { %v451_v18 = vpop.permute.xlu1 %450 }
 0x200   : > { %454 = vst.msk [vmem:[#allocation2] sm:$0xf] %vm453_vm3, %v451_v18  ;;  %v5732_v18 = vshrl.u32 %v628_v12, 7 }
 0x202   : > { %v5739_v20 = vsub.s32 4, %v5732_v18  ;;  %v5742_v21 = vsub.s32 0, %v5732_v18  ;;  %v5745_v22 = vsub.s32 1, %v5732_v18  ;;  %v5748_v24 = vsub.s32 2, %v5732_v18 }
 0x203   : > { %v5751_v25 = vsub.s32 3, %v5732_v18  ;;  %v691_v26 = vsub.s32 5, %v5732_v18 }
 0x204   : > { %v740_v4 = vrot.slane %v622_v54, %v5745_v22 }
 0x207   : > { %v5591_v19 = vld [vmem:[#allocation2] sm:$0xf] }
 0x208   : > { %490 = vrot.lane.b32.xlu0 %v5591_v19, %s5409_s15  ;;  %474 = vrot.lane.b32.xlu1 %v5591_v19, %s5410_s17  ;;  %457 = vst.msk [vmem:[#allocation3] sm:$0x1] %vm456_vm4, %v5591_v19  ;;  %s4134_s17 = sshll.u32 %s5515_s25, 6 }
 0x20c   : > { %478 = vrot.lane.b32.xlu0 %v5591_v19, %s5411_s19  ;;  %497 = vrot.lane.b32.xlu1 %v5591_v19, %s5412_s20  ;;  %s5426_s19 = smov 64  }
 0x210   : > { %482 = vrot.lane.b32.xlu0 %v5591_v19, %s5413_s28  ;;  %504 = vrot.lane.b32.xlu1 %v5591_v19, %s5414_s29 }
 0x214   : > { %486 = vrot.lane.b32.xlu0 %v5591_v19, %s5415_s23  ;;  %511 = vrot.lane.b32.xlu1 %v5591_v19, %s5416_s30  ;;  %s5419_s23 = smov 100   ;;  %s5422_s30 = smov 8  }
 0x218   : > { %518 = vrot.lane.b32.xlu1 %v5591_v19, %s5417_s26  ;;  %s5423_s26 = smov 16  }
 0x21c   : > { %525 = vrot.lane.b32.xlu1 %v5591_v19, %s5419_s23  ;;  %s5425_s23 = smov 96  }
 0x220   : > { %459 = vrot.lane.b32.xlu1 %v5591_v19, %s5422_s30  ;;  %s6438_s30 = scalar_lea.hbm %s6495_s12, %s4134_s17 }
 0x224   : > { %464 = vrot.lane.b32.xlu1 %v5591_v19, %s5423_s26 }
 0x228   : > { %469 = vrot.lane.b32.xlu1 %v5591_v19, %s5424_s18 }
 0x27a   : > { %v491_v28 = vpop.permute.xlu0 %490  ;;  %v475_v29 = vpop.permute.xlu1 %474 }
 0x27b   : > { %493 = vst.msk [vmem:[#allocation3 + $0x2] sm:$0x1] %vm456_vm4, %v491_v28  ;;  %477 = vst.msk [vmem:[#allocation3 + $0x1] sm:$0x1] %vm456_vm4, %v475_v29 }
 0x27c   : > { %494 = vst.msk [vmem:[#allocation3 + $0x1] sm:$0x2] %vm462_vm6, %v5591_v19 }
 0x27e   : > { %v479_v30 = vpop.permute.xlu0 %478  ;;  %v498_v31 = vpop.permute.xlu1 %497 }
 0x27f   : > { %481 = vst.msk [vmem:[#allocation3] sm:$0x2] %vm462_vm6, %v479_v30 }
 0x280   : > { %500 = vst.msk [vmem:[#allocation3 + $0x3] sm:$0x1] %vm456_vm4, %v498_v31 }
 0x281   : > { %501 = vst.msk [vmem:[#allocation3 + $0x2] sm:$0x2] %vm462_vm6, %v475_v29 }
 0x282   : > { %502 = vst.msk [vmem:[#allocation3 + $0x1] sm:$0x4] %vm467_vm7, %v479_v30  ;;  %v483_v32 = vpop.permute.xlu0 %482  ;;  %v505_v33 = vpop.permute.xlu1 %504 }
 0x283   : > { %485 = vst.msk [vmem:[#allocation3 - $0x1] sm:$0x4] %vm467_vm7, %v483_v32 }
 0x284   : > { %503 = vst.msk [vmem:[#allocation3] sm:$0x8] %vm472_vm8, %v483_v32 }
 0x285   : > { %507 = vst.msk [vmem:[#allocation3 + $0x4] sm:$0x1] %vm456_vm4, %v505_v33 }
 0x286   : > { %508 = vst.msk [vmem:[#allocation3 + $0x3] sm:$0x2] %vm462_vm6, %v491_v28  ;;  %v487_v34 = vpop.permute.xlu0 %486  ;;  %v512_v35 = vpop.permute.xlu1 %511 }
 0x287   : > { %509 = vst.msk [vmem:[#allocation3 + $0x2] sm:$0x4] %vm467_vm7, %v5591_v19 }
 0x288   : > { %489 = vst.msk [vmem:[#allocation3 - $0x2] sm:$0x8] %vm472_vm8, %v487_v34 }
 0x289   : > { %514 = vst.msk [vmem:[#allocation3 + $0x5] sm:$0x1] %vm456_vm4, %v512_v35 }
 0x28a   : > { %515 = vst.msk [vmem:[#allocation3 + $0x4] sm:$0x2] %vm462_vm6, %v498_v31  ;;  %v519_v36 = vpop.permute.xlu1 %518 }
 0x28b   : > { %516 = vst.msk [vmem:[#allocation3 + $0x3] sm:$0x4] %vm467_vm7, %v475_v29 }
 0x28c   : > { %517 = vst.msk [vmem:[#allocation3 + $0x2] sm:$0x8] %vm472_vm8, %v479_v30 }
 0x28d   : > { %521 = vst.msk [vmem:[#allocation3 + $0x6] sm:$0x1] %vm456_vm4, %v519_v36 }
 0x28e   : > { %522 = vst.msk [vmem:[#allocation3 + $0x5] sm:$0x2] %vm462_vm6, %v505_v33  ;;  %v526_v37 = vpop.permute.xlu1 %525 }
 0x28f   : > { %523 = vst.msk [vmem:[#allocation3 + $0x4] sm:$0x4] %vm467_vm7, %v491_v28  ;;  %v705_v28 = vsub.s32 6, %v5732_v18 }
 0x290   : > { %524 = vst.msk [vmem:[#allocation3 + $0x3] sm:$0x8] %vm472_vm8, %v5591_v19  ;;  %v621_v19 = vld [vmem:[%s6486_s3] sm:$0xff] }
 0x291   : > { %528 = vst.msk [vmem:[#allocation3 + $0x7] sm:$0x1] %vm456_vm4, %v526_v37  ;;  %v650_v30 = vrot.slane %v621_v19, %v5748_v24  ;;  %v678_v32 = vrot.slane %v621_v19, %v5739_v20  ;;  %v631_v33 = vrot.slane %v621_v19, %v5742_v21  ;;  %v692_v36 = vrot.slane %v621_v19, %v691_v26 }
 0x292   : > { %529 = vst.msk [vmem:[#allocation3 + $0x6] sm:$0x2] %vm462_vm6, %v512_v35  ;;  %v460_v38 = vpop.permute.xlu1 %459  ;;  %v706_v37 = vrot.slane %v621_v19, %v705_v28 }
 0x293   : > { %530 = vst.msk [vmem:[#allocation3 + $0x5] sm:$0x4] %vm467_vm7, %v498_v31  ;;  %495 = vst.msk [vmem:[#allocation3] sm:$0x4] %vm467_vm7, %v460_v38  ;;  %v664_v31 = vrot.slane %v621_v19, %v5751_v25 }
 0x294   : > { %531 = vst.msk [vmem:[#allocation3 + $0x4] sm:$0x8] %vm472_vm8, %v475_v29  ;;  %510 = vst.msk [vmem:[#allocation3 + $0x1] sm:$0x8] %vm472_vm8, %v460_v38  ;;  %v636_v29 = vrot.slane %v621_v19, %v5745_v22 }
 0x295   : > { %463 = vst.msk [vmem:[#allocation3 - $0x1] sm:$0x2] %vm462_vm6, %v460_v38  ;;  %v719_v38 = vsub.s32 7, %v5732_v18 }
 0x296   : > { %v465_v39 = vpop.permute.xlu1 %464 }
 0x297   : > { %468 = vst.msk [vmem:[#allocation3 - $0x2] sm:$0x4] %vm467_vm7, %v465_v39  ;;  %v720_v58 = vrot.slane %v621_v19, %v719_v38 }
 0x298   : > { %496 = vst.msk [vmem:[#allocation3 - $0x1] sm:$0x8] %vm472_vm8, %v465_v39 }
 0x29a   : > { %v470_v40 = vpop.permute.xlu1 %469 }
 0x29b   : > { %473 = vst.msk [vmem:[#allocation3 - $0x3] sm:$0x8] %vm472_vm8, %v470_v40 }
 0x2a2   : > { %v532_v41 = vld [vmem:[#allocation3] sm:$0xff] }
 0x2a3   : > { %4379 = vmatmul.mubr.msk.f32.vlgmr.msra.gmra.mrb[0].mxu0 %vm544_vm9, %v532_v41 }
 0x2a4   : > { %4448 = vmatprep.mubr.msk.f32.mxu0 %vm5421_vm5, %v5420_v27  ;;  %4905 = vmatpush3.bf16.msra.mxu0 %v4904_v5  ;;  %v627_v5 = vld [vmem:[#allocation4 + $0x10] sm:$0xf] }
 0x2a5   : > { %4906 = vmatprep.subr.bf16.mxu0 %v5418_v23  ;;  %v742_v19 = vmul.f32 %v740_v4, %v627_v5 }
 0x2a8   : > { %4908 = vmatpush3.bf16.msra.mxu0 %v4907_v8 }
 0x2a9   : > { %4909 = vmatprep.subr.bf16.mxu0 %v5418_v23 }
 0x2ac   : > { %4911 = vmatpush3.bf16.msra.mxu0 %v4910_v11 }
 0x2ad   : > { %4912 = vmatprep.subr.bf16.mxu0 %v5418_v23 }
 0x376   : > { %v614_v14 = vpop.f32.mrb[0].mxu0 }
 0x377   : > { %v5730_v16 = vadd.f32 %v4043_v13, %v614_v14  ;;  %v4380_v17 = vpop.f32.mrb[1].mxu0  ;;  %v753_v14 = vrot.slane %v622_v54, %v5748_v24 }
 0x379   : > { %624 = vst [vmem:[#allocation4 + $0x6] sm:$0xff] %v5730_v16 }
 0x380   : > { %v5760_v34 = vld [vmem:[#allocation4] sm:$0xff]  ;;  %v5762_v35 = vld [vmem:[#allocation4 + $0x8] sm:$0xff] }
 0x381   : > { %v637_v39 = vmul.f32 %v636_v29, %v5760_v34  ;;  %v638_v40 = vmul.f32 %v636_v29, %v5762_v35  ;;  %v651_v41 = vmul.f32 %v650_v30, %v5760_v34  ;;  %v652_v42 = vmul.f32 %v650_v30, %v5762_v35  ;;  %v5799_v30 = vld [vmem:[%s6487_s4] sm:$0x1f] }
 0x382   : > { %v665_v43 = vmul.f32 %v664_v31, %v5760_v34  ;;  %v666_v44 = vmul.f32 %v664_v31, %v5762_v35  ;;  %v679_v45 = vmul.f32 %v678_v32, %v5760_v34  ;;  %v680_v49 = vmul.f32 %v678_v32, %v5762_v35 }
 0x383   : > { %v642_v46 = vrot.slane %v637_v39, 1  ;;  %v643_v47 = vrot.slane %v638_v40, 1  ;;  %v656_v48 = vrot.slane %v651_v41, 2  ;;  %v632_v50 = vmul.f32 %v631_v33, %v5760_v34 }
 0x384   : > { %v657_v51 = vrot.slane %v652_v42, 2  ;;  %v670_v52 = vrot.slane %v665_v43, 3  ;;  %v671_v53 = vrot.slane %v666_v44, 3  ;;  %v693_v56 = vmul.f32 %v692_v36, %v5760_v34 }
 0x385   : > { %v644_v55 = vsel %vm641_vm10, %v642_v46, %v643_v47  ;;  %v694_v57 = vmul.f32 %v692_v36, %v5762_v35  ;;  %v684_v60 = vrot.slane %v679_v45, 4  ;;  %v685_v62 = vrot.slane %v680_v49, 4 }
 0x386   : > { %v646_v59 = vadd.f32 %v644_v55, %v632_v50  ;;  %v658_v61 = vsel %vm655_vm11, %v656_v48, %v657_v51  ;;  %v707_v63 = vmul.f32 %v706_v37, %v5760_v34  ;;  %v708_v0 = vmul.f32 %v706_v37, %v5762_v35 }
 0x387   : > { %v672_v2 = vsel %vm669_vm12, %v670_v52, %v671_v53  ;;  %v698_v6 = vrot.slane %v693_v56, 5  ;;  %v699_v7 = vrot.slane %v694_v57, 5  ;;  %v721_v8 = vmul.f32 %v720_v58, %v5760_v34 }
 0x388   : > { %v660_v1 = vadd.f32 %v658_v61, %v646_v59  ;;  %v722_v9 = vmul.f32 %v720_v58, %v5762_v35  ;;  %v686_v11 = vsel %vm683_vm13, %v684_v60, %v685_v62  ;;  %v712_v12 = vrot.slane %v707_v63, 6 }
 0x389   : > { %v713_v13 = vrot.slane %v708_v0, 6  ;;  %v766_v29 = vrot.slane %v622_v54, %v5751_v25  ;;  %v700_v31 = vsel %vm697_vm14, %v698_v6, %v699_v7  ;;  %v726_v32 = vrot.slane %v721_v8, 7 }
 0x38a   : > { %v674_v10 = vadd.f32 %v672_v2, %v660_v1  ;;  %v727_v33 = vrot.slane %v722_v9, 7  ;;  %v741_v36 = vmul.f32 %v740_v4, %v5762_v35  ;;  %v734_v39 = vrot.slane %v622_v54, %v5742_v21 }
 0x38b   : > { %v779_v40 = vrot.slane %v622_v54, %v5739_v20  ;;  %v714_v41 = vsel %vm711_vm15, %v712_v12, %v713_v13  ;;  %v754_v42 = vmul.f32 %v753_v14, %v5762_v35  ;;  %v755_v43 = vmul.f32 %v753_v14, %v627_v5 }
 0x38c   : > { %v688_v17 = vadd.f32 %v686_v11, %v674_v10  ;;  %v768_v45 = vmul.f32 %v766_v29, %v627_v5  ;;  %v792_v46 = vrot.slane %v5799_v30, %v5742_v21  ;;  %v728_v47 = vsel %vm725_vm0, %v726_v32, %v727_v33 }
 0x38d   : > { %v745_v48 = vrot.slane %v741_v36, 1  ;;  %v746_v49 = vrot.slane %v742_v19, 1  ;;  %v767_v50 = vmul.f32 %v766_v29, %v5762_v35  ;;  %v735_v52 = vmul.f32 %v734_v39, %v5762_v35 }
 0x38e   : > { %v702_v37 = vadd.f32 %v700_v31, %v688_v17  ;;  %v780_v53 = vmul.f32 %v779_v40, %v5762_v35  ;;  %v781_v54 = vmul.f32 %v779_v40, %v627_v5  ;;  %v758_v55 = vrot.slane %v754_v42, 2 }
 0x38f   : > { %v759_v56 = vrot.slane %v755_v43, 2  ;;  %v805_v57 = vrot.slane %v5799_v30, %v5745_v22  ;;  %v772_v59 = vrot.slane %v768_v45, 3  ;;  %v793_v60 = vmul.f32 %v792_v46, %v5760_v34 }
 0x390   : > { %v716_v44 = vadd.f32 %v714_v41, %v702_v37  ;;  %v747_v61 = vsel %vm641_vm10, %v745_v48, %v746_v49  ;;  %v771_v62 = vrot.slane %v767_v50, 3  ;;  %v794_v63 = vmul.f32 %v792_v46, %v5762_v35 }
 0x391   : > { %v818_v0 = vrot.slane %v5799_v30, %v5748_v24  ;;  %v784_v2 = vrot.slane %v780_v53, 4  ;;  %v785_v4 = vrot.slane %v781_v54, 4  ;;  %v760_v5 = vsel %vm655_vm11, %v758_v55, %v759_v56  ;;  %v959_v54 = vld [vmem:[#allocation5 + $0x30] sm:$0xff]  ;;  %v961_v56 = vld [vmem:[#allocation5 + $0x40] sm:$0xff] }
 0x392   : > { %v730_v51 = vadd.f32 %v728_v47, %v716_v44  ;;  %v806_v6 = vmul.f32 %v805_v57, %v5760_v34  ;;  %v807_v7 = vmul.f32 %v805_v57, %v5762_v35  ;;  %v831_v8 = vrot.slane %v5799_v30, %v5751_v25  ;;  %v962_v57 = vld [vmem:[#allocation5 + $0x48] sm:$0xff] }
 0x393   : > { %v797_v10 = vrot.slane %v793_v60, 4  ;;  %v773_v11 = vsel %vm669_vm12, %v771_v62, %v772_v59  ;;  %v798_v12 = vrot.slane %v794_v63, 4  ;;  %v819_v13 = vmul.f32 %v818_v0, %v5760_v34  ;;  %v964_v59 = vld [vmem:[#allocation5 + $0x58] sm:$0xff]  ;;  %v966_v62 = vld [vmem:[#allocation5 + $0x68] sm:$0xff] }
 0x394   : > { %v736_v58 = vadd.f32 %v735_v52, %v730_v51  ;;  %v820_v14 = vmul.f32 %v818_v0, %v5762_v35  ;;  %v786_v19 = vsel %vm683_vm13, %v784_v2, %v785_v4  ;;  %v810_v29 = vrot.slane %v806_v6, 5  ;;  %v4045_v51 = vld [vmem:[%s6488_s5] ss:$0 sm:$0xff]  ;;  %v967_v0 = vld [vmem:[#allocation5 + $0x70] sm:$0xff] }
 0x395   : > { %v811_v31 = vrot.slane %v807_v7, 5  ;;  %v832_v32 = vmul.f32 %v831_v8, %v5760_v34  ;;  %v833_v33 = vmul.f32 %v831_v8, %v5762_v35  ;;  %v799_v37 = vsel %vm683_vm13, %v797_v10, %v798_v12  ;;  %v4046_v4 = vld [vmem:[%s6490_s7] ss:$0 sm:$0xff] }
 0x396   : > { %v749_v1 = vadd.f32 %v747_v61, %v736_v58  ;;  %v823_v39 = vrot.slane %v819_v13, 6  ;;  %v824_v40 = vrot.slane %v820_v14, 6  ;;  %v844_v46 = vrot.slane %v5799_v30, %v5739_v20  ;;  %v960_v30 = vld [vmem:[#allocation5 + $0x38] sm:$0xff]  ;;  %v965_v61 = vld [vmem:[#allocation5 + $0x60] sm:$0xff] }
 0x397   : > { %v812_v42 = vsel %vm697_vm14, %v810_v29, %v811_v31  ;;  %v836_v43 = vrot.slane %v832_v32, 7  ;;  %v837_v44 = vrot.slane %v833_v33, 7  ;;  %v4913_v55 = vpack.c.bf16 %v960_v30, %v959_v54  ;;  %v4053_v13 = vld [vmem:[%s6489_s6 + $0x80] sm:$0xff]  ;;  %v4054_v14 = vld [vmem:[%s6489_s6 + $0x88] sm:$0xff]  ;;  %v4056_v29 = vld [vmem:[%s6489_s6 + $0x98] sm:$0xff] }
 0x398   : > { %v762_v9 = vadd.f32 %v760_v5, %v749_v1  ;;  %v825_v47 = vsel %vm711_vm15, %v823_v39, %v824_v40  ;;  %v845_v50 = vmul.f32 %v844_v46, %v5762_v35  ;;  %v4916_v58 = vpack.c.bf16 %v962_v57, %v961_v56  ;;  %v963_v35 = vld [vmem:[#allocation5 + $0x50] sm:$0xff]  ;;  %v968_v1 = vld [vmem:[#allocation5 + $0x78] sm:$0xff]  ;;  %v4058_v33 = vld [vmem:[%s6489_s6 + $0xa8] sm:$0xff] }
 0x399   : > { %v838_v34 = vsel %vm725_vm0, %v836_v43, %v837_v44  ;;  %4914 = vmatpush3.bf16.msra.mxu0 %v4913_v55  ;;  %v4919_v60 = vpack.c.bf16 %v964_v59, %v963_v35  ;;  %v4922_v63 = vpack.c.bf16 %v966_v62, %v965_v61  ;;  %v4925_v2 = vpack.c.bf16 %v968_v1, %v967_v0  ;;  %v4057_v32 = vld [vmem:[%s6489_s6 + $0xa0] sm:$0xff]  ;;  %v4060_v39 = vld [vmem:[%s6489_s6 + $0xb8] sm:$0xff]  ;;  %v4063_v44 = vld [vmem:[%s6489_s6 + $0xd0] sm:$0xff] }
 0x39a   : > { %v775_v17 = vadd.f32 %v773_v11, %v762_v9  ;;  %4915 = vmatprep.subr.bf16.mxu0 %v5418_v23  ;;  %v1380_v54 = vld [vmem:[#allocation5 + $0x90] sm:$0xff]  ;;  %v1381_v55 = vld [vmem:[#allocation5 + $0x98] sm:$0xff]  ;;  %v1382_v57 = vld [vmem:[#allocation5 + $0xa0] sm:$0xff] }
 0x39b   : > { %v4955_v56 = vpack.c.bf16 %v1381_v55, %v1380_v54  ;;  %v4047_v59 = vld [vmem:[%s6492_s9] ss:$0 sm:$0xff]  ;;  %v4048_v0 = vld [vmem:[%s6486_s3 + $0x10] sm:$0xff] }
 0x39c   : > { %v788_v36 = vadd.f32 %v786_v19, %v775_v17  ;;  %v4055_v17 = vld [vmem:[%s6489_s6 + $0x90] sm:$0xff]  ;;  %v4928_v19 = vpack.c.bf16 %v4054_v14, %v4053_v13  ;;  %v1064_v1 = vrot.slane %v4048_v0, %v5745_v22 }
 0x39d   : > { %4917 = vmatpush3.bf16.msra.mxu0 %v4916_v58  ;;  %v4931_v31 = vpack.c.bf16 %v4056_v29, %v4055_v17  ;;  %v1383_v58 = vld [vmem:[#allocation5 + $0xa8] sm:$0xff] }
 0x39e   : > { %v801_v41 = vadd.f32 %v799_v37, %v788_v36  ;;  %4918 = vmatprep.subr.bf16.mxu0 %v5418_v23  ;;  %v4934_v36 = vpack.c.bf16 %v4058_v33, %v4057_v32  ;;  %v4059_v37 = vld [vmem:[%s6489_s6 + $0xb0] sm:$0xff]  ;;  %v4958_v35 = vpack.c.bf16 %v1383_v58, %v1382_v57 }
 0x39f   : > { %v4937_v40 = vpack.c.bf16 %v4060_v39, %v4059_v37  ;;  %v1142_v39 = vrot.slane %v4048_v0, %v719_v38 }
 0x3a0   : > { %v814_v45 = vadd.f32 %v812_v42, %v801_v41  ;;  %v4061_v41 = vld [vmem:[%s6489_s6 + $0xc0] sm:$0xff]  ;;  %v4062_v42 = vld [vmem:[%s6489_s6 + $0xc8] sm:$0xff] }
 0x3a1   : > { %4920 = vmatpush3.bf16.msra.mxu0 %v4919_v60  ;;  %v4940_v43 = vpack.c.bf16 %v4062_v42, %v4061_v41 }
 0x3a2   : > { %v827_v48 = vadd.f32 %v825_v47, %v814_v45  ;;  %4921 = vmatprep.subr.bf16.mxu0 %v5418_v23  ;;  %v4064_v45 = vld [vmem:[%s6489_s6 + $0xd8] sm:$0xff]  ;;  %v4065_v47 = vld [vmem:[%s6489_s6 + $0xe0] sm:$0xff] }
 0x3a3   : > { %v4943_v46 = vpack.c.bf16 %v4064_v45, %v4063_v44 }
 0x3a4   : > { %v840_v49 = vadd.f32 %v838_v34, %v827_v48  ;;  %v4066_v48 = vld [vmem:[%s6489_s6 + $0xe8] sm:$0xff] }
 0x3a5   : > { %4923 = vmatpush3.bf16.msra.mxu0 %v4922_v63  ;;  %v4946_v34 = vpack.c.bf16 %v4066_v48, %v4065_v47 }
 0x3a6   : > { %v846_v52 = vadd.f32 %v845_v50, %v840_v49  ;;  %4924 = vmatprep.subr.bf16.mxu0 %v5418_v23  ;;  %v4067_v49 = vld [vmem:[%s6489_s6 + $0xf0] sm:$0xff]  ;;  %v4068_v50 = vld [vmem:[%s6489_s6 + $0xf8] sm:$0xff] }
 0x3a8   : > { %v854_v53 = vadd.f32 %v4045_v51, %v846_v52  ;;  %v4949_v51 = vpack.c.bf16 %v4068_v50, %v4067_v49  ;;  %v1378_v52 = vld [vmem:[#allocation5 + $0x80] sm:$0xff]  ;;  %v1055_v50 = vld [vmem:[#allocation4 + $0x10] sm:$0xf] }
 0x3a9   : > { %4926 = vmatpush3.bf16.msra.mxu0 %v4925_v2  ;;  %v1077_v2 = vrot.slane %v4048_v0, %v5748_v24 }
 0x3aa   : > { %4414 = vmatmul.mubr.f32.vlgmr.msra.gmra.mrb[0].mxu1 %v854_v53  ;;  %4951 = vmatprep.subr.bf16.mxu0 %v5418_v23  ;;  %v1379_v53 = vld [vmem:[#allocation5 + $0x88] sm:$0xff] }
 0x3ab   : > { %4483 = vmatprep.mubr.msk.f32.mxu1 %vm5421_vm5, %v5420_v27  ;;  %4929 = vmatpush3.bf16.msra.mxu1 %v4928_v19  ;;  %v4952_v30 = vpack.c.bf16 %v1379_v53, %v1378_v52 }
 0x3ac   : > { %4930 = vmatprep.subr.bf16.mxu1 %v5418_v23 }
 0x3af   : > { %4932 = vmatpush3.bf16.msra.mxu1 %v4931_v31 }
 0x3b0   : > { %4933 = vmatprep.subr.bf16.mxu1 %v5418_v23 }
 0x3b3   : > { %4935 = vmatpush3.bf16.msra.mxu1 %v4934_v36 }
 0x3b4   : > { %4936 = vmatprep.subr.bf16.mxu1 %v5418_v23 }
 0x3b7   : > { %4938 = vmatpush3.bf16.msra.mxu1 %v4937_v40  ;;  %v4049_v40 = vld [vmem:[%s6486_s3 + $0x18] sm:$0x1f] }
 0x3b8   : > { %4939 = vmatprep.subr.bf16.mxu1 %v5418_v23  ;;  %v1161_v49 = vrot.slane %v4049_v40, %v5745_v22  ;;  %v1174_v58 = vrot.slane %v4049_v40, %v5748_v24 }
 0x3bb   : > { %4941 = vmatpush3.bf16.msra.mxu1 %v4940_v43 }
 0x3bc   : > { %4942 = vmatprep.subr.bf16.mxu1 %v5418_v23 }
 0x3bf   : > { %4944 = vmatpush3.bf16.msra.mxu1 %v4943_v46 }
 0x3c0   : > { %4945 = vmatprep.subr.bf16.mxu1 %v5418_v23 }
 0x3c3   : > { %4947 = vmatpush3.bf16.msra.mxu1 %v4946_v34 }
 0x3c4   : > { %4948 = vmatprep.subr.bf16.mxu1 %v5418_v23 }
 0x3c7   : > { %4950 = vmatpush3.bf16.msra.mxu1 %v4949_v51 }
 0x3c8   : > { %4975 = vmatprep.subr.bf16.mxu1 %v5418_v23 }
 0x47d   : > { %v944_v5 = vpop.f32.mrb[0].mxu1 }
 0x47e   : > { %v945_v6 = vadd.f32 %v4046_v4, %v944_v5  ;;  %v4415_v7 = vpop.f32.mrb[1].mxu1  ;;  %v1090_v4 = vrot.slane %v4048_v0, %v5751_v25  ;;  %v1103_v5 = vrot.slane %v4048_v0, %v5739_v20 }
 0x480   : > { %v949_v8 = vmul.f32 0.70710677, %v945_v6  ;;  %v948_v10 = vmul.f32 0.5, %v945_v6  ;;  %v1116_v6 = vrot.slane %v4048_v0, %v691_v26 }
 0x482   : > { %5305 = verf.f32 %v949_v8  ;;  %v1059_v8 = vrot.slane %v4048_v0, %v5742_v21 }
 0x48c   : > { %v5306_v9 = vpop.eup %5305 }
 0x48d   : > { %v951_v11 = vadd.f32 1.0, %v5306_v9  ;;  %v1129_v9 = vrot.slane %v4048_v0, %v705_v28 }
 0x48f   : > { %v952_v12 = vmul.f32 %v951_v11, %v948_v10 }
 0x491   : > { %4449 = vmatmul.mubr.f32.vlgmr.msra.gmra.mrb[2].mxu0 %v952_v12 }
 0x492   : > { %4518 = vmatprep.mubr.msk.f32.mxu0 %vm5421_vm5, %v5420_v27  ;;  %4953 = vmatpush3.bf16.msra.mxu0 %v4952_v30 }
 0x493   : > { %4954 = vmatprep.subr.bf16.mxu0 %v5418_v23 }
 0x496   : > { %4956 = vmatpush3.bf16.msra.mxu0 %v4955_v56 }
 0x497   : > { %4957 = vmatprep.subr.bf16.mxu0 %v5418_v23 }
 0x49a   : > { %4959 = vmatpush3.bf16.msra.mxu0 %v4958_v35 }
 0x49b   : > { %4960 = vmatprep.subr.bf16.mxu0 %v5418_v23 }
 0x564   : > { %v1042_v60 = vpop.f32.mrb[2].mxu0 }
 0x565   : > { %v1043_v61 = vadd.f32 %v4047_v59, %v1042_v60  ;;  %v4450_v62 = vpop.f32.mrb[3].mxu0  ;;  %v1163_v59 = vmul.f32 %v1161_v49, %v1055_v50  ;;  %v1187_v60 = vrot.slane %v4049_v40, %v5751_v25 }
 0x567   : > { %v5916_v63 = vadd.f32 %v1043_v61, %v5730_v16  ;;  %v5965_v61 = vld [vmem:[%s6487_s4 + $0x8] sm:$0x1f] }
 0x569   : > { %1052 = vst [vmem:[#allocation4 + $0x6] sm:$0xff] %v5916_v63 }
 0x570   : > { %v5928_v7 = vld [vmem:[#allocation4] sm:$0xff]  ;;  %v5930_v16 = vld [vmem:[#allocation4 + $0x8] sm:$0xff] }
 0x571   : > { %v1065_v10 = vmul.f32 %v1064_v1, %v5928_v7  ;;  %v1066_v11 = vmul.f32 %v1064_v1, %v5930_v16  ;;  %v1078_v12 = vmul.f32 %v1077_v2, %v5928_v7  ;;  %v1079_v13 = vmul.f32 %v1077_v2, %v5930_v16 }
 0x572   : > { %v1091_v14 = vmul.f32 %v1090_v4, %v5928_v7  ;;  %v1092_v26 = vmul.f32 %v1090_v4, %v5930_v16  ;;  %v1104_v17 = vmul.f32 %v1103_v5, %v5928_v7  ;;  %v1105_v32 = vmul.f32 %v1103_v5, %v5930_v16 }
 0x573   : > { %v1069_v19 = vrot.slane %v1065_v10, 1  ;;  %v1070_v29 = vrot.slane %v1066_v11, 1  ;;  %v1082_v31 = vrot.slane %v1078_v12, 2  ;;  %v1060_v28 = vmul.f32 %v1059_v8, %v5928_v7 }
 0x574   : > { %v1083_v33 = vrot.slane %v1079_v13, 2  ;;  %v1095_v36 = vrot.slane %v1091_v14, 3  ;;  %v1096_v37 = vrot.slane %v1092_v26, 3  ;;  %v1117_v42 = vmul.f32 %v1116_v6, %v5928_v7 }
 0x575   : > { %v1071_v41 = vsel %vm641_vm10, %v1069_v19, %v1070_v29  ;;  %v1118_v43 = vmul.f32 %v1116_v6, %v5930_v16  ;;  %v1108_v45 = vrot.slane %v1104_v17, 4  ;;  %v1109_v47 = vrot.slane %v1105_v32, 4 }
 0x576   : > { %v1073_v44 = vadd.f32 %v1071_v41, %v1060_v28  ;;  %v1084_v46 = vsel %vm655_vm11, %v1082_v31, %v1083_v33  ;;  %v1130_v48 = vmul.f32 %v1129_v9, %v5928_v7  ;;  %v1131_v18 = vmul.f32 %v1129_v9, %v5930_v16 }
 0x577   : > { %v1097_v34 = vsel %vm669_vm12, %v1095_v36, %v1096_v37  ;;  %v1121_v51 = vrot.slane %v1117_v42, 5  ;;  %v1122_v52 = vrot.slane %v1118_v43, 5  ;;  %v1143_v53 = vmul.f32 %v1142_v39, %v5928_v7 }
 0x578   : > { %v1086_v38 = vadd.f32 %v1084_v46, %v1073_v44  ;;  %v1144_v54 = vmul.f32 %v1142_v39, %v5930_v16  ;;  %v1110_v55 = vsel %vm683_vm13, %v1108_v45, %v1109_v47  ;;  %v1134_v56 = vrot.slane %v1130_v48, 6 }
 0x579   : > { %v1135_v57 = vrot.slane %v1131_v18, 6  ;;  %v1123_v62 = vsel %vm697_vm14, %v1121_v51, %v1122_v52  ;;  %v1147_v0 = vrot.slane %v1143_v53, 7  ;;  %v1162_v2 = vmul.f32 %v1161_v49, %v5930_v16 }
 0x57a   : > { %v1099_v30 = vadd.f32 %v1097_v34, %v1086_v38  ;;  %v1148_v1 = vrot.slane %v1144_v54, 7  ;;  %v1155_v5 = vrot.slane %v4049_v40, %v5742_v21  ;;  %v1200_v6 = vrot.slane %v4049_v40, %v5739_v20 }
 0x57b   : > { %v1136_v8 = vsel %vm711_vm15, %v1134_v56, %v1135_v57  ;;  %v1175_v9 = vmul.f32 %v1174_v58, %v5930_v16  ;;  %v1176_v10 = vmul.f32 %v1174_v58, %v1055_v50  ;;  %v1189_v12 = vmul.f32 %v1187_v60, %v1055_v50 }
 0x57c   : > { %v1112_v35 = vadd.f32 %v1110_v55, %v1099_v30  ;;  %v1213_v13 = vrot.slane %v5965_v61, %v5742_v21  ;;  %v1149_v14 = vsel %vm725_vm0, %v1147_v0, %v1148_v1  ;;  %v1166_v26 = vrot.slane %v1162_v2, 1 }
 0x57d   : > { %v1167_v17 = vrot.slane %v1163_v59, 1  ;;  %v1188_v19 = vmul.f32 %v1187_v60, %v5930_v16  ;;  %v1156_v31 = vmul.f32 %v1155_v5, %v5930_v16  ;;  %v1201_v32 = vmul.f32 %v1200_v6, %v5930_v16 }
 0x57e   : > { %v1125_v4 = vadd.f32 %v1123_v62, %v1112_v35  ;;  %v1202_v28 = vmul.f32 %v1200_v6, %v1055_v50  ;;  %v1179_v33 = vrot.slane %v1175_v9, 2  ;;  %v1180_v36 = vrot.slane %v1176_v10, 2 }
 0x57f   : > { %v1226_v37 = vrot.slane %v5965_v61, %v5745_v22  ;;  %v1214_v21 = vmul.f32 %v1213_v13, %v5928_v7  ;;  %v1239_v40 = vrot.slane %v5965_v61, %v5748_v24  ;;  %v1168_v41 = vsel %vm641_vm10, %v1166_v26, %v1167_v17  ;;  %v1384_v17 = vld [vmem:[#allocation5 + $0xb0] sm:$0xff] }
 0x580   : > { %v1138_v11 = vadd.f32 %v1136_v8, %v1125_v4  ;;  %v1192_v42 = vrot.slane %v1188_v19, 3  ;;  %v1193_v43 = vrot.slane %v1189_v12, 3  ;;  %v1215_v44 = vmul.f32 %v1213_v13, %v5930_v16  ;;  %v4052_v13 = vld [vmem:[%s6488_s5 + $0x1] ss:$0 sm:$0xff]  ;;  %v1386_v19 = vld [vmem:[#allocation5 + $0xc0] sm:$0xff] }
 0x581   : > { %v1205_v46 = vrot.slane %v1201_v32, 4  ;;  %v1206_v47 = vrot.slane %v1202_v28, 4  ;;  %v1181_v48 = vsel %vm655_vm11, %v1179_v33, %v1180_v36  ;;  %v1227_v18 = vmul.f32 %v1226_v37, %v5928_v7  ;;  %v1389_v32 = vld [vmem:[#allocation5 + $0xd8] sm:$0xff]  ;;  %v1474_v33 = vld [vmem:[%s6493_s10 + $0x8] sm:$0xff] }
 0x582   : > { %v1151_v29 = vadd.f32 %v1149_v14, %v1138_v11  ;;  %v1228_v38 = vmul.f32 %v1226_v37, %v5930_v16  ;;  %v1252_v34 = vrot.slane %v5965_v61, %v5751_v25  ;;  %v1218_v50 = vrot.slane %v1214_v21, 4  ;;  %v1473_v28 = vld [vmem:[%s6493_s10] sm:$0xff]  ;;  %v1391_v21 = vld [vmem:[#allocation5 + $0xe8] sm:$0xff] }
 0x583   : > { %v1194_v51 = vsel %vm669_vm12, %v1192_v42, %v1193_v43  ;;  %v1219_v52 = vrot.slane %v1215_v44, 4  ;;  %v1240_v53 = vmul.f32 %v1239_v40, %v5928_v7  ;;  %v1241_v54 = vmul.f32 %v1239_v40, %v5930_v16  ;;  %v1393_v42 = vld [vmem:[#allocation5 + $0xf8] sm:$0xff] }
 0x584   : > { %v1157_v39 = vadd.f32 %v1156_v31, %v1151_v29  ;;  %v1207_v55 = vsel %vm683_vm13, %v1205_v46, %v1206_v47  ;;  %v1231_v56 = vrot.slane %v1227_v18, 5  ;;  %v1232_v57 = vrot.slane %v1228_v38, 5  ;;  %v1387_v29 = vld [vmem:[#allocation5 + $0xc8] sm:$0xff]  ;;  %v4070_v44 = vld [vmem:[%s6490_s7 + $0x1] ss:$0 sm:$0xff] }
 0x585   : > { %v1253_v58 = vmul.f32 %v1252_v34, %v5928_v7  ;;  %v1254_v35 = vmul.f32 %v1252_v34, %v5930_v16  ;;  %v1220_v60 = vsel %vm683_vm13, %v1218_v50, %v1219_v52  ;;  %v1244_v62 = vrot.slane %v1240_v53, 6  ;;  %v1475_v50 = vld [vmem:[%s6493_s10 + $0x10] sm:$0xff]  ;;  %v4072_v53 = vld [vmem:[%s6492_s9 + $0x1] ss:$0 sm:$0xff] }
 0x586   : > { %v1170_v45 = vadd.f32 %v1168_v41, %v1157_v39  ;;  %v1245_v0 = vrot.slane %v1241_v54, 6  ;;  %v1233_v2 = vsel %vm697_vm14, %v1231_v56, %v1232_v57  ;;  %v1265_v8 = vrot.slane %v5965_v61, %v5739_v20  ;;  %v1385_v20 = vld [vmem:[#allocation5 + $0xb8] sm:$0xff]  ;;  %v1390_v39 = vld [vmem:[#allocation5 + $0xe0] sm:$0xff]  ;;  %v1392_v41 = vld [vmem:[#allocation5 + $0xf0] sm:$0xff] }
 0x587   : > { %v1257_v4 = vrot.slane %v1253_v58, 7  ;;  %v1258_v5 = vrot.slane %v1254_v35, 7  ;;  %v4961_v61 = vpack.c.bf16 %v1385_v20, %v1384_v17  ;;  %v4964_v31 = vpack.c.bf16 %v1387_v29, %v1386_v19  ;;  %v4073_v54 = vld [vmem:[%s6493_s10 + $0x20] sm:$0xff]  ;;  %v4083_v17 = vld [vmem:[%s6493_s10 + $0x70] sm:$0xff]  ;;  %v4084_v20 = vld [vmem:[%s6493_s10 + $0x78] sm:$0xff] }
 0x588   : > { %v1183_v49 = vadd.f32 %v1181_v48, %v1170_v45  ;;  %v1246_v9 = vsel %vm711_vm15, %v1244_v62, %v1245_v0  ;;  %v1266_v12 = vmul.f32 %v1265_v8, %v5930_v16  ;;  %v1388_v16 = vld [vmem:[#allocation5 + $0xd0] sm:$0xff]  ;;  %v6016_v37 = vpack.c.bf16 %v1474_v33, %v1473_v28  ;;  %v4085_v19 = vld [vmem:[%s6493_s10 + $0x80] sm:$0xff]  ;;  %v4086_v29 = vld [vmem:[%s6493_s10 + $0x88] sm:$0xff] }
 0x589   : > { %v1259_v7 = vsel %vm725_vm0, %v1257_v4, %v1258_v5  ;;  %4962 = vmatpush3.bf16.msra.mxu0 %v4961_v61  ;;  %v4967_v36 = vpack.c.bf16 %v1389_v32, %v1388_v16  ;;  %v4970_v40 = vpack.c.bf16 %v1391_v21, %v1390_v39  ;;  %v4973_v43 = vpack.c.bf16 %v1393_v42, %v1392_v41  ;;  %v4079_v8 = vld [vmem:[%s6493_s10 + $0x50] sm:$0xff]  ;;  %v4088_v32 = vld [vmem:[%s6493_s10 + $0x98] sm:$0xff]  ;;  %v4089_v33 = vld [vmem:[%s6493_s10 + $0xa0] sm:$0xff] }
 0x58a   : > { %v1196_v30 = vadd.f32 %v1194_v51, %v1183_v49  ;;  %4963 = vmatprep.subr.bf16.mxu0 %v5418_v23  ;;  %v1476_v51 = vld [vmem:[%s6493_s10 + $0x18] sm:$0xff]  ;;  %v6127_v61 = vpack.c.bf16 %v4084_v20, %v4083_v17  ;;  %v4087_v16 = vld [vmem:[%s6493_s10 + $0x90] sm:$0xff]  ;;  %v4093_v42 = vld [vmem:[%s6493_s10 + $0xc0] sm:$0xff]  ;;  %v2713_v17 = vrot.slane %v5587_v15, %v5745_v22 }
 0x58b   : > { %v6037_v52 = vpack.c.bf16 %v1476_v51, %v1475_v50  ;;  %v6154_v28 = vpack.c.bf16 %v4088_v32, %v4087_v16  ;;  %v4091_v21 = vld [vmem:[%s6493_s10 + $0xb0] sm:$0xff]  ;;  %v3327_v32 = vrot.slane %v5587_v15, %v5748_v24 }
 0x58c   : > { %v1209_v59 = vadd.f32 %v1207_v55, %v1196_v30  ;;  %v4074_v30 = vld [vmem:[%s6493_s10 + $0x28] sm:$0xff] }
 0x58d   : > { %4965 = vmatpush3.bf16.msra.mxu0 %v4964_v31  ;;  %v6052_v58 = vpack.c.bf16 %v4074_v30, %v4073_v54  ;;  %v6141_v31 = vpack.c.bf16 %v4086_v29, %v4085_v19  ;;  %v2720_v19 = vrot.slane %v5583_v3, %v5745_v22 }
 0x58e   : > { %v1222_v1 = vadd.f32 %v1220_v60, %v1209_v59  ;;  %4966 = vmatprep.subr.bf16.mxu0 %v5418_v23  ;;  %v4075_v59 = vld [vmem:[%s6493_s10 + $0x30] sm:$0xff]  ;;  %v4076_v60 = vld [vmem:[%s6493_s10 + $0x38] sm:$0xff] }
 0x58f   : > { %v6064_v0 = vpack.c.bf16 %v4076_v60, %v4075_v59 }
 0x590   : > { %v1235_v6 = vadd.f32 %v1233_v2, %v1222_v1  ;;  %v4077_v1 = vld [vmem:[%s6493_s10 + $0x40] sm:$0xff]  ;;  %v4078_v2 = vld [vmem:[%s6493_s10 + $0x48] sm:$0xff] }
 0x591   : > { %4968 = vmatpush3.bf16.msra.mxu0 %v4967_v36  ;;  %v6078_v5 = vpack.c.bf16 %v4078_v2, %v4077_v1  ;;  %v4090_v36 = vld [vmem:[%s6493_s10 + $0xa8] sm:$0xff] }
 0x592   : > { %v1248_v10 = vadd.f32 %v1246_v9, %v1235_v6  ;;  %4969 = vmatprep.subr.bf16.mxu0 %v5418_v23  ;;  %v4080_v9 = vld [vmem:[%s6493_s10 + $0x58] sm:$0xff]  ;;  %v6168_v39 = vpack.c.bf16 %v4090_v36, %v4089_v33  ;;  %v3333_v36 = vrot.slane %v5583_v3, %v5748_v24 }
 0x594   : > { %v1261_v11 = vadd.f32 %v1259_v7, %v1248_v10  ;;  %v6093_v7 = vpack.c.bf16 %v4080_v9, %v4079_v8 }
 0x595   : > { %4971 = vmatpush3.bf16.msra.mxu0 %v4970_v40  ;;  %v4092_v40 = vld [vmem:[%s6493_s10 + $0xb8] sm:$0xff] }
 0x596   : > { %v1267_v14 = vadd.f32 %v1266_v12, %v1261_v11  ;;  %4972 = vmatprep.subr.bf16.mxu0 %v5418_v23  ;;  %v4081_v12 = vld [vmem:[%s6493_s10 + $0x60] sm:$0xff]  ;;  %v6181_v41 = vpack.c.bf16 %v4092_v40, %v4091_v21  ;;  %v3940_v40 = vrot.slane %v5587_v15, %v5751_v25 }
 0x598   : > { %v1276_v26 = vadd.f32 %v4052_v13, %v1267_v14  ;;  %v4082_v13 = vld [vmem:[%s6493_s10 + $0x68] sm:$0xff] }
 0x599   : > { %4974 = vmatpush3.bf16.msra.mxu0 %v4973_v43  ;;  %v4094_v43 = vld [vmem:[%s6493_s10 + $0xc8] sm:$0xff] }
 0x59a   : > { %4484 = vmatmul.mubr.f32.vlgmr.msra.gmra.mrb[2].mxu1 %v1276_v26  ;;  %5023 = vmatprep.subr.bf16.mxu0 %v5418_v23  ;;  %v6113_v26 = vpack.c.bf16 %v4082_v13, %v4081_v12 }
 0x59b   : > { %4529 = vmatprep.mubr.msk.f32.mxu1 %vm5421_vm5, %v5420_v27  ;;  %4977 = vmatpush3.bf16.msra.mxu1 %v6016_v37 }
 0x59c   : > { %4978 = vmatprep.subr.bf16.mxu1 %v5418_v23 }
 0x59f   : > { %4980 = vmatpush3.bf16.msra.mxu1 %v6037_v52 }
 0x5a0   : > { %4981 = vmatprep.subr.bf16.mxu1 %v5418_v23 }
 0x66d   : > { %v1368_v45 = vpop.f32.mrb[2].mxu1 }
 0x66e   : > { %v1369_v46 = vadd.f32 %v4070_v44, %v1368_v45  ;;  %v4485_v47 = vpop.f32.mrb[3].mxu1  ;;  %v6196_v44 = vpack.c.bf16 %v4094_v43, %v4093_v42  ;;  %v4095_v45 = vld [vmem:[%s6493_s10 + $0xd0] sm:$0xff]  ;;  %v3946_v43 = vrot.slane %v5583_v3, %v5751_v25 }
 0x670   : > { %v1373_v48 = vmul.f32 0.70710677, %v1369_v46  ;;  %v1372_v38 = vmul.f32 0.5, %v1369_v46  ;;  %v4096_v46 = vld [vmem:[%s6493_s10 + $0xd8] sm:$0xff] }
 0x671   : > { %v6212_v47 = vpack.c.bf16 %v4096_v46, %v4095_v45 }
 0x672   : > { %5307 = verf.f32 %v1373_v48  ;;  %v4097_v48 = vld [vmem:[%s6493_s10 + $0xe0] sm:$0xff] }
 0x67c   : > { %v5308_v18 = vpop.eup %5307 }
 0x67d   : > { %v1375_v34 = vadd.f32 1.0, %v5308_v18  ;;  %v4098_v18 = vld [vmem:[%s6493_s10 + $0xe8] sm:$0xff] }
 0x67f   : > { %v1376_v49 = vmul.f32 %v1375_v34, %v1372_v38  ;;  %v6228_v38 = vpack.c.bf16 %v4098_v18, %v4097_v48  ;;  %v4099_v34 = vld [vmem:[%s6493_s10 + $0xf0] sm:$0xff] }
 0x681   : > { %4519 = vmatmul.mubr.f32.vlgmr.msra.gmra.mrb[4].mxu0 %v1376_v49  ;;  %v4100_v49 = vld [vmem:[%s6493_s10 + $0xf8] sm:$0xff] }
 0x682   : > { %5025 = vmatpush3.bf16.msra.mxu0 %v6016_v37  ;;  %4617 = vmatprep.mubr.msk.f32.mxu0 %vm5421_vm5, %v5420_v27  ;;  %v6242_v50 = vpack.c.bf16 %v4100_v49, %v4099_v34 }
 0x683   : > { %5026 = vmatprep.subr.bf16.mxu0 %v5418_v23 }
 0x686   : > { %5028 = vmatpush3.bf16.msra.mxu0 %v6037_v52 }
 0x687   : > { %5029 = vmatprep.subr.bf16.mxu0 %v5418_v23 }
 0x754   : > { %v1468_v55 = vpop.f32.mrb[4].mxu0 }
 0x755   : > { %v1469_v56 = vadd.f32 %v4072_v53, %v1468_v55  ;;  %v4520_v57 = vpop.f32.mrb[5].mxu0 }
 0x757   : > { %v1472_v35 = vadd.f32 %v1469_v56, %v5916_v63 }
 0x759   : > { %2109 = vrot.lane.b32.xlu1 %v1472_v35, %s5425_s23  ;;  %4530 = vmatmul.mubr.msk.f32.vlgmr.msra.gmra.mrb[4].mxu1 %vm544_vm9, %v1472_v35  ;;  %v1587_v62 = vrot.slane %v1472_v35, 1  ;;  %v1661_v63 = vrot.slane %v1472_v35, 2  ;;  %v1735_v4 = vrot.slane %v1472_v35, 3  ;;  %v1809_v6 = vrot.slane %v1472_v35, 4 }
 0x75a   : > { %4983 = vmatpush3.bf16.msra.mxu1 %v6052_v58  ;;  %4540 = vmatprep.mubr.msk.f32.mxu1 %vm5421_vm5, %v5420_v27  ;;  %v6090_v10 = vrot.slane %v1472_v35, 5  ;;  %v6099_v11 = vrot.slane %v1472_v35, 6  ;;  %v6110_v14 = vrot.slane %v1472_v35, 7 }
 0x75b   : > { %2184 = vrot.lane.b32.xlu0 %v1587_v62, %s5425_s23  ;;  %4984 = vmatprep.subr.bf16.mxu1 %v5418_v23 }
 0x75d   : > { %2259 = vrot.lane.b32.xlu1 %v1661_v63, %s5425_s23 }
 0x75e   : > { %4986 = vmatpush3.bf16.msra.mxu1 %v6064_v0 }
 0x75f   : > { %2334 = vrot.lane.b32.xlu0 %v1735_v4, %s5425_s23  ;;  %4987 = vmatprep.subr.bf16.mxu1 %v5418_v23 }
 0x761   : > { %2409 = vrot.lane.b32.xlu1 %v1809_v6, %s5425_s23  ;;  %4541 = vmatmul.mubr.msk.f32.vlgmr.msra.gmra.mrb[4].mxu1 %vm544_vm9, %v1587_v62 }
 0x762   : > { %4989 = vmatpush3.bf16.msra.mxu1 %v6078_v5  ;;  %4551 = vmatprep.mubr.msk.f32.mxu1 %vm5421_vm5, %v5420_v27 }
 0x763   : > { %2484 = vrot.lane.b32.xlu0 %v6090_v10, %s5425_s23  ;;  %4990 = vmatprep.subr.bf16.mxu1 %v5418_v23 }
 0x765   : > { %2559 = vrot.lane.b32.xlu1 %v6099_v11, %s5425_s23 }
 0x766   : > { %4992 = vmatpush3.bf16.msra.mxu1 %v6093_v7 }
 0x767   : > { %2634 = vrot.lane.b32.xlu0 %v6110_v14, %s5425_s23  ;;  %4993 = vmatprep.subr.bf16.mxu1 %v5418_v23  ;;  %s5427_s23 = smov 32  }
 0x769   : > { %2724 = vrot.lane.b32.xlu1 %v1472_v35, %s5426_s19  ;;  %4552 = vmatmul.mubr.msk.f32.vlgmr.msra.gmra.mrb[4].mxu1 %vm544_vm9, %v1661_v63 }
 0x76a   : > { %4995 = vmatpush3.bf16.msra.mxu1 %v6113_v26  ;;  %4562 = vmatprep.mubr.msk.f32.mxu1 %vm5421_vm5, %v5420_v27 }
 0x76b   : > { %3337 = vrot.lane.b32.xlu0 %v1472_v35, %s5427_s23  ;;  %4996 = vmatprep.subr.bf16.mxu1 %v5418_v23 }
 0x76d   : > { %2799 = vrot.lane.b32.xlu1 %v1587_v62, %s5426_s19 }
 0x76e   : > { %4998 = vmatpush3.bf16.msra.mxu1 %v6127_v61 }
 0x76f   : > { %3412 = vrot.lane.b32.xlu0 %v1587_v62, %s5427_s23  ;;  %4999 = vmatprep.subr.bf16.mxu1 %v5418_v23 }
 0x771   : > { %2874 = vrot.lane.b32.xlu1 %v1661_v63, %s5426_s19  ;;  %4563 = vmatmul.mubr.msk.f32.vlgmr.msra.gmra.mrb[4].mxu1 %vm544_vm9, %v1735_v4 }
 0x772   : > { %5001 = vmatpush3.bf16.msra.mxu1 %v6141_v31  ;;  %4573 = vmatprep.mubr.msk.f32.mxu1 %vm5421_vm5, %v5420_v27 }
 0x773   : > { %3487 = vrot.lane.b32.xlu0 %v1661_v63, %s5427_s23  ;;  %5002 = vmatprep.subr.bf16.mxu1 %v5418_v23 }
 0x775   : > { %2949 = vrot.lane.b32.xlu1 %v1735_v4, %s5426_s19 }
 0x776   : > { %5004 = vmatpush3.bf16.msra.mxu1 %v6154_v28 }
 0x777   : > { %3562 = vrot.lane.b32.xlu0 %v1735_v4, %s5427_s23  ;;  %5005 = vmatprep.subr.bf16.mxu1 %v5418_v23 }
 0x779   : > { %3024 = vrot.lane.b32.xlu1 %v1809_v6, %s5426_s19  ;;  %4574 = vmatmul.mubr.msk.f32.vlgmr.msra.gmra.mrb[4].mxu1 %vm544_vm9, %v1809_v6 }
 0x77a   : > { %5007 = vmatpush3.bf16.msra.mxu1 %v6168_v39  ;;  %4584 = vmatprep.mubr.msk.f32.mxu1 %vm5421_vm5, %v5420_v27 }
 0x77b   : > { %3637 = vrot.lane.b32.xlu0 %v1809_v6, %s5427_s23  ;;  %5008 = vmatprep.subr.bf16.mxu1 %v5418_v23 }
 0x77d   : > { %3099 = vrot.lane.b32.xlu1 %v6090_v10, %s5426_s19 }
 0x77e   : > { %5010 = vmatpush3.bf16.msra.mxu1 %v6181_v41 }
 0x77f   : > { %3712 = vrot.lane.b32.xlu0 %v6090_v10, %s5427_s23  ;;  %5011 = vmatprep.subr.bf16.mxu1 %v5418_v23 }
 0x781   : > { %3174 = vrot.lane.b32.xlu1 %v6099_v11, %s5426_s19  ;;  %4585 = vmatmul.mubr.msk.f32.vlgmr.msra.gmra.mrb[4].mxu1 %vm544_vm9, %v6090_v10 }
 0x782   : > { %5013 = vmatpush3.bf16.msra.mxu1 %v6196_v44  ;;  %4595 = vmatprep.mubr.msk.f32.mxu1 %vm5421_vm5, %v5420_v27 }
 0x783   : > { %3787 = vrot.lane.b32.xlu0 %v6099_v11, %s5427_s23  ;;  %5014 = vmatprep.subr.bf16.mxu1 %v5418_v23 }
 0x785   : > { %3249 = vrot.lane.b32.xlu1 %v6110_v14, %s5426_s19  ;;  %s417_s19 = sand.u32 1, %s5395_s22  }
 0x786   : > { %5016 = vmatpush3.bf16.msra.mxu1 %v6212_v47  ;;  %s4041_s16 = sshll.u32 %s417_s19, 2  ;;  %s3951_s25 = scalar_lea.sflag [#allocation7], %s417_s19 }
 0x787   : > { %3862 = vrot.lane.b32.xlu0 %v6110_v14, %s5427_s23  ;;  %5017 = vmatprep.subr.bf16.mxu1 %v5418_v23  ;;  %s419_s15 = scalar_lea.vmem [#allocation8], %s4041_s16  ;;  %s5428_s23 = smov [#allocation8]  }
 0x788   : > { %s3964_s20 = sshll.u32 %s419_s15, 4  ;;  %s5341_s18 = sshll.u32 %s5428_s23, 4  ;;  %s6440_s20 = int_to_ptr.vmem [resolvable:$true] %s3964_s20  ;;  %s5342_s18 = int_to_ptr.vmem [resolvable:$false] %s5341_s18 }
 0x789   : > { %4596 = vmatmul.mubr.msk.f32.vlgmr.msra.gmra.mrb[4].mxu1 %vm544_vm9, %v6099_v11  ;;  %s5337_s26 = scalar_lea.vmem %s6440_s20, 64  ;;  %s5343_s16 = scalar_lea.vmem %s5342_s18, 128 }
 0x78a   : > { %5019 = vmatpush3.bf16.msra.mxu1 %v6228_v38  ;;  %4606 = vmatprep.mubr.msk.f32.mxu1 %vm5421_vm5, %v5420_v27  ;;  %p5338_p6 = scmp.ne.s32.totalorder %s6440_s20, %s5337_s26  ;;  %p5344_p2 = scmp.lt.s32.totalorder %s6440_s20, %s5342_s18 }
 0x78b   : > { %5020 = vmatprep.subr.bf16.mxu1 %v5418_v23  ;;  %p5345_p3 = scmp.lt.s32.totalorder %s5343_s16, %s5337_s26 }
 0x78c   : > { %p5339_p10 = pnand %p5338_p6, %p6509_p9 }
 0x78d   : > { %p5346_p4 = por %p5345_p3, %p5344_p2 }
 0x78e   : > { %5022 = vmatpush3.bf16.msra.mxu1 %v6242_v50  ;;  %p5340_p12 = pneg %p5339_p10 }
 0x78f   : > { %5071 = vmatprep.subr.bf16.mxu1 %v5418_v23 }
 0x790   : > { %p5347_p7 = pnand %p5346_p4, %p5340_p12 }
 0x791   : > { %4607 = vmatmul.mubr.msk.f32.vlgmr.msra.gmra.mrb[4].mxu1 %vm544_vm9, %v6110_v14 }
 0x792   : > { %5073 = vmatpush3.bf16.msra.mxu1 %v6016_v37  ;;  %4705 = vmatprep.mubr.msk.f32.mxu1 %vm5421_vm5, %v5420_v27 }
 0x793   : > { %5074 = vmatprep.subr.bf16.mxu1 %v5418_v23 }
 0x796   : > { %5076 = vmatpush3.bf16.msra.mxu1 %v6037_v52 }
 0x797   : > { %5077 = vmatprep.subr.bf16.mxu1 %v5418_v23 }
 0x7cb   : > { %v2110_v51 = vpop.permute.xlu1 %2109 }
 0x7cc   : > { %4618 = vmatmul.mubr.msk.f32.vlgmr.msra.gmra.mrb[6].mxu0 %vm544_vm9, %v2110_v51 }
 0x7cd   : > { %5031 = vmatpush3.bf16.msra.mxu0 %v6052_v58  ;;  %4628 = vmatprep.mubr.msk.f32.mxu0 %vm5421_vm5, %v5420_v27  ;;  %v2185_v54 = vpop.permute.xlu0 %2184 }
 0x7ce   : > { %5032 = vmatprep.subr.bf16.mxu0 %v5418_v23 }
 0x7cf   : > { %v2260_v53 = vpop.permute.xlu1 %2259 }
 0x7d1   : > { %5034 = vmatpush3.bf16.msra.mxu0 %v6064_v0  ;;  %v2335_v57 = vpop.permute.xlu0 %2334 }
 0x7d2   : > { %5035 = vmatprep.subr.bf16.mxu0 %v5418_v23 }
 0x7d3   : > { %v2410_v30 = vpop.permute.xlu1 %2409 }
 0x7d4   : > { %4629 = vmatmul.mubr.msk.f32.vlgmr.msra.gmra.mrb[6].mxu0 %vm544_vm9, %v2185_v54 }
 0x7d5   : > { %5037 = vmatpush3.bf16.msra.mxu0 %v6078_v5  ;;  %4639 = vmatprep.mubr.msk.f32.mxu0 %vm5421_vm5, %v5420_v27  ;;  %v2485_v60 = vpop.permute.xlu0 %2484 }
 0x7d6   : > { %5038 = vmatprep.subr.bf16.mxu0 %v5418_v23 }
 0x7d7   : > { %v2560_v55 = vpop.permute.xlu1 %2559 }
 0x7d9   : > { %5040 = vmatpush3.bf16.msra.mxu0 %v6093_v7  ;;  %v2635_v1 = vpop.permute.xlu0 %2634 }
 0x7da   : > { %5041 = vmatprep.subr.bf16.mxu0 %v5418_v23 }
 0x7db   : > { %v2725_v56 = vpop.permute.xlu1 %2724 }
 0x7dc   : > { %4640 = vmatmul.mubr.msk.f32.vlgmr.msra.gmra.mrb[6].mxu0 %vm544_vm9, %v2260_v53  ;;  %4706 = vmatmul.mubr.msk.f32.vlgmr.msra.gmra.mrb[6].mxu1 %vm544_vm9, %v2725_v56 }
 0x7dd   : > { %5043 = vmatpush3.bf16.msra.mxu0 %v6113_v26  ;;  %5079 = vmatpush3.bf16.msra.mxu1 %v6052_v58 }
 0x7de   : > { %5044 = vmatprep.subr.bf16.mxu0 %v5418_v23  ;;  %5080 = vmatprep.subr.bf16.mxu1 %v5418_v23 }
 0x7df   : > { %4650 = vmatprep.mubr.msk.f32.mxu0 %vm5421_vm5, %v5420_v27  ;;  %4716 = vmatprep.mubr.msk.f32.mxu1 %vm5421_vm5, %v5420_v27  ;;  %v2800_v35 = vpop.permute.xlu1 %2799 }
 0x7e1   : > { %5046 = vmatpush3.bf16.msra.mxu0 %v6127_v61  ;;  %5082 = vmatpush3.bf16.msra.mxu1 %v6064_v0 }
 0x7e2   : > { %5047 = vmatprep.subr.bf16.mxu0 %v5418_v23  ;;  %5083 = vmatprep.subr.bf16.mxu1 %v5418_v23 }
 0x7e3   : > { %v2875_v59 = vpop.permute.xlu1 %2874 }
 0x7e4   : > { %4651 = vmatmul.mubr.msk.f32.vlgmr.msra.gmra.mrb[6].mxu0 %vm544_vm9, %v2335_v57  ;;  %4717 = vmatmul.mubr.msk.f32.vlgmr.msra.gmra.mrb[6].mxu1 %vm544_vm9, %v2800_v35 }
 0x7e5   : > { %5049 = vmatpush3.bf16.msra.mxu0 %v6141_v31  ;;  %5085 = vmatpush3.bf16.msra.mxu1 %v6078_v5 }
 0x7e6   : > { %5050 = vmatprep.subr.bf16.mxu0 %v5418_v23  ;;  %5086 = vmatprep.subr.bf16.mxu1 %v5418_v23 }
 0x7e7   : > { %4661 = vmatprep.mubr.msk.f32.mxu0 %vm5421_vm5, %v5420_v27  ;;  %4727 = vmatprep.mubr.msk.f32.mxu1 %vm5421_vm5, %v5420_v27  ;;  %v2950_v62 = vpop.permute.xlu1 %2949 }
 0x7e9   : > { %5052 = vmatpush3.bf16.msra.mxu0 %v6154_v28  ;;  %5088 = vmatpush3.bf16.msra.mxu1 %v6093_v7 }
 0x7ea   : > { %5053 = vmatprep.subr.bf16.mxu0 %v5418_v23  ;;  %5089 = vmatprep.subr.bf16.mxu1 %v5418_v23 }
 0x7eb   : > { %v3025_v63 = vpop.permute.xlu1 %3024 }
 0x7ec   : > { %4662 = vmatmul.mubr.msk.f32.vlgmr.msra.gmra.mrb[6].mxu0 %vm544_vm9, %v2410_v30  ;;  %4728 = vmatmul.mubr.msk.f32.vlgmr.msra.gmra.mrb[6].mxu1 %vm544_vm9, %v2875_v59 }
 0x7ed   : > { %5055 = vmatpush3.bf16.msra.mxu0 %v6168_v39  ;;  %5091 = vmatpush3.bf16.msra.mxu1 %v6113_v26 }
 0x7ee   : > { %5056 = vmatprep.subr.bf16.mxu0 %v5418_v23  ;;  %5092 = vmatprep.subr.bf16.mxu1 %v5418_v23 }
 0x7ef   : > { %4672 = vmatprep.mubr.msk.f32.mxu0 %vm5421_vm5, %v5420_v27  ;;  %4738 = vmatprep.mubr.msk.f32.mxu1 %vm5421_vm5, %v5420_v27  ;;  %v3100_v2 = vpop.permute.xlu1 %3099 }
 0x7f1   : > { %5058 = vmatpush3.bf16.msra.mxu0 %v6181_v41  ;;  %5094 = vmatpush3.bf16.msra.mxu1 %v6127_v61 }
 0x7f2   : > { %5059 = vmatprep.subr.bf16.mxu0 %v5418_v23  ;;  %5095 = vmatprep.subr.bf16.mxu1 %v5418_v23 }
 0x7f3   : > { %v3175_v4 = vpop.permute.xlu1 %3174 }
 0x7f4   : > { %4673 = vmatmul.mubr.msk.f32.vlgmr.msra.gmra.mrb[6].mxu0 %vm544_vm9, %v2485_v60  ;;  %4739 = vmatmul.mubr.msk.f32.vlgmr.msra.gmra.mrb[6].mxu1 %vm544_vm9, %v2950_v62 }
 0x7f5   : > { %5061 = vmatpush3.bf16.msra.mxu0 %v6196_v44  ;;  %5097 = vmatpush3.bf16.msra.mxu1 %v6141_v31 }
 0x7f6   : > { %5062 = vmatprep.subr.bf16.mxu0 %v5418_v23  ;;  %5098 = vmatprep.subr.bf16.mxu1 %v5418_v23 }
 0x7f7   : > { %4683 = vmatprep.mubr.msk.f32.mxu0 %vm5421_vm5, %v5420_v27  ;;  %4749 = vmatprep.mubr.msk.f32.mxu1 %vm5421_vm5, %v5420_v27 }
 0x7f9   : > { %5064 = vmatpush3.bf16.msra.mxu0 %v6212_v47  ;;  %5100 = vmatpush3.bf16.msra.mxu1 %v6154_v28 }
 0x7fa   : > { %5065 = vmatprep.subr.bf16.mxu0 %v5418_v23  ;;  %5101 = vmatprep.subr.bf16.mxu1 %v5418_v23 }
 0x7fc   : > { %4684 = vmatmul.mubr.msk.f32.vlgmr.msra.gmra.mrb[6].mxu0 %vm544_vm9, %v2560_v55  ;;  %4750 = vmatmul.mubr.msk.f32.vlgmr.msra.gmra.mrb[6].mxu1 %vm544_vm9, %v3025_v63 }
 0x7fd   : > { %5067 = vmatpush3.bf16.msra.mxu0 %v6228_v38  ;;  %5103 = vmatpush3.bf16.msra.mxu1 %v6168_v39 }
 0x7fe   : > { %5068 = vmatprep.subr.bf16.mxu0 %v5418_v23  ;;  %5104 = vmatprep.subr.bf16.mxu1 %v5418_v23 }
 0x7ff   : > { %4694 = vmatprep.mubr.msk.f32.mxu0 %vm5421_vm5, %v5420_v27  ;;  %4760 = vmatprep.mubr.msk.f32.mxu1 %vm5421_vm5, %v5420_v27 }
 0x801   : > { %5070 = vmatpush3.bf16.msra.mxu0 %v6242_v50  ;;  %5106 = vmatpush3.bf16.msra.mxu1 %v6181_v41 }
 0x802   : > { %5119 = vmatprep.subr.bf16.mxu0 %v5418_v23  ;;  %5107 = vmatprep.subr.bf16.mxu1 %v5418_v23 }
 0x804   : > { %4695 = vmatmul.mubr.msk.f32.vlgmr.msra.gmra.mrb[6].mxu0 %vm544_vm9, %v2635_v1  ;;  %4761 = vmatmul.mubr.msk.f32.vlgmr.msra.gmra.mrb[6].mxu1 %vm544_vm9, %v3100_v2 }
 0x805   : > { %5121 = vmatpush3.bf16.msra.mxu0 %v6016_v37  ;;  %5109 = vmatpush3.bf16.msra.mxu1 %v6196_v44  ;;  %v3338_v37 = vpop.permute.xlu0 %3337 }
 0x806   : > { %5122 = vmatprep.subr.bf16.mxu0 %v5418_v23  ;;  %5110 = vmatprep.subr.bf16.mxu1 %v5418_v23 }
 0x807   : > { %4793 = vmatprep.mubr.msk.f32.mxu0 %vm5421_vm5, %v5420_v27  ;;  %4771 = vmatprep.mubr.msk.f32.mxu1 %vm5421_vm5, %v5420_v27 }
 0x809   : > { %5124 = vmatpush3.bf16.msra.mxu0 %v6037_v52  ;;  %5112 = vmatpush3.bf16.msra.mxu1 %v6212_v47  ;;  %v3413_v52 = vpop.permute.xlu0 %3412 }
 0x80a   : > { %5125 = vmatprep.subr.bf16.mxu0 %v5418_v23  ;;  %5113 = vmatprep.subr.bf16.mxu1 %v5418_v23 }
 0x80c   : > { %4794 = vmatmul.mubr.msk.f32.vlgmr.msra.gmra.mrb[8].mxu0 %vm544_vm9, %v3338_v37  ;;  %4772 = vmatmul.mubr.msk.f32.vlgmr.msra.gmra.mrb[6].mxu1 %vm544_vm9, %v3175_v4 }
 0x80d   : > { %5127 = vmatpush3.bf16.msra.mxu0 %v6052_v58  ;;  %5115 = vmatpush3.bf16.msra.mxu1 %v6228_v38  ;;  %v3250_v58 = vpop.permute.xlu1 %3249 }
 0x80e   : > { %5128 = vmatprep.subr.bf16.mxu0 %v5418_v23  ;;  %5116 = vmatprep.subr.bf16.mxu1 %v5418_v23 }
 0x80f   : > { %4804 = vmatprep.mubr.msk.f32.mxu0 %vm5421_vm5, %v5420_v27  ;;  %4782 = vmatprep.mubr.msk.f32.mxu1 %vm5421_vm5, %v5420_v27 }
 0x811   : > { %5130 = vmatpush3.bf16.msra.mxu0 %v6064_v0  ;;  %5118 = vmatpush3.bf16.msra.mxu1 %v6242_v50  ;;  %v3488_v0 = vpop.permute.xlu0 %3487 }
 0x812   : > { %5131 = vmatprep.subr.bf16.mxu0 %v5418_v23 }
 0x814   : > { %4805 = vmatmul.mubr.msk.f32.vlgmr.msra.gmra.mrb[8].mxu0 %vm544_vm9, %v3413_v52  ;;  %4783 = vmatmul.mubr.msk.f32.vlgmr.msra.gmra.mrb[6].mxu1 %vm544_vm9, %v3250_v58 }
 0x815   : > { %5133 = vmatpush3.bf16.msra.mxu0 %v6078_v5  ;;  %4815 = vmatprep.mubr.msk.f32.mxu0 %vm5421_vm5, %v5420_v27  ;;  %v3563_v5 = vpop.permute.xlu0 %3562 }
 0x816   : > { %5134 = vmatprep.subr.bf16.mxu0 %v5418_v23 }
 0x819   : > { %5136 = vmatpush3.bf16.msra.mxu0 %v6093_v7  ;;  %v3638_v6 = vpop.permute.xlu0 %3637  ;;  %v1512_v7 = vld [vmem:[%s6494_s11] sm:$0x1] }
 0x81a   : > { %5137 = vmatprep.subr.bf16.mxu0 %v5418_v23 }
 0x81c   : > { %4816 = vmatmul.mubr.msk.f32.vlgmr.msra.gmra.mrb[8].mxu0 %vm544_vm9, %v3488_v0 }
 0x81d   : > { %5139 = vmatpush3.bf16.msra.mxu0 %v6113_v26  ;;  %4826 = vmatprep.mubr.msk.f32.mxu0 %vm5421_vm5, %v5420_v27  ;;  %v3713_v8 = vpop.permute.xlu0 %3712 }
 0x81e   : > { %5140 = vmatprep.subr.bf16.mxu0 %v5418_v23 }
 0x821   : > { %5142 = vmatpush3.bf16.msra.mxu0 %v6127_v61  ;;  %v3788_v9 = vpop.permute.xlu0 %3787 }
 0x822   : > { %5143 = vmatprep.subr.bf16.mxu0 %v5418_v23 }
 0x824   : > { %4827 = vmatmul.mubr.msk.f32.vlgmr.msra.gmra.mrb[8].mxu0 %vm544_vm9, %v3563_v5 }
 0x825   : > { %5145 = vmatpush3.bf16.msra.mxu0 %v6141_v31  ;;  %4837 = vmatprep.mubr.msk.f32.mxu0 %vm5421_vm5, %v5420_v27  ;;  %v3863_v10 = vpop.permute.xlu0 %3862 }
 0x826   : > { %5146 = vmatprep.subr.bf16.mxu0 %v5418_v23 }
 0x829   : > { %5148 = vmatpush3.bf16.msra.mxu0 %v6154_v28 }
 0x82a   : > { %5149 = vmatprep.subr.bf16.mxu0 %v5418_v23 }
 0x82c   : > { %4838 = vmatmul.mubr.msk.f32.vlgmr.msra.gmra.mrb[8].mxu0 %vm544_vm9, %v3638_v6 }
 0x82d   : > { %5151 = vmatpush3.bf16.msra.mxu0 %v6168_v39  ;;  %4848 = vmatprep.mubr.msk.f32.mxu0 %vm5421_vm5, %v5420_v27 }
 0x82e   : > { %5152 = vmatprep.subr.bf16.mxu0 %v5418_v23 }
 0x831   : > { %5154 = vmatpush3.bf16.msra.mxu0 %v6181_v41 }
 0x832   : > { %5155 = vmatprep.subr.bf16.mxu0 %v5418_v23 }
 0x834   : > { %4849 = vmatmul.mubr.msk.f32.vlgmr.msra.gmra.mrb[8].mxu0 %vm544_vm9, %v3713_v8 }
 0x835   : > { %5157 = vmatpush3.bf16.msra.mxu0 %v6196_v44  ;;  %4859 = vmatprep.mubr.msk.f32.mxu0 %vm5421_vm5, %v5420_v27 }
 0x836   : > { %5158 = vmatprep.subr.bf16.mxu0 %v5418_v23 }
 0x839   : > { %5160 = vmatpush3.bf16.msra.mxu0 %v6212_v47 }
 0x83a   : > { %5161 = vmatprep.subr.bf16.mxu0 %v5418_v23 }
 0x83c   : > { %4860 = vmatmul.mubr.msk.f32.vlgmr.msra.gmra.mrb[8].mxu0 %vm544_vm9, %v3788_v9 }
 0x83d   : > { %5163 = vmatpush3.bf16.msra.mxu0 %v6228_v38  ;;  %4870 = vmatprep.mubr.msk.f32.mxu0 %vm5421_vm5, %v5420_v27 }
 0x83e   : > { %5164 = vmatprep.subr.bf16.mxu0 %v5418_v23 }
 0x841   : > { %5166 = vmatpush3.bf16.msra.mxu0 %v6242_v50 }
 0x844   : > { %4871 = vmatmul.mubr.msk.f32.vlgmr.msra.gmra.mrb[8].mxu0 %vm544_vm9, %v3863_v10 }
 0x864   : > { %v2100_v11 = vpop.f32.mrb[4].mxu1 }
 0x865   : > { %v5167_v12 = vadd.f32 %v2100_v11, %v1512_v7  ;;  %v4608_v13 = vpop.f32.mrb[5].mxu1 }
 0x867   : > { %v2105_v14 = vmul.f32 %v5167_v12, %v5587_v15 }
 0x869   : > { %v2106_v23 = vadd.f32 %v2105_v14, %v5583_v3 }
 0x86b   : > { %2108 = vst.msk [vmem:[%s419_s15] sm:$0x1] %vm2107_vm1, %v2106_v23 }
 0x8d7   : > { %v2704_v27 = vpop.f32.mrb[6].mxu0 }
 0x8d8   : > { %v5168_v26 = vadd.f32 %v2704_v27, %v1512_v7  ;;  %v4696_v20 = vpop.f32.mrb[7].mxu0 }
 0x8da   : > { %v2715_v61 = vmul.f32 %v5168_v26, %v2713_v17 }
 0x8dc   : > { %v2722_v29 = vadd.f32 %v2720_v19, %v2715_v61 }
 0x8de   : > { %2723 = vst.msk [vmem:[%s419_s15 + $0x1] sm:$0x1] %vm2107_vm1, %v2722_v29 }
 0x8e7   : > { %v3319_v31 = vpop.f32.mrb[6].mxu1 }
 0x8e8   : > { %v5169_v16 = vadd.f32 %v3319_v31, %v1512_v7  ;;  %v4784_v28 = vpop.f32.mrb[7].mxu1 }
 0x8ea   : > { %v3329_v33 = vmul.f32 %v5169_v16, %v3327_v32 }
 0x8ec   : > { %v3335_v39 = vadd.f32 %v3333_v36, %v3329_v33 }
 0x8ee   : > { %3336 = vst.msk [vmem:[%s419_s15 + $0x2] sm:$0x1] %vm2107_vm1, %v3335_v39 }
 0x917   : > { %v3932_v21 = vpop.f32.mrb[8].mxu0 }
 0x918   : > { %v5170_v22 = vadd.f32 %v3932_v21, %v1512_v7  ;;  %v4872_v41 = vpop.f32.mrb[9].mxu0 }
 0x91a   : > { %v3942_v42 = vmul.f32 %v5170_v22, %v3940_v40 }
 0x91c   : > { %v3948_v44 = vadd.f32 %v3946_v43, %v3942_v42 }
 0x91e   : > { %3949 = vst.msk [vmem:[%s419_s15 + $0x3] sm:$0x1] %vm2107_vm1, %v3948_v44 }
 0x91f   : > { %5350 = shalt.err (!%p5347_p7)
}
 0x920   : > { %s5351_s19 = scalar_lea.hbm %s6438_s30, 64  ;;  %s5355_s28 = scalar_lea.hbm %s6495_s12, 128 }
 0x921   : > { %p5352_p8 = scmp.ne.s32.totalorder %s6438_s30, %s5351_s19  ;;  %p5356_p1 = scmp.lt.u32.totalorder %s6438_s30, %s6495_s12 }
 0x922   : > { %p5357_p0 = scmp.lt.u32.totalorder %s5355_s28, %s5351_s19  ;;  %p5359_p6 = scmp.lt.u32.totalorder %s5351_s19, %s6438_s30 }
 0x923   : > { %p5353_p11 = pnand %p5352_p8, %p6509_p9 }
 0x924   : > { %p5358_p5 = por %p5357_p0, %p5356_p1 }
 0x925   : > { %p5354_p13 = pneg %p5353_p11 }
 0x926   : > { %p5360_p10 = por %p5359_p6, %p5358_p5 }
 0x928   : > { %p5361_p12 = pnand %p5360_p10, %p5354_p13 }
 0x92a   : > { %5364 = shalt.err (!%p5361_p12)
}
 0x92b   : > { %5231 = dma.vmem_to_hbm [thread:$0]  (%p6509_p9), %s6440_s20, 64, %s6438_s30, %s3951_s25  }
 0x92c PF: > { %p5243_p2 = scmp.ge.s32.totalorder %s5403_s24, 2  ;;  %s3976_s26 = sand.u32 1, %s5391_s21  }
 0x92d   : > { %p6510_p3 = scmp.ne.s32.totalorder %s6503_s14, 0  ;;  %s3977_s18 = scalar_lea.sflag [#allocation7], %s3976_s26 }
 0x92f   : > { %p5238_p4 = pnand %p5243_p2, %p6510_p3 }
 0x931   : > { %5386 = dma.done.wait (!%p5238_p4), %s3977_s18, 64  }
 0x932   : > { %5388 = vsyncadd (!%p5238_p4), %s3977_s18, 4294967232  ;;  %s6511_s16 = sld [smem:[#allocation11_spill]]  ;;  %s6512_s23 = sld [smem:[#allocation12_spill]] }
 0x933   : > { %p23_p7 = scmp.ge.s32.totalorder %s5519_s27, 4   ;;  %s6513_s21 = smov %s5395_s22 }
 0x934   : > { %s6515_s24 = smov %s5519_s27 }
 0x935   :  { %25 = sbr.rel (!%p23_p7) target bundleno = 4 (0x4), region = 122 }
 0x938   : > { %s6514_s22 = smov %s6511_s16 }
 0x93c   :  { %3982 = vsyncpa [#allocation6], 1 }
 0x93d   :  { %3984 = vsyncpa [#allocation6 + $0x1], 1 }
 0x93e   :  { %3985 = vsyncpa [#allocation7], 1 }
 0x93f   :  { %3987 = vsyncpa [#allocation7 + $0x1], 1 }

</bundles_post_ra>
